<compile_context>
chip_gen: v7x
topology: tpu7x:2x2x1
jax: 0.10.0
libtpu: 0.0.40
codegen_flags: <defaults>
</compile_context>

<pallas_src>
import functools

import numpy as np
import jax
import jax.numpy as jnp
from jax import lax
from jax.experimental import pallas as pl
from jax.experimental.pallas import tpu as pltpu


def _round_up(x, m):
    return ((x + m - 1) // m) * m


def make_pool_matrix(H, W, k=5, s=3):
    """AvgPool2d(k, s) as a constant (H*W, OH*OW) matrix (host-side, trace-time)."""
    OH = (H - k) // s + 1
    OW = (W - k) // s + 1
    P = np.zeros((H * W, OH * OW), dtype=np.float32)
    inv = 1.0 / (k * k)
    for oh in range(OH):
        for ow in range(OW):
            for kh in range(k):
                for kw in range(k):
                    P[(oh * s + kh) * W + (ow * s + kw), oh * OW + ow] += inv
    return P, OH, OW


# ----------------------------------------------------------------------------
# Fused kernel.
# Grid = (nf1_split [parallel], KT [arbitrary K-stream of the fc1 weight]).
# ----------------------------------------------------------------------------
def _aux_fused_kernel(x_ref, pt_ref, wc_ref, bc_ref, w1_ref, b1_ref, w2_ref,
                      o_ref, acc_ref):
    kt = pl.program_id(1)
    nkt = pl.num_programs(1)
    n_pad, hw, _ = x_ref.shape
    g = pt_ref.shape[0]            # spatial rows covered by this fc1 K-tile
    tk = w1_ref.shape[0]           # = g * 128

    @pl.when(kt == 0)
    def _init():
        # Seed the fc1 accumulator with this core's fc1-bias half: removes a
        # full-accumulator VPU add from the epilogue.
        acc_ref[...] = jnp.broadcast_to(b1_ref[...], acc_ref.shape)

    # ---- Front end for this K-tile's g spatial rows (overlaps the w1 DMA) ---
    # avgpool(5,3) as a matmul with the constant pooling matrix, batched over
    # the padded batch (standard batched-matmul einsum form).
    pt_b = jnp.broadcast_to(pt_ref[...][None], (n_pad, g, hw))
    pooled = jnp.einsum("nsp,npc->nsc", pt_b, x_ref[...],
                        preferred_element_type=jnp.float32)        # (N_PAD, g, C)
    # 1x1 conv + bias + ReLU as one lane-dense 2-D matmul over all (n, s) rows.
    pooled2 = pooled.reshape(n_pad * g, pooled.shape[-1])           # (N_PAD*g, C)
    conv = jnp.dot(pooled2, wc_ref[...],
                   preferred_element_type=jnp.float32)              # (N_PAD*g, 128)
    conv = jnp.maximum(conv + bc_ref[...], 0.0)
    # Flatten (n, s_local, o) -> (n, s_local*128 + o): matches the (s, o)-
    # permuted fc1-weight K order prepared in the wrapper.
    feat = conv.reshape(n_pad, tk).astype(jnp.bfloat16)             # (N_PAD, tk)

    # ---- fc1: one MXU matmul per streamed bf16 K-tile (this core's NF1 half)
    acc_ref[...] += jnp.dot(feat, w1_ref[...],
                            preferred_element_type=jnp.float32)

    @pl.when(kt == nkt - 1)
    def _finalize():
        h1 = jnp.maximum(acc_ref[...], 0.0)                         # ReLU(fc1)
        # TODO(synk): Dropout(0.7) is eval-mode identity (no PRNG mask / 1/(1-p) scale).
        part = jnp.dot(h1.astype(jnp.bfloat16), w2_ref[...],
                       preferred_element_type=jnp.float32)          # partial logits
        o_ref[0] = part.astype(o_ref.dtype)


# ----------------------------------------------------------------------------
# Wrapper: layout / dtype prep (one-time weight prep in practice) + pallas_call
# ----------------------------------------------------------------------------
def inception_aux_forward(x, params, *, num_classes, tk=1024, nf1_split=2):
    N, C, H, W = x.shape
    P, OH, OW = make_pool_matrix(H, W, k=5, s=3)
    S = OH * OW
    HW = H * W
    F_CONV = params["conv_w"].shape[0]          # 128
    NF1, K_FC1 = params["fc1_w"].shape          # 1024, 2048
    assert F_CONV * S == K_FC1, "spatial size inconsistent with fc1 input dim"
    assert tk % 128 == 0 and K_FC1 % tk == 0
    g = tk // 128
    assert g % 8 == 0 or g == S, "pool-matrix K-tile must be sublane aligned"
    assert NF1 % nf1_split == 0
    KT = K_FC1 // tk
    NH = NF1 // nf1_split
    N_PAD = _round_up(max(N, 8), 8)
    NC_PAD = _round_up(max(num_classes, 128), 128)
    f32 = jnp.float32

    # Activations: (N_PAD, HW, C) with the batch zero-padded to 8 sublanes so
    # every matmul row is real (pad rows produce finite garbage, sliced off).
    x_t = jnp.pad(x.reshape(N, C, HW).transpose(0, 2, 1),
                  ((0, N_PAD - N), (0, 0), (0, 0))).astype(f32)
    p_t = jnp.asarray(P.T, dtype=f32)                                  # (S, HW)
    wc = params["conv_w"].reshape(F_CONV, C).T.astype(f32)             # (C, 128)
    bc = params["conv_b"].reshape(1, F_CONV).astype(f32)
    # fc1 weight: transpose to (K, NF1) and permute K from (o, s) to (s, o); bf16.
    w1 = (params["fc1_w"].reshape(NF1, F_CONV, S)
          .transpose(2, 1, 0).reshape(K_FC1, NF1).astype(jnp.bfloat16))
    b1 = params["fc1_b"].reshape(1, NF1).astype(f32)
    # fc2: pad output dim to a lane-aligned multiple of 128; bf16 weight.
    w2 = jnp.pad(params["fc2_w"].T,
                 ((0, 0), (0, NC_PAD - num_classes))).astype(jnp.bfloat16)

    flops = (nf1_split * 2 * N_PAD * S * (HW * C + C * F_CONV)
             + 2 * N_PAD * (K_FC1 * NF1 + NF1 * NC_PAD))
    bytes_accessed = (x_t.size * 4 + p_t.size * 4 + wc.size * 4 + bc.size * 4
                      + w1.size * 2 + b1.size * 4 + w2.size * 2
                      + nf1_split * N_PAD * NC_PAD * 4)

    out_parts = pl.pallas_call(
        _aux_fused_kernel,
        out_shape=jax.ShapeDtypeStruct((nf1_split, N_PAD, NC_PAD), f32),
        grid=(nf1_split, KT),
        in_specs=[
            pl.BlockSpec((N_PAD, HW, C), lambda c, k: (0, 0, 0)),   # x (resident)
            pl.BlockSpec((g, HW), lambda c, k: (k, 0)),             # pool rows for K-tile
            pl.BlockSpec((C, F_CONV), lambda c, k: (0, 0)),         # conv weight
            pl.BlockSpec((1, F_CONV), lambda c, k: (0, 0)),         # conv bias
            pl.BlockSpec((tk, NH), lambda c, k: (k, c)),            # fc1 weight (streamed)
            pl.BlockSpec((1, NH), lambda c, k: (0, c)),             # fc1 bias half
            pl.BlockSpec((NH, NC_PAD), lambda c, k: (c, 0)),        # fc2 weight half
        ],
        out_specs=pl.BlockSpec((1, N_PAD, NC_PAD), lambda c, k: (c, 0, 0)),
        scratch_shapes=[
            pltpu.VMEM((N_PAD, NH), f32),        # fc1 accumulator (bias-seeded)
        ],
        compiler_params=pltpu.CompilerParams(
            dimension_semantics=("parallel", "arbitrary")),
        cost_estimate=pl.CostEstimate(flops=flops, transcendentals=0,
                                      bytes_accessed=bytes_accessed),
    )(x_t, p_t, wc, bc, w1, b1, w2)

    # Epilogue (few KB): sum the nf1_split partial logit blocks, add the fc2
    # bias, strip batch/class padding.
    return out_parts.sum(axis=0)[:N, :num_classes] + params["fc2_b"][None, :]


# ----------------------------------------------------------------------------
# Pure-JAX reference (mimics the kernel's bf16 weight/activation rounding at
# the fc matmuls so the tolerance can stay tight; pool/conv math is plain f32).
# ----------------------------------------------------------------------------
def ref_forward(x, params):
    N, C, H, W = x.shape
    bf = lambda a: a.astype(jnp.bfloat16).astype(jnp.float32)
    pooled = lax.reduce_window(x, 0.0, lax.add, (1, 1, 5, 5), (1, 1, 3, 3), "VALID") / 25.0
    wc = params["conv_w"].reshape(params["conv_w"].shape[0], C)
    conv = jnp.einsum("nchw,oc->nohw", pooled, wc) + params["conv_b"][None, :, None, None]
    conv = jnp.maximum(conv, 0.0)
    feat = conv.reshape(N, -1)                       # PyTorch (c, h, w) flatten order
    h1 = jnp.maximum(bf(feat) @ bf(params["fc1_w"]).T + params["fc1_b"], 0.0)
    return bf(h1) @ bf(params["fc2_w"]).T + params["fc2_b"]


if __name__ == "__main__":
    # Spatial 14x14 so avgpool(5,3) -> 4x4 and 128*4*4 == 2048 == fc1 in-dim
    # (required by the InceptionAux spec); small channel / class counts for test.
    N, C_in, H, W = 2, 4, 14, 14
    num_classes = 16

    key = jax.random.PRNGKey(0)
    kx, k1, k2, k3, k4, k5, k6 = jax.random.split(key, 7)
    x = jax.random.normal(kx, (N, C_in, H, W), jnp.float32)
    params = {
        "conv_w": 0.1 * jax.random.normal(k1, (128, C_in, 1, 1), jnp.float32),
        "conv_b": 0.1 * jax.random.normal(k2, (128,), jnp.float32),
        "fc1_w": 0.02 * jax.random.normal(k3, (1024, 2048), jnp.float32),
        "fc1_b": 0.02 * jax.random.normal(k4, (1024,), jnp.float32),
        "fc2_w": 0.02 * jax.random.normal(k5, (num_classes, 1024), jnp.float32),
        "fc2_b": 0.02 * jax.random.normal(k6, (num_classes,), jnp.float32),
    }

    fwd = jax.jit(functools.partial(inception_aux_forward, num_classes=num_classes))
    out = jax.block_until_ready(fwd(x, params))
    ref = jax.block_until_ready(ref_forward(x, params))

    assert out.shape == (N, num_classes), out.shape
    np.testing.assert_allclose(np.asarray(out), np.asarray(ref), rtol=5e-3, atol=5e-4)
    print("KERNEL_OK")
</pallas_src>

<mosaic_0001>
module attributes {stable_mosaic.version = 11 : i64} {
  func.func @_aux_fused_kernel(%arg0: i32, %arg1: i32, %arg2: memref<8x196x4xf32, #tpu.memory_space<vmem>>, %arg3: memref<8x196xf32, #tpu.memory_space<vmem>>, %arg4: memref<4x128xf32, #tpu.memory_space<vmem>>, %arg5: memref<1x128xf32, #tpu.memory_space<vmem>>, %arg6: memref<1024x512xbf16, #tpu.memory_space<vmem>>, %arg7: memref<1x512xf32, #tpu.memory_space<vmem>>, %arg8: memref<512x128xbf16, #tpu.memory_space<vmem>>, %arg9: memref<1x8x128xf32, #tpu.memory_space<vmem>>, %arg10: memref<8x512xf32, #tpu.memory_space<vmem>>) attributes {dimension_semantics = [#tpu.dimension_semantics<parallel>, #tpu.dimension_semantics<arbitrary>], iteration_bounds = array<i64: 2, 2>, scalar_prefetch = 0 : i64, scratch_operands = 1 : i64, tpu.core_type = #tpu.core_type<tc>, window_params = [{pipeline_mode = #tpu.pipeline_mode<synchronous>, transform_indices = @transform_0, window_bounds = array<i64: 8, 196, 4>}, {transform_indices = @transform_1, window_bounds = array<i64: 8, 196>}, {pipeline_mode = #tpu.pipeline_mode<synchronous>, transform_indices = @transform_2, window_bounds = array<i64: 4, 128>}, {pipeline_mode = #tpu.pipeline_mode<synchronous>, transform_indices = @transform_3, window_bounds = array<i64: 1, 128>}, {transform_indices = @transform_4, window_bounds = array<i64: 1024, 512>}, {transform_indices = @transform_5, window_bounds = array<i64: 1, 512>}, {transform_indices = @transform_6, window_bounds = array<i64: 512, 128>}, {transform_indices = @transform_7, window_bounds = array<i64: 1, 8, 128>}]} {
    %c0_i32 = arith.constant 0 : i32
    %0 = arith.cmpi eq, %arg1, %c0_i32 : i32
    %1 = arith.extui %0 : i1 to i32
    %c0_i32_0 = arith.constant 0 : i32
    %2 = arith.cmpi ne, %1, %c0_i32_0 : i32
    scf.if %2 {
      %c0_19 = arith.constant 0 : index
      %c0_20 = arith.constant 0 : index
      %27 = vector.load %arg7[%c0_19, %c0_20] : memref<1x512xf32, #tpu.memory_space<vmem>>, vector<1x512xf32>
      %28 = vector.shape_cast %27 : vector<1x512xf32> to vector<1x512xf32>
      %29 = vector.broadcast %28 : vector<1x512xf32> to vector<8x512xf32>
      %c0_21 = arith.constant 0 : index
      %c0_22 = arith.constant 0 : index
      %30 = vector.load %arg10[%c0_21, %c0_22] : memref<8x512xf32, #tpu.memory_space<vmem>>, vector<8x512xf32>
      tpu.vector_store %arg10[%c0_21, %c0_22], %29 {strides = array<i32>} : memref<8x512xf32, #tpu.memory_space<vmem>>, vector<8x512xf32>,
    } else {
    }
    %c0 = arith.constant 0 : index
    %c0_1 = arith.constant 0 : index
    %3 = vector.load %arg3[%c0, %c0_1] : memref<8x196xf32, #tpu.memory_space<vmem>>, vector<8x196xf32>
    %4 = vector.shape_cast %3 : vector<8x196xf32> to vector<1x8x196xf32>
    %5 = vector.shape_cast %4 : vector<1x8x196xf32> to vector<1x8x196xf32>
    %6 = vector.broadcast %5 : vector<1x8x196xf32> to vector<8x8x196xf32>
    %c0_2 = arith.constant 0 : index
    %c0_3 = arith.constant 0 : index
    %c0_4 = arith.constant 0 : index
    %7 = vector.load %arg2[%c0_2, %c0_3, %c0_4] : memref<8x196x4xf32, #tpu.memory_space<vmem>>, vector<8x196x4xf32>
    "tpu.trace_start"() <{level = 10 : i32, message = "nsp,npc->nsc"}> : () -> ()
    %cst = arith.constant dense<0.000000e+00> : vector<8x8x4xf32>
    %8 = tpu.matmul %6, %7, %cst {dimension_numbers = #tpu.dot_dimension_numbers<[2], [1], [1], [2], [0, 0, 0, 1, 1, 2], [0], [0]>} : vector<8x8x196xf32>, vector<8x196x4xf32>, vector<8x8x4xf32> -> vector<8x8x4xf32>
    "tpu.trace_stop"() : () -> ()
    %9 = vector.shape_cast %8 : vector<8x8x4xf32> to vector<64x4xf32>
    %c0_5 = arith.constant 0 : index
    %c0_6 = arith.constant 0 : index
    %10 = vector.load %arg4[%c0_5, %c0_6] : memref<4x128xf32, #tpu.memory_space<vmem>>, vector<4x128xf32>
    %cst_7 = arith.constant dense<0.000000e+00> : vector<64x128xf32>
    %11 = tpu.matmul %9, %10, %cst_7 {dimension_numbers = #tpu.dot_dimension_numbers<[1], [0], [0], [1], [0, 0, 1, 1], [], []>} : vector<64x4xf32>, vector<4x128xf32>, vector<64x128xf32> -> vector<64x128xf32>
    %c0_8 = arith.constant 0 : index
    %c0_9 = arith.constant 0 : index
    %12 = vector.load %arg5[%c0_8, %c0_9] : memref<1x128xf32, #tpu.memory_space<vmem>>, vector<1x128xf32>
    %13 = vector.broadcast %12 : vector<1x128xf32> to vector<64x128xf32>
    %14 = arith.addf %11, %13 : vector<64x128xf32>
    %cst_10 = arith.constant 0.000000e+00 : f32
    %15 = vector.broadcast %cst_10 : f32 to vector<64x128xf32>
    %16 = arith.maximumf %14, %15 : vector<64x128xf32>
    %17 = vector.shape_cast %16 : vector<64x128xf32> to vector<8x1024xf32>
    %18 = arith.truncf %17 : vector<8x1024xf32> to vector<8x1024xbf16>
    %c0_11 = arith.constant 0 : index
    %c0_12 = arith.constant 0 : index
    %19 = vector.load %arg10[%c0_11, %c0_12] : memref<8x512xf32, #tpu.memory_space<vmem>>, vector<8x512xf32>
    %c0_13 = arith.constant 0 : index
    %c0_14 = arith.constant 0 : index
    %20 = vector.load %arg6[%c0_13, %c0_14] : memref<1024x512xbf16, #tpu.memory_space<vmem>>, vector<1024x512xbf16>
    %cst_15 = arith.constant dense<0.000000e+00> : vector<8x512xf32>
    %21 = tpu.matmul %18, %20, %cst_15 {dimension_numbers = #tpu.dot_dimension_numbers<[1], [0], [0], [1], [0, 0, 1, 1], [], []>} : vector<8x1024xbf16>, vector<1024x512xbf16>, vector<8x512xf32> -> vector<8x512xf32>
    %22 = arith.addf %19, %21 : vector<8x512xf32>
    %c0_16 = arith.constant 0 : index
    %c0_17 = arith.constant 0 : index
    %23 = vector.load %arg10[%c0_16, %c0_17] : memref<8x512xf32, #tpu.memory_space<vmem>>, vector<8x512xf32>
    tpu.vector_store %arg10[%c0_16, %c0_17], %22 {strides = array<i32>} : memref<8x512xf32, #tpu.memory_space<vmem>>, vector<8x512xf32>,
    %c1_i32 = arith.constant 1 : i32
    %24 = arith.cmpi eq, %arg1, %c1_i32 : i32
    %25 = arith.extui %24 : i1 to i32
    %c0_i32_18 = arith.constant 0 : i32
    %26 = arith.cmpi ne, %25, %c0_i32_18 : i32
    scf.if %26 {
      %c0_19 = arith.constant 0 : index
      %c0_20 = arith.constant 0 : index
      %27 = vector.load %arg10[%c0_19, %c0_20] : memref<8x512xf32, #tpu.memory_space<vmem>>, vector<8x512xf32>
      %cst_21 = arith.constant 0.000000e+00 : f32
      %28 = vector.broadcast %cst_21 : f32 to vector<8x512xf32>
      %29 = arith.maximumf %27, %28 : vector<8x512xf32>
      %30 = arith.truncf %29 : vector<8x512xf32> to vector<8x512xbf16>
      %c0_22 = arith.constant 0 : index
      %c0_23 = arith.constant 0 : index
      %31 = vector.load %arg8[%c0_22, %c0_23] : memref<512x128xbf16, #tpu.memory_space<vmem>>, vector<512x128xbf16>
      %cst_24 = arith.constant dense<0.000000e+00> : vector<8x128xf32>
      %32 = tpu.matmul %30, %31, %cst_24 {dimension_numbers = #tpu.dot_dimension_numbers<[1], [0], [0], [1], [0, 0, 1, 1], [], []>} : vector<8x512xbf16>, vector<512x128xbf16>, vector<8x128xf32> -> vector<8x128xf32>
      %c0_25 = arith.constant 0 : index
      %c0_26 = arith.constant 0 : index
      %c0_27 = arith.constant 0 : index
      %33 = vector.load %arg9[%c0_25, %c0_26, %c0_27] : memref<1x8x128xf32, #tpu.memory_space<vmem>>, vector<1x8x128xf32>
      %34 = vector.shape_cast %33 : vector<1x8x128xf32> to vector<8x128xf32>
      %35 = vector.shape_cast %32 : vector<8x128xf32> to vector<1x8x128xf32>
      tpu.vector_store %arg9[%c0_25, %c0_26, %c0_27], %35 {strides = array<i32>} : memref<1x8x128xf32, #tpu.memory_space<vmem>>, vector<1x8x128xf32>,
    } else {
    }
    return
  }
  func.func @transform_0(%arg0: i32, %arg1: i32) -> (i32, i32, i32) {
    %c0_i32 = arith.constant 0 : i32
    %c0_i32_0 = arith.constant 0 : i32
    %c0_i32_1 = arith.constant 0 : i32
    %c0_i32_2 = arith.constant 0 : i32
    return %c0_i32, %c0_i32_0, %c0_i32_1 : i32, i32, i32
  }
  func.func @transform_1(%arg0: i32, %arg1: i32) -> (i32, i32) {
    %c0_i32 = arith.constant 0 : i32
    %c0_i32_0 = arith.constant 0 : i32
    return %arg1, %c0_i32 : i32, i32
  }
  func.func @transform_2(%arg0: i32, %arg1: i32) -> (i32, i32) {
    %c0_i32 = arith.constant 0 : i32
    %c0_i32_0 = arith.constant 0 : i32
    %c0_i32_1 = arith.constant 0 : i32
    return %c0_i32, %c0_i32_0 : i32, i32
  }
  func.func @transform_3(%arg0: i32, %arg1: i32) -> (i32, i32) {
    %c0_i32 = arith.constant 0 : i32
    %c0_i32_0 = arith.constant 0 : i32
    %c0_i32_1 = arith.constant 0 : i32
    return %c0_i32, %c0_i32_0 : i32, i32
  }
  func.func @transform_4(%arg0: i32, %arg1: i32) -> (i32, i32) {
    %c0_i32 = arith.constant 0 : i32
    return %arg1, %arg0 : i32, i32
  }
  func.func @transform_5(%arg0: i32, %arg1: i32) -> (i32, i32) {
    %c0_i32 = arith.constant 0 : i32
    %c0_i32_0 = arith.constant 0 : i32
    return %c0_i32, %arg0 : i32, i32
  }
  func.func @transform_6(%arg0: i32, %arg1: i32) -> (i32, i32) {
    %c0_i32 = arith.constant 0 : i32
    %c0_i32_0 = arith.constant 0 : i32
    return %arg0, %c0_i32 : i32, i32
  }
  func.func @transform_7(%arg0: i32, %arg1: i32) -> (i32, i32, i32) {
    %c0_i32 = arith.constant 0 : i32
    %c0_i32_0 = arith.constant 0 : i32
    %c0_i32_1 = arith.constant 0 : i32
    return %arg0, %c0_i32, %c0_i32_0 : i32, i32, i32
  }
}

</mosaic_0001>

<bundles_post_ra>
// kernel: inception_aux_forward.1
= control target key start
LH: loop header
LB: loop body
LE: loop exit
PB: predicated region body
PF: predicated region fallthrough
CT: control target
= control target key end

     0   :  { %s7354_s0 = inlined_call_operand.vmem [shape: f32[8,196,4], index: 0, kind: input, shape index: {}]   ;;  %s7355_s1 = inlined_call_operand.vmem [shape: f32[16,196], index: 1, kind: input, shape index: {}]   ;;  %s7356_s2 = inlined_call_operand.vmem [shape: f32[4,128], index: 2, kind: input, shape index: {}]   ;;  %s7357_s3 = inlined_call_operand.vmem [shape: f32[1,128], index: 3, kind: input, shape index: {}]   ;;  %s7358_s4 = inlined_call_operand.vmem [shape: bf16[2048,1024], index: 4, kind: input, shape index: {}]   ;;  %s7359_s5 = inlined_call_operand.vmem [shape: f32[1,1024], index: 5, kind: input, shape index: {}]   ;;  %s7360_s6 = inlined_call_operand.vmem [shape: bf16[1024,128], index: 6, kind: input, shape index: {}]   ;;  %s7361_s7 = inlined_call_operand.vmem [shape: f32[2,8,128], index: 7, kind: output, shape index: {}]  }
   0x1   :  { %7364 = sst [smem:[#allocation6_spill]] %s7358_s4 }
   0x2   :  { %s5621_s24 = smov 0   ;;  %s5623_s25 = smov 0  }
   0x3   :  { %s5625_s26 = smov 0   ;;  %s5627_s27 = smov 0  }
   0x4   :  { %s5629_s28 = smov 0   ;;  %s5631_s29 = smov 0  }
   0x5   :  { %s5633_s30 = smov 0  }
   0x6 LB: > { %s26_s8 = sadd.s32 1, %s5568_s28  ;;  %s29_s9 = sadd.s32 1, %s5572_s29  ;;  %s5576_s30 = sphi %s5633_s30, %s17_s30   ;;  %s5572_s29 = sphi %s5631_s29, %s7375_s29   ;;  %s5568_s28 = sphi %s5629_s28, %s7374_s28   ;;  %s5564_s27 = sphi %s5627_s27, %s7373_s27   ;;  %s5560_s26 = sphi %s5625_s26, %s7372_s26   ;;  %s5556_s25 = sphi %s5623_s25, %s7371_s25   ;;  %s5552_s24 = sphi %s5621_s24, %s7370_s24  }
   0x7   : > { %p27_p0 = scmp.ge.s32.totalorder %s26_s8, 2  ;;  %p134_p1 = scmp.ne.s32.totalorder %s5556_s25, %s5552_s24 }
   0x8   : > { %p135_p2 = scmp.eq.s32.totalorder %s5576_s30, 0  ;;  %s127_s13 = sadd.s32 1, %s5556_s25 }
   0x9   : > { %s7377_s8 = smov (%p27_p0, %s26_s8), 0  ;;  %s7379_s9 = smov (!%p27_p0, %s29_s9), %s5572_s29 }
   0xa   : > { %7365 = sst [smem:[#allocation4_spill]] %s7377_s8  ;;  %p136_p3 = por %p135_p2, %p134_p1 }
   0xb   : > { %p31_p4 = scmp.ge.s32.totalorder %s7379_s9, 2  ;;  %s122_s10 = ssub.s32 %s5568_s28, %s7377_s8 }
   0xc   : > { %p4356_p6 = scmp.ge.s32.totalorder %s5576_s30, 4 }
   0xd   : > { %s7381_s9 = smov (%p31_p4, %s7379_s9), 0 }
   0xe   : > { %7366 = sst [smem:[#allocation5_spill]] %s7381_s9  ;;  %s123_s11 = ssub.s32 %s5572_s29, %s7381_s9 }
   0xf   : > { %s124_s12 = sor.u32 %s123_s11, %s122_s10  ;;  %247 = sbr.rel (%p4356_p6) target bundleno = 160 (0xa0), region = 28 }
  0x10   : > { %p125_p5 = scmp.eq.s32.totalorder %s124_s12, 0 }
  0x12   : > { %s5672_s14 = scalar_select %p125_p5, %s5556_s25, %s127_s13  }
  0x16   : > { %258 = sbr.rel (!%p136_p3) target bundleno = 160 (0xa0), region = 36  ;;  %s260_s15 = sand.u32 (%p136_p3), 1, %s5556_s25  }
  0x17   : > { %s4359_s16 = sshll.u32 (%p136_p3), %s5572_s29, 2  ;;  %s4357_s17 = sshll.u32 (%p136_p3), %s260_s15, 11 }
  0x18   : > { %s4688_s18 = sshll.u32 (%p136_p3), %s5568_s28, 10  ;;  %s7367_s4 = sld [smem:[#allocation6_spill]] (%p136_p3) }
  0x19   : > { %s266_s19 = sadd.s32 (%p136_p3), %s4688_s18, %s4359_s16  ;;  %s5686_s10 = scalar_lea.vmem (%p136_p3), [#allocation3], %s4357_s17 }
  0x1a   : > { %s4361_s20 = sshll.u32 (%p136_p3), %s266_s19, 2 }
  0x1e   : > { %s5681_s23 = scalar_lea.vmem %s7367_s4, %s4361_s20 }
  0x1f   : > { %v281_v0 = vld [vmem:[%s5681_s23] sm:$0xff]  ;;  %v283_v1 = vld [vmem:[%s5681_s23 + $0x8] sm:$0xff] }
  0x20   : > { %v285_v2 = vld [vmem:[%s5681_s23 + $0x20] sm:$0xff]  ;;  %282 = vst [vmem:[%s5686_s10] sm:$0xff] %v281_v0  ;;  %284 = vst [vmem:[%s5686_s10 + $0x8] sm:$0xff] %v283_v1  ;;  %v287_v3 = vld [vmem:[%s5681_s23 + $0x28] sm:$0xff] }
  0x21   : > { %286 = vst [vmem:[%s5686_s10 + $0x10] sm:$0xff] %v285_v2  ;;  %v289_v4 = vld [vmem:[%s5681_s23 + $0x40] sm:$0xff]  ;;  %v291_v5 = vld [vmem:[%s5681_s23 + $0x48] sm:$0xff]  ;;  %288 = vst [vmem:[%s5686_s10 + $0x18] sm:$0xff] %v287_v3 }
  0x22   : > { %290 = vst [vmem:[%s5686_s10 + $0x20] sm:$0xff] %v289_v4  ;;  %292 = vst [vmem:[%s5686_s10 + $0x28] sm:$0xff] %v291_v5  ;;  %v293_v6 = vld [vmem:[%s5681_s23 + $0x60] sm:$0xff]  ;;  %v295_v7 = vld [vmem:[%s5681_s23 + $0x68] sm:$0xff] }
  0x23   : > { %v297_v8 = vld [vmem:[%s5681_s23 + $0x80] sm:$0xff]  ;;  %294 = vst [vmem:[%s5686_s10 + $0x30] sm:$0xff] %v293_v6  ;;  %296 = vst [vmem:[%s5686_s10 + $0x38] sm:$0xff] %v295_v7  ;;  %v299_v9 = vld [vmem:[%s5681_s23 + $0x88] sm:$0xff] }
  0x24   : > { %298 = vst [vmem:[%s5686_s10 + $0x40] sm:$0xff] %v297_v8  ;;  %v301_v10 = vld [vmem:[%s5681_s23 + $0xa0] sm:$0xff]  ;;  %v303_v11 = vld [vmem:[%s5681_s23 + $0xa8] sm:$0xff]  ;;  %300 = vst [vmem:[%s5686_s10 + $0x48] sm:$0xff] %v299_v9 }
  0x25   : > { %302 = vst [vmem:[%s5686_s10 + $0x50] sm:$0xff] %v301_v10  ;;  %304 = vst [vmem:[%s5686_s10 + $0x58] sm:$0xff] %v303_v11  ;;  %v305_v12 = vld [vmem:[%s5681_s23 + $0xc0] sm:$0xff]  ;;  %v307_v13 = vld [vmem:[%s5681_s23 + $0xc8] sm:$0xff] }
  0x26   : > { %v309_v14 = vld [vmem:[%s5681_s23 + $0xe0] sm:$0xff]  ;;  %306 = vst [vmem:[%s5686_s10 + $0x60] sm:$0xff] %v305_v12  ;;  %308 = vst [vmem:[%s5686_s10 + $0x68] sm:$0xff] %v307_v13  ;;  %v311_v15 = vld [vmem:[%s5681_s23 + $0xe8] sm:$0xff] }
  0x27   : > { %310 = vst [vmem:[%s5686_s10 + $0x70] sm:$0xff] %v309_v14  ;;  %v313_v16 = vld [vmem:[%s5681_s23 + $0x100] sm:$0xff]  ;;  %v315_v17 = vld [vmem:[%s5681_s23 + $0x108] sm:$0xff]  ;;  %312 = vst [vmem:[%s5686_s10 + $0x78] sm:$0xff] %v311_v15 }
  0x28   : > { %314 = vst [vmem:[%s5686_s10 + $0x80] sm:$0xff] %v313_v16  ;;  %316 = vst [vmem:[%s5686_s10 + $0x88] sm:$0xff] %v315_v17  ;;  %v317_v18 = vld [vmem:[%s5681_s23 + $0x120] sm:$0xff]  ;;  %v319_v19 = vld [vmem:[%s5681_s23 + $0x128] sm:$0xff] }
  0x29   : > { %v321_v20 = vld [vmem:[%s5681_s23 + $0x140] sm:$0xff]  ;;  %318 = vst [vmem:[%s5686_s10 + $0x90] sm:$0xff] %v317_v18  ;;  %320 = vst [vmem:[%s5686_s10 + $0x98] sm:$0xff] %v319_v19  ;;  %v323_v21 = vld [vmem:[%s5681_s23 + $0x148] sm:$0xff] }
  0x2a   : > { %322 = vst [vmem:[%s5686_s10 + $0xa0] sm:$0xff] %v321_v20  ;;  %v325_v22 = vld [vmem:[%s5681_s23 + $0x160] sm:$0xff]  ;;  %v327_v23 = vld [vmem:[%s5681_s23 + $0x168] sm:$0xff]  ;;  %324 = vst [vmem:[%s5686_s10 + $0xa8] sm:$0xff] %v323_v21 }
  0x2b   : > { %326 = vst [vmem:[%s5686_s10 + $0xb0] sm:$0xff] %v325_v22  ;;  %328 = vst [vmem:[%s5686_s10 + $0xb8] sm:$0xff] %v327_v23  ;;  %v329_v24 = vld [vmem:[%s5681_s23 + $0x180] sm:$0xff]  ;;  %v331_v25 = vld [vmem:[%s5681_s23 + $0x188] sm:$0xff] }
  0x2c   : > { %v333_v26 = vld [vmem:[%s5681_s23 + $0x1a0] sm:$0xff]  ;;  %330 = vst [vmem:[%s5686_s10 + $0xc0] sm:$0xff] %v329_v24  ;;  %332 = vst [vmem:[%s5686_s10 + $0xc8] sm:$0xff] %v331_v25  ;;  %v335_v27 = vld [vmem:[%s5681_s23 + $0x1a8] sm:$0xff] }
  0x2d   : > { %334 = vst [vmem:[%s5686_s10 + $0xd0] sm:$0xff] %v333_v26  ;;  %v337_v28 = vld [vmem:[%s5681_s23 + $0x1c0] sm:$0xff]  ;;  %v339_v29 = vld [vmem:[%s5681_s23 + $0x1c8] sm:$0xff]  ;;  %336 = vst [vmem:[%s5686_s10 + $0xd8] sm:$0xff] %v335_v27 }
  0x2e   : > { %338 = vst [vmem:[%s5686_s10 + $0xe0] sm:$0xff] %v337_v28  ;;  %340 = vst [vmem:[%s5686_s10 + $0xe8] sm:$0xff] %v339_v29  ;;  %v341_v30 = vld [vmem:[%s5681_s23 + $0x1e0] sm:$0xff]  ;;  %v343_v31 = vld [vmem:[%s5681_s23 + $0x1e8] sm:$0xff] }
  0x2f   : > { %v345_v32 = vld [vmem:[%s5681_s23 + $0x200] sm:$0xff]  ;;  %342 = vst [vmem:[%s5686_s10 + $0xf0] sm:$0xff] %v341_v30  ;;  %344 = vst [vmem:[%s5686_s10 + $0xf8] sm:$0xff] %v343_v31  ;;  %v347_v33 = vld [vmem:[%s5681_s23 + $0x208] sm:$0xff] }
  0x30   : > { %346 = vst [vmem:[%s5686_s10 + $0x100] sm:$0xff] %v345_v32  ;;  %v349_v34 = vld [vmem:[%s5681_s23 + $0x220] sm:$0xff]  ;;  %v351_v35 = vld [vmem:[%s5681_s23 + $0x228] sm:$0xff]  ;;  %348 = vst [vmem:[%s5686_s10 + $0x108] sm:$0xff] %v347_v33 }
  0x31   : > { %350 = vst [vmem:[%s5686_s10 + $0x110] sm:$0xff] %v349_v34  ;;  %352 = vst [vmem:[%s5686_s10 + $0x118] sm:$0xff] %v351_v35  ;;  %v353_v36 = vld [vmem:[%s5681_s23 + $0x240] sm:$0xff]  ;;  %v355_v37 = vld [vmem:[%s5681_s23 + $0x248] sm:$0xff] }
  0x32   : > { %v357_v38 = vld [vmem:[%s5681_s23 + $0x260] sm:$0xff]  ;;  %354 = vst [vmem:[%s5686_s10 + $0x120] sm:$0xff] %v353_v36  ;;  %356 = vst [vmem:[%s5686_s10 + $0x128] sm:$0xff] %v355_v37  ;;  %v359_v39 = vld [vmem:[%s5681_s23 + $0x268] sm:$0xff] }
  0x33   : > { %358 = vst [vmem:[%s5686_s10 + $0x130] sm:$0xff] %v357_v38  ;;  %v361_v40 = vld [vmem:[%s5681_s23 + $0x280] sm:$0xff]  ;;  %v363_v41 = vld [vmem:[%s5681_s23 + $0x288] sm:$0xff]  ;;  %360 = vst [vmem:[%s5686_s10 + $0x138] sm:$0xff] %v359_v39 }
  0x34   : > { %362 = vst [vmem:[%s5686_s10 + $0x140] sm:$0xff] %v361_v40  ;;  %364 = vst [vmem:[%s5686_s10 + $0x148] sm:$0xff] %v363_v41  ;;  %v365_v42 = vld [vmem:[%s5681_s23 + $0x2a0] sm:$0xff]  ;;  %v367_v43 = vld [vmem:[%s5681_s23 + $0x2a8] sm:$0xff] }
  0x35   : > { %v369_v44 = vld [vmem:[%s5681_s23 + $0x2c0] sm:$0xff]  ;;  %366 = vst [vmem:[%s5686_s10 + $0x150] sm:$0xff] %v365_v42  ;;  %368 = vst [vmem:[%s5686_s10 + $0x158] sm:$0xff] %v367_v43  ;;  %v371_v45 = vld [vmem:[%s5681_s23 + $0x2c8] sm:$0xff] }
  0x36   : > { %370 = vst [vmem:[%s5686_s10 + $0x160] sm:$0xff] %v369_v44  ;;  %v373_v46 = vld [vmem:[%s5681_s23 + $0x2e0] sm:$0xff]  ;;  %v375_v47 = vld [vmem:[%s5681_s23 + $0x2e8] sm:$0xff]  ;;  %372 = vst [vmem:[%s5686_s10 + $0x168] sm:$0xff] %v371_v45 }
  0x37   : > { %374 = vst [vmem:[%s5686_s10 + $0x170] sm:$0xff] %v373_v46  ;;  %376 = vst [vmem:[%s5686_s10 + $0x178] sm:$0xff] %v375_v47  ;;  %v377_v48 = vld [vmem:[%s5681_s23 + $0x300] sm:$0xff]  ;;  %v379_v49 = vld [vmem:[%s5681_s23 + $0x308] sm:$0xff] }
  0x38   : > { %v381_v50 = vld [vmem:[%s5681_s23 + $0x320] sm:$0xff]  ;;  %378 = vst [vmem:[%s5686_s10 + $0x180] sm:$0xff] %v377_v48  ;;  %380 = vst [vmem:[%s5686_s10 + $0x188] sm:$0xff] %v379_v49  ;;  %v383_v51 = vld [vmem:[%s5681_s23 + $0x328] sm:$0xff] }
  0x39   : > { %382 = vst [vmem:[%s5686_s10 + $0x190] sm:$0xff] %v381_v50  ;;  %v385_v52 = vld [vmem:[%s5681_s23 + $0x340] sm:$0xff]  ;;  %v387_v53 = vld [vmem:[%s5681_s23 + $0x348] sm:$0xff]  ;;  %384 = vst [vmem:[%s5686_s10 + $0x198] sm:$0xff] %v383_v51 }
  0x3a   : > { %386 = vst [vmem:[%s5686_s10 + $0x1a0] sm:$0xff] %v385_v52  ;;  %388 = vst [vmem:[%s5686_s10 + $0x1a8] sm:$0xff] %v387_v53  ;;  %v389_v54 = vld [vmem:[%s5681_s23 + $0x360] sm:$0xff]  ;;  %v391_v55 = vld [vmem:[%s5681_s23 + $0x368] sm:$0xff] }
  0x3b   : > { %v393_v56 = vld [vmem:[%s5681_s23 + $0x380] sm:$0xff]  ;;  %390 = vst [vmem:[%s5686_s10 + $0x1b0] sm:$0xff] %v389_v54  ;;  %392 = vst [vmem:[%s5686_s10 + $0x1b8] sm:$0xff] %v391_v55  ;;  %v395_v57 = vld [vmem:[%s5681_s23 + $0x388] sm:$0xff] }
  0x3c   : > { %394 = vst [vmem:[%s5686_s10 + $0x1c0] sm:$0xff] %v393_v56  ;;  %v397_v58 = vld [vmem:[%s5681_s23 + $0x3a0] sm:$0xff]  ;;  %v399_v59 = vld [vmem:[%s5681_s23 + $0x3a8] sm:$0xff]  ;;  %396 = vst [vmem:[%s5686_s10 + $0x1c8] sm:$0xff] %v395_v57 }
  0x3d   : > { %398 = vst [vmem:[%s5686_s10 + $0x1d0] sm:$0xff] %v397_v58  ;;  %400 = vst [vmem:[%s5686_s10 + $0x1d8] sm:$0xff] %v399_v59  ;;  %v401_v60 = vld [vmem:[%s5681_s23 + $0x3c0] sm:$0xff]  ;;  %v403_v61 = vld [vmem:[%s5681_s23 + $0x3c8] sm:$0xff] }
  0x3e   : > { %v405_v62 = vld [vmem:[%s5681_s23 + $0x3e0] sm:$0xff]  ;;  %402 = vst [vmem:[%s5686_s10 + $0x1e0] sm:$0xff] %v401_v60  ;;  %404 = vst [vmem:[%s5686_s10 + $0x1e8] sm:$0xff] %v403_v61  ;;  %v407_v63 = vld [vmem:[%s5681_s23 + $0x3e8] sm:$0xff] }
  0x3f   : > { %406 = vst [vmem:[%s5686_s10 + $0x1f0] sm:$0xff] %v405_v62  ;;  %v409_v0 = vld [vmem:[%s5681_s23 + $0x400] sm:$0xff]  ;;  %v411_v1 = vld [vmem:[%s5681_s23 + $0x408] sm:$0xff]  ;;  %408 = vst [vmem:[%s5686_s10 + $0x1f8] sm:$0xff] %v407_v63 }
  0x40   : > { %410 = vst [vmem:[%s5686_s10 + $0x200] sm:$0xff] %v409_v0  ;;  %412 = vst [vmem:[%s5686_s10 + $0x208] sm:$0xff] %v411_v1  ;;  %v413_v2 = vld [vmem:[%s5681_s23 + $0x420] sm:$0xff]  ;;  %v415_v3 = vld [vmem:[%s5681_s23 + $0x428] sm:$0xff] }
  0x41   : > { %v417_v4 = vld [vmem:[%s5681_s23 + $0x440] sm:$0xff]  ;;  %414 = vst [vmem:[%s5686_s10 + $0x210] sm:$0xff] %v413_v2  ;;  %416 = vst [vmem:[%s5686_s10 + $0x218] sm:$0xff] %v415_v3  ;;  %v419_v5 = vld [vmem:[%s5681_s23 + $0x448] sm:$0xff] }
  0x42   : > { %418 = vst [vmem:[%s5686_s10 + $0x220] sm:$0xff] %v417_v4  ;;  %v421_v6 = vld [vmem:[%s5681_s23 + $0x460] sm:$0xff]  ;;  %v423_v7 = vld [vmem:[%s5681_s23 + $0x468] sm:$0xff]  ;;  %420 = vst [vmem:[%s5686_s10 + $0x228] sm:$0xff] %v419_v5 }
  0x43   : > { %422 = vst [vmem:[%s5686_s10 + $0x230] sm:$0xff] %v421_v6  ;;  %424 = vst [vmem:[%s5686_s10 + $0x238] sm:$0xff] %v423_v7  ;;  %v425_v8 = vld [vmem:[%s5681_s23 + $0x480] sm:$0xff]  ;;  %v427_v9 = vld [vmem:[%s5681_s23 + $0x488] sm:$0xff] }
  0x44   : > { %v429_v10 = vld [vmem:[%s5681_s23 + $0x4a0] sm:$0xff]  ;;  %426 = vst [vmem:[%s5686_s10 + $0x240] sm:$0xff] %v425_v8  ;;  %428 = vst [vmem:[%s5686_s10 + $0x248] sm:$0xff] %v427_v9  ;;  %v431_v11 = vld [vmem:[%s5681_s23 + $0x4a8] sm:$0xff] }
  0x45   : > { %430 = vst [vmem:[%s5686_s10 + $0x250] sm:$0xff] %v429_v10  ;;  %v433_v12 = vld [vmem:[%s5681_s23 + $0x4c0] sm:$0xff]  ;;  %v435_v13 = vld [vmem:[%s5681_s23 + $0x4c8] sm:$0xff]  ;;  %432 = vst [vmem:[%s5686_s10 + $0x258] sm:$0xff] %v431_v11 }
  0x46   : > { %434 = vst [vmem:[%s5686_s10 + $0x260] sm:$0xff] %v433_v12  ;;  %436 = vst [vmem:[%s5686_s10 + $0x268] sm:$0xff] %v435_v13  ;;  %v437_v14 = vld [vmem:[%s5681_s23 + $0x4e0] sm:$0xff]  ;;  %v439_v15 = vld [vmem:[%s5681_s23 + $0x4e8] sm:$0xff] }
  0x47   : > { %v441_v16 = vld [vmem:[%s5681_s23 + $0x500] sm:$0xff]  ;;  %438 = vst [vmem:[%s5686_s10 + $0x270] sm:$0xff] %v437_v14  ;;  %440 = vst [vmem:[%s5686_s10 + $0x278] sm:$0xff] %v439_v15  ;;  %v443_v17 = vld [vmem:[%s5681_s23 + $0x508] sm:$0xff] }
  0x48   : > { %442 = vst [vmem:[%s5686_s10 + $0x280] sm:$0xff] %v441_v16  ;;  %v445_v18 = vld [vmem:[%s5681_s23 + $0x520] sm:$0xff]  ;;  %v447_v19 = vld [vmem:[%s5681_s23 + $0x528] sm:$0xff]  ;;  %444 = vst [vmem:[%s5686_s10 + $0x288] sm:$0xff] %v443_v17 }
  0x49   : > { %446 = vst [vmem:[%s5686_s10 + $0x290] sm:$0xff] %v445_v18  ;;  %448 = vst [vmem:[%s5686_s10 + $0x298] sm:$0xff] %v447_v19  ;;  %v449_v20 = vld [vmem:[%s5681_s23 + $0x540] sm:$0xff]  ;;  %v451_v21 = vld [vmem:[%s5681_s23 + $0x548] sm:$0xff] }
  0x4a   : > { %v453_v22 = vld [vmem:[%s5681_s23 + $0x560] sm:$0xff]  ;;  %450 = vst [vmem:[%s5686_s10 + $0x2a0] sm:$0xff] %v449_v20  ;;  %452 = vst [vmem:[%s5686_s10 + $0x2a8] sm:$0xff] %v451_v21  ;;  %v455_v23 = vld [vmem:[%s5681_s23 + $0x568] sm:$0xff] }
  0x4b   : > { %454 = vst [vmem:[%s5686_s10 + $0x2b0] sm:$0xff] %v453_v22  ;;  %v457_v24 = vld [vmem:[%s5681_s23 + $0x580] sm:$0xff]  ;;  %v459_v25 = vld [vmem:[%s5681_s23 + $0x588] sm:$0xff]  ;;  %456 = vst [vmem:[%s5686_s10 + $0x2b8] sm:$0xff] %v455_v23 }
  0x4c   : > { %458 = vst [vmem:[%s5686_s10 + $0x2c0] sm:$0xff] %v457_v24  ;;  %460 = vst [vmem:[%s5686_s10 + $0x2c8] sm:$0xff] %v459_v25  ;;  %v461_v26 = vld [vmem:[%s5681_s23 + $0x5a0] sm:$0xff]  ;;  %v463_v27 = vld [vmem:[%s5681_s23 + $0x5a8] sm:$0xff] }
  0x4d   : > { %v465_v28 = vld [vmem:[%s5681_s23 + $0x5c0] sm:$0xff]  ;;  %462 = vst [vmem:[%s5686_s10 + $0x2d0] sm:$0xff] %v461_v26  ;;  %464 = vst [vmem:[%s5686_s10 + $0x2d8] sm:$0xff] %v463_v27  ;;  %v467_v29 = vld [vmem:[%s5681_s23 + $0x5c8] sm:$0xff] }
  0x4e   : > { %466 = vst [vmem:[%s5686_s10 + $0x2e0] sm:$0xff] %v465_v28  ;;  %v469_v30 = vld [vmem:[%s5681_s23 + $0x5e0] sm:$0xff]  ;;  %v471_v31 = vld [vmem:[%s5681_s23 + $0x5e8] sm:$0xff]  ;;  %468 = vst [vmem:[%s5686_s10 + $0x2e8] sm:$0xff] %v467_v29 }
  0x4f   : > { %470 = vst [vmem:[%s5686_s10 + $0x2f0] sm:$0xff] %v469_v30  ;;  %472 = vst [vmem:[%s5686_s10 + $0x2f8] sm:$0xff] %v471_v31  ;;  %v473_v32 = vld [vmem:[%s5681_s23 + $0x600] sm:$0xff]  ;;  %v475_v33 = vld [vmem:[%s5681_s23 + $0x608] sm:$0xff] }
  0x50   : > { %v477_v34 = vld [vmem:[%s5681_s23 + $0x620] sm:$0xff]  ;;  %474 = vst [vmem:[%s5686_s10 + $0x300] sm:$0xff] %v473_v32  ;;  %476 = vst [vmem:[%s5686_s10 + $0x308] sm:$0xff] %v475_v33  ;;  %v479_v35 = vld [vmem:[%s5681_s23 + $0x628] sm:$0xff] }
  0x51   : > { %478 = vst [vmem:[%s5686_s10 + $0x310] sm:$0xff] %v477_v34  ;;  %v481_v36 = vld [vmem:[%s5681_s23 + $0x640] sm:$0xff]  ;;  %v483_v37 = vld [vmem:[%s5681_s23 + $0x648] sm:$0xff]  ;;  %480 = vst [vmem:[%s5686_s10 + $0x318] sm:$0xff] %v479_v35 }
  0x52   : > { %482 = vst [vmem:[%s5686_s10 + $0x320] sm:$0xff] %v481_v36  ;;  %484 = vst [vmem:[%s5686_s10 + $0x328] sm:$0xff] %v483_v37  ;;  %v485_v38 = vld [vmem:[%s5681_s23 + $0x660] sm:$0xff]  ;;  %v487_v39 = vld [vmem:[%s5681_s23 + $0x668] sm:$0xff] }
  0x53   : > { %v489_v40 = vld [vmem:[%s5681_s23 + $0x680] sm:$0xff]  ;;  %486 = vst [vmem:[%s5686_s10 + $0x330] sm:$0xff] %v485_v38  ;;  %488 = vst [vmem:[%s5686_s10 + $0x338] sm:$0xff] %v487_v39  ;;  %v491_v41 = vld [vmem:[%s5681_s23 + $0x688] sm:$0xff] }
  0x54   : > { %490 = vst [vmem:[%s5686_s10 + $0x340] sm:$0xff] %v489_v40  ;;  %v493_v42 = vld [vmem:[%s5681_s23 + $0x6a0] sm:$0xff]  ;;  %v495_v43 = vld [vmem:[%s5681_s23 + $0x6a8] sm:$0xff]  ;;  %492 = vst [vmem:[%s5686_s10 + $0x348] sm:$0xff] %v491_v41 }
  0x55   : > { %494 = vst [vmem:[%s5686_s10 + $0x350] sm:$0xff] %v493_v42  ;;  %496 = vst [vmem:[%s5686_s10 + $0x358] sm:$0xff] %v495_v43  ;;  %v497_v44 = vld [vmem:[%s5681_s23 + $0x6c0] sm:$0xff]  ;;  %v499_v45 = vld [vmem:[%s5681_s23 + $0x6c8] sm:$0xff] }
  0x56   : > { %v501_v46 = vld [vmem:[%s5681_s23 + $0x6e0] sm:$0xff]  ;;  %498 = vst [vmem:[%s5686_s10 + $0x360] sm:$0xff] %v497_v44  ;;  %500 = vst [vmem:[%s5686_s10 + $0x368] sm:$0xff] %v499_v45  ;;  %v503_v47 = vld [vmem:[%s5681_s23 + $0x6e8] sm:$0xff] }
  0x57   : > { %502 = vst [vmem:[%s5686_s10 + $0x370] sm:$0xff] %v501_v46  ;;  %v505_v48 = vld [vmem:[%s5681_s23 + $0x700] sm:$0xff]  ;;  %v507_v49 = vld [vmem:[%s5681_s23 + $0x708] sm:$0xff]  ;;  %504 = vst [vmem:[%s5686_s10 + $0x378] sm:$0xff] %v503_v47 }
  0x58   : > { %506 = vst [vmem:[%s5686_s10 + $0x380] sm:$0xff] %v505_v48  ;;  %508 = vst [vmem:[%s5686_s10 + $0x388] sm:$0xff] %v507_v49  ;;  %v509_v50 = vld [vmem:[%s5681_s23 + $0x720] sm:$0xff]  ;;  %v511_v51 = vld [vmem:[%s5681_s23 + $0x728] sm:$0xff] }
  0x59   : > { %v513_v52 = vld [vmem:[%s5681_s23 + $0x740] sm:$0xff]  ;;  %510 = vst [vmem:[%s5686_s10 + $0x390] sm:$0xff] %v509_v50  ;;  %512 = vst [vmem:[%s5686_s10 + $0x398] sm:$0xff] %v511_v51  ;;  %v515_v53 = vld [vmem:[%s5681_s23 + $0x748] sm:$0xff] }
  0x5a   : > { %514 = vst [vmem:[%s5686_s10 + $0x3a0] sm:$0xff] %v513_v52  ;;  %v517_v54 = vld [vmem:[%s5681_s23 + $0x760] sm:$0xff]  ;;  %v519_v55 = vld [vmem:[%s5681_s23 + $0x768] sm:$0xff]  ;;  %516 = vst [vmem:[%s5686_s10 + $0x3a8] sm:$0xff] %v515_v53 }
  0x5b   : > { %518 = vst [vmem:[%s5686_s10 + $0x3b0] sm:$0xff] %v517_v54  ;;  %520 = vst [vmem:[%s5686_s10 + $0x3b8] sm:$0xff] %v519_v55  ;;  %v521_v56 = vld [vmem:[%s5681_s23 + $0x780] sm:$0xff]  ;;  %v523_v57 = vld [vmem:[%s5681_s23 + $0x788] sm:$0xff] }
  0x5c   : > { %v525_v58 = vld [vmem:[%s5681_s23 + $0x7a0] sm:$0xff]  ;;  %522 = vst [vmem:[%s5686_s10 + $0x3c0] sm:$0xff] %v521_v56  ;;  %524 = vst [vmem:[%s5686_s10 + $0x3c8] sm:$0xff] %v523_v57  ;;  %v527_v59 = vld [vmem:[%s5681_s23 + $0x7a8] sm:$0xff] }
  0x5d   : > { %526 = vst [vmem:[%s5686_s10 + $0x3d0] sm:$0xff] %v525_v58  ;;  %v529_v60 = vld [vmem:[%s5681_s23 + $0x7c0] sm:$0xff]  ;;  %v531_v61 = vld [vmem:[%s5681_s23 + $0x7c8] sm:$0xff]  ;;  %528 = vst [vmem:[%s5686_s10 + $0x3d8] sm:$0xff] %v527_v59 }
  0x5e   : > { %530 = vst [vmem:[%s5686_s10 + $0x3e0] sm:$0xff] %v529_v60  ;;  %532 = vst [vmem:[%s5686_s10 + $0x3e8] sm:$0xff] %v531_v61  ;;  %v533_v62 = vld [vmem:[%s5681_s23 + $0x7e0] sm:$0xff]  ;;  %v535_v63 = vld [vmem:[%s5681_s23 + $0x7e8] sm:$0xff] }
  0x5f   : > { %v537_v0 = vld [vmem:[%s5681_s23 + $0x800] sm:$0xff]  ;;  %534 = vst [vmem:[%s5686_s10 + $0x3f0] sm:$0xff] %v533_v62  ;;  %536 = vst [vmem:[%s5686_s10 + $0x3f8] sm:$0xff] %v535_v63  ;;  %v539_v1 = vld [vmem:[%s5681_s23 + $0x808] sm:$0xff] }
  0x60   : > { %538 = vst [vmem:[%s5686_s10 + $0x400] sm:$0xff] %v537_v0  ;;  %v541_v2 = vld [vmem:[%s5681_s23 + $0x820] sm:$0xff]  ;;  %v543_v3 = vld [vmem:[%s5681_s23 + $0x828] sm:$0xff]  ;;  %540 = vst [vmem:[%s5686_s10 + $0x408] sm:$0xff] %v539_v1 }
  0x61   : > { %542 = vst [vmem:[%s5686_s10 + $0x410] sm:$0xff] %v541_v2  ;;  %544 = vst [vmem:[%s5686_s10 + $0x418] sm:$0xff] %v543_v3  ;;  %v545_v4 = vld [vmem:[%s5681_s23 + $0x840] sm:$0xff]  ;;  %v547_v5 = vld [vmem:[%s5681_s23 + $0x848] sm:$0xff] }
  0x62   : > { %v549_v6 = vld [vmem:[%s5681_s23 + $0x860] sm:$0xff]  ;;  %546 = vst [vmem:[%s5686_s10 + $0x420] sm:$0xff] %v545_v4  ;;  %548 = vst [vmem:[%s5686_s10 + $0x428] sm:$0xff] %v547_v5  ;;  %v551_v7 = vld [vmem:[%s5681_s23 + $0x868] sm:$0xff] }
  0x63   : > { %550 = vst [vmem:[%s5686_s10 + $0x430] sm:$0xff] %v549_v6  ;;  %v553_v8 = vld [vmem:[%s5681_s23 + $0x880] sm:$0xff]  ;;  %v555_v9 = vld [vmem:[%s5681_s23 + $0x888] sm:$0xff]  ;;  %552 = vst [vmem:[%s5686_s10 + $0x438] sm:$0xff] %v551_v7 }
  0x64   : > { %554 = vst [vmem:[%s5686_s10 + $0x440] sm:$0xff] %v553_v8  ;;  %556 = vst [vmem:[%s5686_s10 + $0x448] sm:$0xff] %v555_v9  ;;  %v557_v10 = vld [vmem:[%s5681_s23 + $0x8a0] sm:$0xff]  ;;  %v559_v11 = vld [vmem:[%s5681_s23 + $0x8a8] sm:$0xff] }
  0x65   : > { %v561_v12 = vld [vmem:[%s5681_s23 + $0x8c0] sm:$0xff]  ;;  %558 = vst [vmem:[%s5686_s10 + $0x450] sm:$0xff] %v557_v10  ;;  %560 = vst [vmem:[%s5686_s10 + $0x458] sm:$0xff] %v559_v11  ;;  %v563_v13 = vld [vmem:[%s5681_s23 + $0x8c8] sm:$0xff] }
  0x66   : > { %562 = vst [vmem:[%s5686_s10 + $0x460] sm:$0xff] %v561_v12  ;;  %v565_v14 = vld [vmem:[%s5681_s23 + $0x8e0] sm:$0xff]  ;;  %v567_v15 = vld [vmem:[%s5681_s23 + $0x8e8] sm:$0xff]  ;;  %564 = vst [vmem:[%s5686_s10 + $0x468] sm:$0xff] %v563_v13 }
  0x67   : > { %566 = vst [vmem:[%s5686_s10 + $0x470] sm:$0xff] %v565_v14  ;;  %568 = vst [vmem:[%s5686_s10 + $0x478] sm:$0xff] %v567_v15  ;;  %v569_v16 = vld [vmem:[%s5681_s23 + $0x900] sm:$0xff]  ;;  %v571_v17 = vld [vmem:[%s5681_s23 + $0x908] sm:$0xff] }
  0x68   : > { %v573_v18 = vld [vmem:[%s5681_s23 + $0x920] sm:$0xff]  ;;  %570 = vst [vmem:[%s5686_s10 + $0x480] sm:$0xff] %v569_v16  ;;  %572 = vst [vmem:[%s5686_s10 + $0x488] sm:$0xff] %v571_v17  ;;  %v575_v19 = vld [vmem:[%s5681_s23 + $0x928] sm:$0xff] }
  0x69   : > { %574 = vst [vmem:[%s5686_s10 + $0x490] sm:$0xff] %v573_v18  ;;  %v577_v20 = vld [vmem:[%s5681_s23 + $0x940] sm:$0xff]  ;;  %v579_v21 = vld [vmem:[%s5681_s23 + $0x948] sm:$0xff]  ;;  %576 = vst [vmem:[%s5686_s10 + $0x498] sm:$0xff] %v575_v19 }
  0x6a   : > { %578 = vst [vmem:[%s5686_s10 + $0x4a0] sm:$0xff] %v577_v20  ;;  %580 = vst [vmem:[%s5686_s10 + $0x4a8] sm:$0xff] %v579_v21  ;;  %v581_v22 = vld [vmem:[%s5681_s23 + $0x960] sm:$0xff]  ;;  %v583_v23 = vld [vmem:[%s5681_s23 + $0x968] sm:$0xff] }
  0x6b   : > { %v585_v24 = vld [vmem:[%s5681_s23 + $0x980] sm:$0xff]  ;;  %582 = vst [vmem:[%s5686_s10 + $0x4b0] sm:$0xff] %v581_v22  ;;  %584 = vst [vmem:[%s5686_s10 + $0x4b8] sm:$0xff] %v583_v23  ;;  %v587_v25 = vld [vmem:[%s5681_s23 + $0x988] sm:$0xff] }
  0x6c   : > { %586 = vst [vmem:[%s5686_s10 + $0x4c0] sm:$0xff] %v585_v24  ;;  %v589_v26 = vld [vmem:[%s5681_s23 + $0x9a0] sm:$0xff]  ;;  %v591_v27 = vld [vmem:[%s5681_s23 + $0x9a8] sm:$0xff]  ;;  %588 = vst [vmem:[%s5686_s10 + $0x4c8] sm:$0xff] %v587_v25 }
  0x6d   : > { %590 = vst [vmem:[%s5686_s10 + $0x4d0] sm:$0xff] %v589_v26  ;;  %592 = vst [vmem:[%s5686_s10 + $0x4d8] sm:$0xff] %v591_v27  ;;  %v593_v28 = vld [vmem:[%s5681_s23 + $0x9c0] sm:$0xff]  ;;  %v595_v29 = vld [vmem:[%s5681_s23 + $0x9c8] sm:$0xff] }
  0x6e   : > { %v597_v30 = vld [vmem:[%s5681_s23 + $0x9e0] sm:$0xff]  ;;  %594 = vst [vmem:[%s5686_s10 + $0x4e0] sm:$0xff] %v593_v28  ;;  %596 = vst [vmem:[%s5686_s10 + $0x4e8] sm:$0xff] %v595_v29  ;;  %v599_v31 = vld [vmem:[%s5681_s23 + $0x9e8] sm:$0xff] }
  0x6f   : > { %598 = vst [vmem:[%s5686_s10 + $0x4f0] sm:$0xff] %v597_v30  ;;  %v601_v32 = vld [vmem:[%s5681_s23 + $0xa00] sm:$0xff]  ;;  %v603_v33 = vld [vmem:[%s5681_s23 + $0xa08] sm:$0xff]  ;;  %600 = vst [vmem:[%s5686_s10 + $0x4f8] sm:$0xff] %v599_v31 }
  0x70   : > { %602 = vst [vmem:[%s5686_s10 + $0x500] sm:$0xff] %v601_v32  ;;  %604 = vst [vmem:[%s5686_s10 + $0x508] sm:$0xff] %v603_v33  ;;  %v605_v34 = vld [vmem:[%s5681_s23 + $0xa20] sm:$0xff]  ;;  %v607_v35 = vld [vmem:[%s5681_s23 + $0xa28] sm:$0xff] }
  0x71   : > { %v609_v36 = vld [vmem:[%s5681_s23 + $0xa40] sm:$0xff]  ;;  %606 = vst [vmem:[%s5686_s10 + $0x510] sm:$0xff] %v605_v34  ;;  %608 = vst [vmem:[%s5686_s10 + $0x518] sm:$0xff] %v607_v35  ;;  %v611_v37 = vld [vmem:[%s5681_s23 + $0xa48] sm:$0xff] }
  0x72   : > { %610 = vst [vmem:[%s5686_s10 + $0x520] sm:$0xff] %v609_v36  ;;  %v613_v38 = vld [vmem:[%s5681_s23 + $0xa60] sm:$0xff]  ;;  %v615_v39 = vld [vmem:[%s5681_s23 + $0xa68] sm:$0xff]  ;;  %612 = vst [vmem:[%s5686_s10 + $0x528] sm:$0xff] %v611_v37 }
  0x73   : > { %614 = vst [vmem:[%s5686_s10 + $0x530] sm:$0xff] %v613_v38  ;;  %616 = vst [vmem:[%s5686_s10 + $0x538] sm:$0xff] %v615_v39  ;;  %v617_v40 = vld [vmem:[%s5681_s23 + $0xa80] sm:$0xff]  ;;  %v619_v41 = vld [vmem:[%s5681_s23 + $0xa88] sm:$0xff] }
  0x74   : > { %v621_v42 = vld [vmem:[%s5681_s23 + $0xaa0] sm:$0xff]  ;;  %618 = vst [vmem:[%s5686_s10 + $0x540] sm:$0xff] %v617_v40  ;;  %620 = vst [vmem:[%s5686_s10 + $0x548] sm:$0xff] %v619_v41  ;;  %v623_v43 = vld [vmem:[%s5681_s23 + $0xaa8] sm:$0xff] }
  0x75   : > { %622 = vst [vmem:[%s5686_s10 + $0x550] sm:$0xff] %v621_v42  ;;  %v625_v44 = vld [vmem:[%s5681_s23 + $0xac0] sm:$0xff]  ;;  %v627_v45 = vld [vmem:[%s5681_s23 + $0xac8] sm:$0xff]  ;;  %624 = vst [vmem:[%s5686_s10 + $0x558] sm:$0xff] %v623_v43 }
  0x76   : > { %626 = vst [vmem:[%s5686_s10 + $0x560] sm:$0xff] %v625_v44  ;;  %628 = vst [vmem:[%s5686_s10 + $0x568] sm:$0xff] %v627_v45  ;;  %v629_v46 = vld [vmem:[%s5681_s23 + $0xae0] sm:$0xff]  ;;  %v631_v47 = vld [vmem:[%s5681_s23 + $0xae8] sm:$0xff] }
  0x77   : > { %v633_v48 = vld [vmem:[%s5681_s23 + $0xb00] sm:$0xff]  ;;  %630 = vst [vmem:[%s5686_s10 + $0x570] sm:$0xff] %v629_v46  ;;  %632 = vst [vmem:[%s5686_s10 + $0x578] sm:$0xff] %v631_v47  ;;  %v635_v49 = vld [vmem:[%s5681_s23 + $0xb08] sm:$0xff] }
  0x78   : > { %634 = vst [vmem:[%s5686_s10 + $0x580] sm:$0xff] %v633_v48  ;;  %v637_v50 = vld [vmem:[%s5681_s23 + $0xb20] sm:$0xff]  ;;  %v639_v51 = vld [vmem:[%s5681_s23 + $0xb28] sm:$0xff]  ;;  %636 = vst [vmem:[%s5686_s10 + $0x588] sm:$0xff] %v635_v49 }
  0x79   : > { %638 = vst [vmem:[%s5686_s10 + $0x590] sm:$0xff] %v637_v50  ;;  %640 = vst [vmem:[%s5686_s10 + $0x598] sm:$0xff] %v639_v51  ;;  %v641_v52 = vld [vmem:[%s5681_s23 + $0xb40] sm:$0xff]  ;;  %v643_v53 = vld [vmem:[%s5681_s23 + $0xb48] sm:$0xff] }
  0x7a   : > { %v645_v54 = vld [vmem:[%s5681_s23 + $0xb60] sm:$0xff]  ;;  %642 = vst [vmem:[%s5686_s10 + $0x5a0] sm:$0xff] %v641_v52  ;;  %644 = vst [vmem:[%s5686_s10 + $0x5a8] sm:$0xff] %v643_v53  ;;  %v647_v55 = vld [vmem:[%s5681_s23 + $0xb68] sm:$0xff] }
  0x7b   : > { %646 = vst [vmem:[%s5686_s10 + $0x5b0] sm:$0xff] %v645_v54  ;;  %v649_v56 = vld [vmem:[%s5681_s23 + $0xb80] sm:$0xff]  ;;  %v651_v57 = vld [vmem:[%s5681_s23 + $0xb88] sm:$0xff]  ;;  %648 = vst [vmem:[%s5686_s10 + $0x5b8] sm:$0xff] %v647_v55 }
  0x7c   : > { %650 = vst [vmem:[%s5686_s10 + $0x5c0] sm:$0xff] %v649_v56  ;;  %652 = vst [vmem:[%s5686_s10 + $0x5c8] sm:$0xff] %v651_v57  ;;  %v653_v58 = vld [vmem:[%s5681_s23 + $0xba0] sm:$0xff]  ;;  %v655_v59 = vld [vmem:[%s5681_s23 + $0xba8] sm:$0xff] }
  0x7d   : > { %v657_v60 = vld [vmem:[%s5681_s23 + $0xbc0] sm:$0xff]  ;;  %654 = vst [vmem:[%s5686_s10 + $0x5d0] sm:$0xff] %v653_v58  ;;  %656 = vst [vmem:[%s5686_s10 + $0x5d8] sm:$0xff] %v655_v59  ;;  %v659_v61 = vld [vmem:[%s5681_s23 + $0xbc8] sm:$0xff] }
  0x7e   : > { %658 = vst [vmem:[%s5686_s10 + $0x5e0] sm:$0xff] %v657_v60  ;;  %v661_v62 = vld [vmem:[%s5681_s23 + $0xbe0] sm:$0xff]  ;;  %v663_v63 = vld [vmem:[%s5681_s23 + $0xbe8] sm:$0xff]  ;;  %660 = vst [vmem:[%s5686_s10 + $0x5e8] sm:$0xff] %v659_v61 }
  0x7f   : > { %662 = vst [vmem:[%s5686_s10 + $0x5f0] sm:$0xff] %v661_v62  ;;  %664 = vst [vmem:[%s5686_s10 + $0x5f8] sm:$0xff] %v663_v63  ;;  %v665_v0 = vld [vmem:[%s5681_s23 + $0xc00] sm:$0xff]  ;;  %v667_v1 = vld [vmem:[%s5681_s23 + $0xc08] sm:$0xff] }
  0x80   : > { %v669_v2 = vld [vmem:[%s5681_s23 + $0xc20] sm:$0xff]  ;;  %666 = vst [vmem:[%s5686_s10 + $0x600] sm:$0xff] %v665_v0  ;;  %668 = vst [vmem:[%s5686_s10 + $0x608] sm:$0xff] %v667_v1  ;;  %v671_v3 = vld [vmem:[%s5681_s23 + $0xc28] sm:$0xff] }
  0x81   : > { %670 = vst [vmem:[%s5686_s10 + $0x610] sm:$0xff] %v669_v2  ;;  %v673_v4 = vld [vmem:[%s5681_s23 + $0xc40] sm:$0xff]  ;;  %v675_v5 = vld [vmem:[%s5681_s23 + $0xc48] sm:$0xff]  ;;  %672 = vst [vmem:[%s5686_s10 + $0x618] sm:$0xff] %v671_v3 }
  0x82   : > { %674 = vst [vmem:[%s5686_s10 + $0x620] sm:$0xff] %v673_v4  ;;  %676 = vst [vmem:[%s5686_s10 + $0x628] sm:$0xff] %v675_v5  ;;  %v677_v6 = vld [vmem:[%s5681_s23 + $0xc60] sm:$0xff]  ;;  %v679_v7 = vld [vmem:[%s5681_s23 + $0xc68] sm:$0xff] }
  0x83   : > { %v681_v8 = vld [vmem:[%s5681_s23 + $0xc80] sm:$0xff]  ;;  %678 = vst [vmem:[%s5686_s10 + $0x630] sm:$0xff] %v677_v6  ;;  %680 = vst [vmem:[%s5686_s10 + $0x638] sm:$0xff] %v679_v7  ;;  %v683_v9 = vld [vmem:[%s5681_s23 + $0xc88] sm:$0xff] }
  0x84   : > { %682 = vst [vmem:[%s5686_s10 + $0x640] sm:$0xff] %v681_v8  ;;  %v685_v10 = vld [vmem:[%s5681_s23 + $0xca0] sm:$0xff]  ;;  %v687_v11 = vld [vmem:[%s5681_s23 + $0xca8] sm:$0xff]  ;;  %684 = vst [vmem:[%s5686_s10 + $0x648] sm:$0xff] %v683_v9 }
  0x85   : > { %686 = vst [vmem:[%s5686_s10 + $0x650] sm:$0xff] %v685_v10  ;;  %688 = vst [vmem:[%s5686_s10 + $0x658] sm:$0xff] %v687_v11  ;;  %v689_v12 = vld [vmem:[%s5681_s23 + $0xcc0] sm:$0xff]  ;;  %v691_v13 = vld [vmem:[%s5681_s23 + $0xcc8] sm:$0xff] }
  0x86   : > { %v693_v14 = vld [vmem:[%s5681_s23 + $0xce0] sm:$0xff]  ;;  %690 = vst [vmem:[%s5686_s10 + $0x660] sm:$0xff] %v689_v12  ;;  %692 = vst [vmem:[%s5686_s10 + $0x668] sm:$0xff] %v691_v13  ;;  %v695_v15 = vld [vmem:[%s5681_s23 + $0xce8] sm:$0xff] }
  0x87   : > { %694 = vst [vmem:[%s5686_s10 + $0x670] sm:$0xff] %v693_v14  ;;  %v697_v16 = vld [vmem:[%s5681_s23 + $0xd00] sm:$0xff]  ;;  %v699_v17 = vld [vmem:[%s5681_s23 + $0xd08] sm:$0xff]  ;;  %696 = vst [vmem:[%s5686_s10 + $0x678] sm:$0xff] %v695_v15 }
  0x88   : > { %698 = vst [vmem:[%s5686_s10 + $0x680] sm:$0xff] %v697_v16  ;;  %700 = vst [vmem:[%s5686_s10 + $0x688] sm:$0xff] %v699_v17  ;;  %v701_v18 = vld [vmem:[%s5681_s23 + $0xd20] sm:$0xff]  ;;  %v703_v19 = vld [vmem:[%s5681_s23 + $0xd28] sm:$0xff] }
  0x89   : > { %v705_v20 = vld [vmem:[%s5681_s23 + $0xd40] sm:$0xff]  ;;  %702 = vst [vmem:[%s5686_s10 + $0x690] sm:$0xff] %v701_v18  ;;  %704 = vst [vmem:[%s5686_s10 + $0x698] sm:$0xff] %v703_v19  ;;  %v707_v21 = vld [vmem:[%s5681_s23 + $0xd48] sm:$0xff] }
  0x8a   : > { %706 = vst [vmem:[%s5686_s10 + $0x6a0] sm:$0xff] %v705_v20  ;;  %v709_v22 = vld [vmem:[%s5681_s23 + $0xd60] sm:$0xff]  ;;  %v711_v23 = vld [vmem:[%s5681_s23 + $0xd68] sm:$0xff]  ;;  %708 = vst [vmem:[%s5686_s10 + $0x6a8] sm:$0xff] %v707_v21 }
  0x8b   : > { %710 = vst [vmem:[%s5686_s10 + $0x6b0] sm:$0xff] %v709_v22  ;;  %712 = vst [vmem:[%s5686_s10 + $0x6b8] sm:$0xff] %v711_v23  ;;  %v713_v24 = vld [vmem:[%s5681_s23 + $0xd80] sm:$0xff]  ;;  %v715_v25 = vld [vmem:[%s5681_s23 + $0xd88] sm:$0xff] }
  0x8c   : > { %v717_v26 = vld [vmem:[%s5681_s23 + $0xda0] sm:$0xff]  ;;  %714 = vst [vmem:[%s5686_s10 + $0x6c0] sm:$0xff] %v713_v24  ;;  %716 = vst [vmem:[%s5686_s10 + $0x6c8] sm:$0xff] %v715_v25  ;;  %v719_v27 = vld [vmem:[%s5681_s23 + $0xda8] sm:$0xff] }
  0x8d   : > { %718 = vst [vmem:[%s5686_s10 + $0x6d0] sm:$0xff] %v717_v26  ;;  %v721_v28 = vld [vmem:[%s5681_s23 + $0xdc0] sm:$0xff]  ;;  %v723_v29 = vld [vmem:[%s5681_s23 + $0xdc8] sm:$0xff]  ;;  %720 = vst [vmem:[%s5686_s10 + $0x6d8] sm:$0xff] %v719_v27 }
  0x8e   : > { %722 = vst [vmem:[%s5686_s10 + $0x6e0] sm:$0xff] %v721_v28  ;;  %724 = vst [vmem:[%s5686_s10 + $0x6e8] sm:$0xff] %v723_v29  ;;  %v725_v30 = vld [vmem:[%s5681_s23 + $0xde0] sm:$0xff]  ;;  %v727_v31 = vld [vmem:[%s5681_s23 + $0xde8] sm:$0xff] }
  0x8f   : > { %v729_v32 = vld [vmem:[%s5681_s23 + $0xe00] sm:$0xff]  ;;  %726 = vst [vmem:[%s5686_s10 + $0x6f0] sm:$0xff] %v725_v30  ;;  %728 = vst [vmem:[%s5686_s10 + $0x6f8] sm:$0xff] %v727_v31  ;;  %v731_v33 = vld [vmem:[%s5681_s23 + $0xe08] sm:$0xff] }
  0x90   : > { %730 = vst [vmem:[%s5686_s10 + $0x700] sm:$0xff] %v729_v32  ;;  %v733_v34 = vld [vmem:[%s5681_s23 + $0xe20] sm:$0xff]  ;;  %v735_v35 = vld [vmem:[%s5681_s23 + $0xe28] sm:$0xff]  ;;  %732 = vst [vmem:[%s5686_s10 + $0x708] sm:$0xff] %v731_v33 }
  0x91   : > { %734 = vst [vmem:[%s5686_s10 + $0x710] sm:$0xff] %v733_v34  ;;  %736 = vst [vmem:[%s5686_s10 + $0x718] sm:$0xff] %v735_v35  ;;  %v737_v36 = vld [vmem:[%s5681_s23 + $0xe40] sm:$0xff]  ;;  %v739_v37 = vld [vmem:[%s5681_s23 + $0xe48] sm:$0xff] }
  0x92   : > { %v741_v38 = vld [vmem:[%s5681_s23 + $0xe60] sm:$0xff]  ;;  %738 = vst [vmem:[%s5686_s10 + $0x720] sm:$0xff] %v737_v36  ;;  %740 = vst [vmem:[%s5686_s10 + $0x728] sm:$0xff] %v739_v37  ;;  %v743_v39 = vld [vmem:[%s5681_s23 + $0xe68] sm:$0xff] }
  0x93   : > { %742 = vst [vmem:[%s5686_s10 + $0x730] sm:$0xff] %v741_v38  ;;  %v745_v40 = vld [vmem:[%s5681_s23 + $0xe80] sm:$0xff]  ;;  %v747_v41 = vld [vmem:[%s5681_s23 + $0xe88] sm:$0xff]  ;;  %744 = vst [vmem:[%s5686_s10 + $0x738] sm:$0xff] %v743_v39 }
  0x94   : > { %746 = vst [vmem:[%s5686_s10 + $0x740] sm:$0xff] %v745_v40  ;;  %748 = vst [vmem:[%s5686_s10 + $0x748] sm:$0xff] %v747_v41  ;;  %v749_v42 = vld [vmem:[%s5681_s23 + $0xea0] sm:$0xff]  ;;  %v751_v43 = vld [vmem:[%s5681_s23 + $0xea8] sm:$0xff] }
  0x95   : > { %v753_v44 = vld [vmem:[%s5681_s23 + $0xec0] sm:$0xff]  ;;  %750 = vst [vmem:[%s5686_s10 + $0x750] sm:$0xff] %v749_v42  ;;  %752 = vst [vmem:[%s5686_s10 + $0x758] sm:$0xff] %v751_v43  ;;  %v755_v45 = vld [vmem:[%s5681_s23 + $0xec8] sm:$0xff] }
  0x96   : > { %754 = vst [vmem:[%s5686_s10 + $0x760] sm:$0xff] %v753_v44  ;;  %v757_v46 = vld [vmem:[%s5681_s23 + $0xee0] sm:$0xff]  ;;  %v759_v47 = vld [vmem:[%s5681_s23 + $0xee8] sm:$0xff]  ;;  %756 = vst [vmem:[%s5686_s10 + $0x768] sm:$0xff] %v755_v45 }
  0x97   : > { %758 = vst [vmem:[%s5686_s10 + $0x770] sm:$0xff] %v757_v46  ;;  %760 = vst [vmem:[%s5686_s10 + $0x778] sm:$0xff] %v759_v47  ;;  %v761_v48 = vld [vmem:[%s5681_s23 + $0xf00] sm:$0xff]  ;;  %v763_v49 = vld [vmem:[%s5681_s23 + $0xf08] sm:$0xff] }
  0x98   : > { %v765_v50 = vld [vmem:[%s5681_s23 + $0xf20] sm:$0xff]  ;;  %762 = vst [vmem:[%s5686_s10 + $0x780] sm:$0xff] %v761_v48  ;;  %764 = vst [vmem:[%s5686_s10 + $0x788] sm:$0xff] %v763_v49  ;;  %v767_v51 = vld [vmem:[%s5681_s23 + $0xf28] sm:$0xff] }
  0x99   : > { %766 = vst [vmem:[%s5686_s10 + $0x790] sm:$0xff] %v765_v50  ;;  %v769_v52 = vld [vmem:[%s5681_s23 + $0xf40] sm:$0xff]  ;;  %v771_v53 = vld [vmem:[%s5681_s23 + $0xf48] sm:$0xff]  ;;  %768 = vst [vmem:[%s5686_s10 + $0x798] sm:$0xff] %v767_v51 }
  0x9a   : > { %770 = vst [vmem:[%s5686_s10 + $0x7a0] sm:$0xff] %v769_v52  ;;  %772 = vst [vmem:[%s5686_s10 + $0x7a8] sm:$0xff] %v771_v53  ;;  %v773_v54 = vld [vmem:[%s5681_s23 + $0xf60] sm:$0xff]  ;;  %v775_v55 = vld [vmem:[%s5681_s23 + $0xf68] sm:$0xff] }
  0x9b   : > { %v777_v56 = vld [vmem:[%s5681_s23 + $0xf80] sm:$0xff]  ;;  %774 = vst [vmem:[%s5686_s10 + $0x7b0] sm:$0xff] %v773_v54  ;;  %776 = vst [vmem:[%s5686_s10 + $0x7b8] sm:$0xff] %v775_v55  ;;  %v779_v57 = vld [vmem:[%s5681_s23 + $0xf88] sm:$0xff] }
  0x9c   : > { %778 = vst [vmem:[%s5686_s10 + $0x7c0] sm:$0xff] %v777_v56  ;;  %v781_v58 = vld [vmem:[%s5681_s23 + $0xfa0] sm:$0xff]  ;;  %v783_v59 = vld [vmem:[%s5681_s23 + $0xfa8] sm:$0xff]  ;;  %780 = vst [vmem:[%s5686_s10 + $0x7c8] sm:$0xff] %v779_v57 }
  0x9d   : > { %782 = vst [vmem:[%s5686_s10 + $0x7d0] sm:$0xff] %v781_v58  ;;  %784 = vst [vmem:[%s5686_s10 + $0x7d8] sm:$0xff] %v783_v59  ;;  %v785_v60 = vld [vmem:[%s5681_s23 + $0xfc0] sm:$0xff]  ;;  %v787_v61 = vld [vmem:[%s5681_s23 + $0xfc8] sm:$0xff] }
  0x9e   : > { %v789_v62 = vld [vmem:[%s5681_s23 + $0xfe0] sm:$0xff]  ;;  %786 = vst [vmem:[%s5686_s10 + $0x7e0] sm:$0xff] %v785_v60  ;;  %788 = vst [vmem:[%s5686_s10 + $0x7e8] sm:$0xff] %v787_v61  ;;  %v791_v63 = vld [vmem:[%s5681_s23 + $0xfe8] sm:$0xff] }
  0x9f   : > { %790 = vst [vmem:[%s5686_s10 + $0x7f0] sm:$0xff] %v789_v62  ;;  %792 = vst [vmem:[%s5686_s10 + $0x7f8] sm:$0xff] %v791_v63 }
  0xa0 PF: > { %p4362_p7 = scmp.ge.s32.totalorder %s5576_s30, 1  ;;  %p814_p8 = scmp.lt.s32.totalorder %s5576_s30, 5 }
  0xa2   : > { %p815_p9 = pnand %p4362_p7, %p814_p8 }
  0xa3   : > { %s821_s11 = sand.u32 (!%p815_p9), 1, %s5552_s24   ;;  %p865_p10 = scmp.lt.s32.totalorder (!%p815_p9), %s5560_s26, 1 }
  0xa4   : > { %818 = sbr.rel (%p815_p9) target bundleno = 1474 (0x5c2), region = 67  ;;  %s4363_s12 = sshll.u32 (!%p815_p9), %s821_s11, 11 }
  0xa5   : > { %s4366_s13 = sshll.u32 (!%p815_p9), %s5564_s27, 2  ;;  %s4367_s17 = sshll.u32 (!%p815_p9), %s5564_s27, 6 }
  0xa6   : > { %p873_p11 = scmp.lt.s32.totalorder (!%p815_p9), %s4366_s13, 7  ;;  %p878_p12 = scmp.lt.s32.totalorder (!%p815_p9), %s4367_s17, 127 }
  0xa7   : > { %p883_p13 = scmp.lt.s32.totalorder (!%p815_p9), %s5564_s27, 1  ;;  %s6224_s18 = scalar_lea.vmem (!%p815_p9), [#allocation3], %s4363_s12 }
  0xa8   : > { %p4370_p0 = scmp.ne.s32.totalorder (!%p815_p9), %s5560_s26, 0 }
  0xab   : > { %s866_s15 = scalar_select %p865_p10, %s5560_s26, 1 }
  0xac   : > { %s7383_s13 = smov (!%p873_p11, %s4366_s13), 7  ;;  %s7385_s17 = smov (!%p878_p12, %s4367_s17), 127 }
  0xad   : > { %s4689_s16 = sshll.u32 %s866_s15, 4  ;;  %s875_s23 = scalar_lea.vmem %s7359_s5, %s7383_s13  ;;  %v894_v0 = vlaneseq (!%p4370_p0) }
  0xae   : > { %s6207_s20 = scalar_lea.vmem %s7355_s1, %s4689_s16  ;;  %s7387_s27 = smov (!%p883_p13, %s5564_s27), 1  ;;  %v892_v2 = vld [vmem:[%s875_s23] sm:$0xf] (!%p4370_p0) }
  0xaf   : > { %s4368_s24 = sshll.u32 %s7385_s17, 2  ;;  %s4369_s15 = sshll.u32 %s7387_s27, 3  ;;  %v895_v1 = vshrl.u32 (!%p4370_p0), %v894_v0, 7 }
  0xb0   : > { %s6217_s4 = scalar_lea.vmem %s7360_s6, %s4368_s24  ;;  %s6222_s16 = scalar_lea.vmem %s7361_s7, %s4369_s15 }
  0xb1   : > { %891 = sbr.rel (%p4370_p0) target bundleno = 184 (0xb8), region = 75  ;;  %v896_v3 = vsub.s32 (!%p4370_p0), 0, %v895_v1  ;;  %v900_v4 = vsub.s32 (!%p4370_p0), 1, %v895_v1  ;;  %v904_v5 = vsub.s32 (!%p4370_p0), 2, %v895_v1  ;;  %v908_v6 = vsub.s32 (!%p4370_p0), 3, %v895_v1 }
  0xb3   : > { %v897_v7 = vrot.slane (!%p4370_p0), %v892_v2, %v896_v3  ;;  %v901_v8 = vrot.slane (!%p4370_p0), %v892_v2, %v900_v4  ;;  %v905_v9 = vrot.slane (!%p4370_p0), %v892_v2, %v904_v5  ;;  %v909_v10 = vrot.slane (!%p4370_p0), %v892_v2, %v908_v6 }
  0xb5   : > { %914 = vst [vmem:[#allocation2] sm:$0xff] (!%p4370_p0), %v897_v7  ;;  %915 = vst [vmem:[#allocation2 + $0x8] sm:$0xff] (!%p4370_p0), %v901_v8 }
  0xb6   : > { %916 = vst [vmem:[#allocation2 + $0x10] sm:$0xff] (!%p4370_p0), %v905_v9  ;;  %917 = vst [vmem:[#allocation2 + $0x18] sm:$0xff] (!%p4370_p0), %v909_v10 }
  0xb8 PF: > { %v920_v11 = vld [vmem:[%s7354_s0] sm:$0xff]  ;;  %v921_v12 = vld [vmem:[%s7354_s0 + $0x8] sm:$0xff]  ;;  %v5578_v14 = vmov 0.0|0.0   ;;  %v946_v16 = vld [vmem:[%s7354_s0 + $0xd0] sm:$0xff]  ;;  %vm1120_vm0 = vcmask 556032   ;;  %vm1124_vm1 = vcmask 1043456  }
  0xb9   : > { %v945_v13 = vld [vmem:[%s7354_s0 + $0xc8] sm:$0xff]  ;;  %4757 = vmatprep.subr.bf16.mxu0 %v5578_v14  ;;  %4793 = vmatprep.subr.bf16.mxu1 %v5578_v14  ;;  %v4758_v15 = vpack.c.bf16 %v921_v12, %v920_v11  ;;  %v922_v17 = vld [vmem:[%s7354_s0 + $0x10] sm:$0xff]  ;;  %v923_v18 = vld [vmem:[%s7354_s0 + $0x18] sm:$0xff]  ;;  %vm1717_vm2 = vcmask 31744   ;;  %p4653_p1 = scmp.ne.s32.totalorder %s5560_s26, 1 }
  0xba   : > { %v4794_v19 = vpack.c.bf16 %v946_v16, %v945_v13  ;;  %v947_v20 = vld [vmem:[%s7354_s0 + $0xd8] sm:$0xff]  ;;  %v948_v21 = vld [vmem:[%s7354_s0 + $0xe0] sm:$0xff]  ;;  %v4761_v22 = vpack.c.bf16 %v923_v18, %v922_v17  ;;  %v925_v25 = vld [vmem:[%s7354_s0 + $0x28] sm:$0xff] }
  0xbb   : > { %4759 = vmatpush1.bf16.msra.mxu0 %v4758_v15  ;;  %v4797_v23 = vpack.c.bf16 %v948_v21, %v947_v20  ;;  %v924_v24 = vld [vmem:[%s7354_s0 + $0x20] sm:$0xff]  ;;  %v949_v26 = vld [vmem:[%s7354_s0 + $0xe8] sm:$0xff]  ;;  %v950_v27 = vld [vmem:[%s7354_s0 + $0xf0] sm:$0xff] }
  0xbc   : > { %4795 = vmatpush1.bf16.msra.mxu1 %v4794_v19  ;;  %4760 = vmatprep.subr.bf16.mxu0 %v5578_v14  ;;  %v4764_v28 = vpack.c.bf16 %v925_v25, %v924_v24  ;;  %v4800_v29 = vpack.c.bf16 %v950_v27, %v949_v26  ;;  %v926_v30 = vld [vmem:[%s7354_s0 + $0x30] sm:$0xff]  ;;  %v927_v31 = vld [vmem:[%s7354_s0 + $0x38] sm:$0xff]  ;;  %v952_v33 = vld [vmem:[%s7354_s0 + $0x100] sm:$0xff]  ;;  %v5579_v24 = vmov 0.0  }
  0xbd   : > { %4796 = vmatprep.subr.bf16.mxu1 %v5578_v14  ;;  %v951_v32 = vld [vmem:[%s7354_s0 + $0xf8] sm:$0xff]  ;;  %v4767_v34 = vpack.c.bf16 %v927_v31, %v926_v30  ;;  %v928_v36 = vld [vmem:[%s7354_s0 + $0x40] sm:$0xff]  ;;  %v929_v37 = vld [vmem:[%s7354_s0 + $0x48] sm:$0xff] }
  0xbe   : > { %v4803_v35 = vpack.c.bf16 %v952_v33, %v951_v32  ;;  %v953_v38 = vld [vmem:[%s7354_s0 + $0x108] sm:$0xff]  ;;  %v954_v39 = vld [vmem:[%s7354_s0 + $0x110] sm:$0xff]  ;;  %v4770_v40 = vpack.c.bf16 %v929_v37, %v928_v36  ;;  %v931_v43 = vld [vmem:[%s7354_s0 + $0x58] sm:$0xff] }
  0xbf   : > { %4762 = vmatpush1.bf16.msra.mxu0 %v4761_v22  ;;  %v4806_v41 = vpack.c.bf16 %v954_v39, %v953_v38  ;;  %v930_v42 = vld [vmem:[%s7354_s0 + $0x50] sm:$0xff]  ;;  %v6303_v44 = vld [vmem:[%s6207_s20 + $0x8] sm:$0xff]  ;;  %v955_v45 = vld [vmem:[%s7354_s0 + $0x118] sm:$0xff] }
  0xc0   : > { %4798 = vmatpush1.bf16.msra.mxu1 %v4797_v23  ;;  %4763 = vmatprep.subr.bf16.mxu0 %v5578_v14  ;;  %v956_v46 = vld [vmem:[%s7354_s0 + $0x120] sm:$0xff]  ;;  %v4773_v47 = vpack.c.bf16 %v931_v43, %v930_v42  ;;  %v933_v50 = vld [vmem:[%s7354_s0 + $0x68] sm:$0xff]  ;;  %v958_v52 = vld [vmem:[%s7354_s0 + $0x130] sm:$0xff] }
  0xc1   : > { %4799 = vmatprep.subr.bf16.mxu1 %v5578_v14  ;;  %4372 = vmatprep.mubr.msk.f32.mxu0 %vm1120_vm0, %v6303_v44  ;;  %v4809_v48 = vpack.c.bf16 %v956_v46, %v955_v45  ;;  %v932_v49 = vld [vmem:[%s7354_s0 + $0x60] sm:$0xff]  ;;  %v957_v51 = vld [vmem:[%s7354_s0 + $0x128] sm:$0xff]  ;;  %v934_v55 = vld [vmem:[%s7354_s0 + $0x70] sm:$0xff] }
  0xc2   : > { %4374 = vmatprep.mubr.msk.f32.mxu1 %vm1120_vm0, %v6303_v44  ;;  %v4776_v53 = vpack.c.bf16 %v933_v50, %v932_v49  ;;  %v4812_v54 = vpack.c.bf16 %v958_v52, %v957_v51  ;;  %v935_v56 = vld [vmem:[%s7354_s0 + $0x78] sm:$0xff]  ;;  %v960_v58 = vld [vmem:[%s7354_s0 + $0x140] sm:$0xff]  ;;  %v937_v62 = vld [vmem:[%s7354_s0 + $0x88] sm:$0xff] }
  0xc3   : > { %4765 = vmatpush1.bf16.msra.mxu0 %v4764_v28  ;;  %v959_v57 = vld [vmem:[%s7354_s0 + $0x138] sm:$0xff]  ;;  %v4779_v59 = vpack.c.bf16 %v935_v56, %v934_v55  ;;  %v936_v61 = vld [vmem:[%s7354_s0 + $0x80] sm:$0xff]  ;;  %v961_v63 = vld [vmem:[%s7354_s0 + $0x148] sm:$0xff] }
  0xc4   : > { %4801 = vmatpush1.bf16.msra.mxu1 %v4800_v29  ;;  %4766 = vmatprep.subr.bf16.mxu0 %v5578_v14  ;;  %v4815_v60 = vpack.c.bf16 %v960_v58, %v959_v57  ;;  %v962_v0 = vld [vmem:[%s7354_s0 + $0x150] sm:$0xff]  ;;  %v4782_v1 = vpack.c.bf16 %v937_v62, %v936_v61  ;;  %v939_v4 = vld [vmem:[%s7354_s0 + $0x98] sm:$0xff]  ;;  %v964_v6 = vld [vmem:[%s7354_s0 + $0x160] sm:$0xff] }
  0xc5   : > { %4802 = vmatprep.subr.bf16.mxu1 %v5578_v14  ;;  %v4818_v2 = vpack.c.bf16 %v962_v0, %v961_v63  ;;  %v938_v3 = vld [vmem:[%s7354_s0 + $0x90] sm:$0xff]  ;;  %v963_v5 = vld [vmem:[%s7354_s0 + $0x158] sm:$0xff]  ;;  %v940_v9 = vld [vmem:[%s7354_s0 + $0xa0] sm:$0xff] }
  0xc6   : > { %v4785_v7 = vpack.c.bf16 %v939_v4, %v938_v3  ;;  %v4821_v8 = vpack.c.bf16 %v964_v6, %v963_v5  ;;  %v941_v10 = vld [vmem:[%s7354_s0 + $0xa8] sm:$0xff]  ;;  %v966_v12 = vld [vmem:[%s7354_s0 + $0x170] sm:$0xff]  ;;  %v943_v17 = vld [vmem:[%s7354_s0 + $0xb8] sm:$0xff] }
  0xc7   : > { %4768 = vmatpush1.bf16.msra.mxu0 %v4767_v34  ;;  %v965_v11 = vld [vmem:[%s7354_s0 + $0x168] sm:$0xff]  ;;  %v4788_v13 = vpack.c.bf16 %v941_v10, %v940_v9  ;;  %v942_v16 = vld [vmem:[%s7354_s0 + $0xb0] sm:$0xff]  ;;  %v967_v18 = vld [vmem:[%s7354_s0 + $0x178] sm:$0xff] }
  0xc8   : > { %4804 = vmatpush1.bf16.msra.mxu1 %v4803_v35  ;;  %4769 = vmatprep.subr.bf16.mxu0 %v5578_v14  ;;  %v4824_v15 = vpack.c.bf16 %v966_v12, %v965_v11  ;;  %v968_v19 = vld [vmem:[%s7354_s0 + $0x180] sm:$0xff]  ;;  %v4791_v20 = vpack.c.bf16 %v943_v17, %v942_v16  ;;  %v970_v22 = vld [vmem:[%s7354_s0 + $0x190] sm:$0xff]  ;;  %v971_v23 = vld [vmem:[%s7354_s0 + $0x198] sm:$0xff] }
  0xc9   : > { %4805 = vmatprep.subr.bf16.mxu1 %v5578_v14  ;;  %v4827_v21 = vpack.c.bf16 %v968_v19, %v967_v18  ;;  %v944_v25 = vld [vmem:[%s7354_s0 + $0xc0] sm:$0xf]  ;;  %v995_v26 = vld [vmem:[%s7354_s0 + $0x258] sm:$0xff]  ;;  %v969_v28 = vld [vmem:[%s7354_s0 + $0x188] sm:$0xf]  ;;  %v4830_v30 = vpack.c.bf16 %v971_v23, %v970_v22 }
  0xca   : > { %v996_v27 = vld [vmem:[%s7354_s0 + $0x260] sm:$0xff]  ;;  %v973_v33 = vld [vmem:[%s7354_s0 + $0x1a8] sm:$0xff]  ;;  %v998_v35 = vld [vmem:[%s7354_s0 + $0x270] sm:$0xff] }
  0xcb   : > { %4771 = vmatpush1.bf16.msra.mxu0 %v4770_v40  ;;  %v6423_v29 = vld [vmem:[%s6207_s20] sm:$0xff]  ;;  %v4866_v31 = vpack.c.bf16 %v996_v27, %v995_v26  ;;  %v997_v34 = vld [vmem:[%s7354_s0 + $0x268] sm:$0xff]  ;;  %v974_v38 = vld [vmem:[%s7354_s0 + $0x1b0] sm:$0xff] }
  0xcc   : > { %4807 = vmatpush1.bf16.msra.mxu1 %v4806_v41  ;;  %4772 = vmatprep.subr.bf16.mxu0 %v5578_v14  ;;  %v972_v32 = vld [vmem:[%s7354_s0 + $0x1a0] sm:$0xff]  ;;  %v4869_v37 = vpack.c.bf16 %v998_v35, %v997_v34  ;;  %v975_v39 = vld [vmem:[%s7354_s0 + $0x1b8] sm:$0xff]  ;;  %v977_v46 = vld [vmem:[%s7354_s0 + $0x1c8] sm:$0xff] }
  0xcd   : > { %4808 = vmatprep.subr.bf16.mxu1 %v5578_v14  ;;  %v4833_v36 = vpack.c.bf16 %v973_v33, %v972_v32  ;;  %v999_v40 = vld [vmem:[%s7354_s0 + $0x278] sm:$0xff]  ;;  %v1000_v41 = vld [vmem:[%s7354_s0 + $0x280] sm:$0xff]  ;;  %v4836_v42 = vpack.c.bf16 %v975_v39, %v974_v38  ;;  %v978_v50 = vld [vmem:[%s7354_s0 + $0x1d0] sm:$0xff] }
  0xce   : > { %v4872_v43 = vpack.c.bf16 %v1000_v41, %v999_v40  ;;  %v976_v45 = vld [vmem:[%s7354_s0 + $0x1c0] sm:$0xff]  ;;  %v979_v52 = vld [vmem:[%s7354_s0 + $0x1d8] sm:$0xff]  ;;  %v981_v57 = vld [vmem:[%s7354_s0 + $0x1e8] sm:$0xff] }
  0xcf   : > { %4774 = vmatpush1.bf16.msra.mxu0 %v4773_v47  ;;  %v1001_v47 = vld [vmem:[%s7354_s0 + $0x288] sm:$0xff]  ;;  %v4839_v49 = vpack.c.bf16 %v977_v46, %v976_v45  ;;  %v4842_v55 = vpack.c.bf16 %v979_v52, %v978_v50  ;;  %v980_v56 = vld [vmem:[%s7354_s0 + $0x1e0] sm:$0xff]  ;;  %v982_v62 = vld [vmem:[%s7354_s0 + $0x1f0] sm:$0xff] }
  0xd0   : > { %4810 = vmatpush1.bf16.msra.mxu1 %v4809_v48  ;;  %4775 = vmatprep.subr.bf16.mxu0 %v5578_v14  ;;  %v1002_v48 = vld [vmem:[%s7354_s0 + $0x290] sm:$0xff]  ;;  %v1005_v58 = vld [vmem:[%s7354_s0 + $0x2a8] sm:$0xff]  ;;  %v4845_v61 = vpack.c.bf16 %v981_v57, %v980_v56  ;;  %v983_v63 = vld [vmem:[%s7354_s0 + $0x1f8] sm:$0xff] }
  0xd1   : > { %4811 = vmatprep.subr.bf16.mxu1 %v5578_v14  ;;  %v4875_v51 = vpack.c.bf16 %v1002_v48, %v1001_v47  ;;  %v1007_v0 = vld [vmem:[%s7354_s0 + $0x2b8] sm:$0xff]  ;;  %v984_v3 = vld [vmem:[%s7354_s0 + $0x200] sm:$0xff]  ;;  %v985_v4 = vld [vmem:[%s7354_s0 + $0x208] sm:$0xff]  ;;  %v4848_v5 = vpack.c.bf16 %v983_v63, %v982_v62 }
  0xd2   : > { %v1009_v6 = vld [vmem:[%s7354_s0 + $0x2c8] sm:$0xff]  ;;  %v986_v9 = vld [vmem:[%s7354_s0 + $0x210] sm:$0xff]  ;;  %v987_v10 = vld [vmem:[%s7354_s0 + $0x218] sm:$0xff]  ;;  %v4851_v11 = vpack.c.bf16 %v985_v4, %v984_v3 }
  0xd3   : > { %4777 = vmatpush1.bf16.msra.mxu0 %v4776_v53  ;;  %v1003_v53 = vld [vmem:[%s7354_s0 + $0x298] sm:$0xff]  ;;  %v988_v16 = vld [vmem:[%s7354_s0 + $0x220] sm:$0xff]  ;;  %v989_v17 = vld [vmem:[%s7354_s0 + $0x228] sm:$0xff]  ;;  %v4854_v18 = vpack.c.bf16 %v987_v10, %v986_v9 }
  0xd4   : > { %4813 = vmatpush1.bf16.msra.mxu1 %v4812_v54  ;;  %4778 = vmatprep.subr.bf16.mxu0 %v5578_v14  ;;  %v1004_v54 = vld [vmem:[%s7354_s0 + $0x2a0] sm:$0xff]  ;;  %v1011_v12 = vld [vmem:[%s7354_s0 + $0x2d8] sm:$0xff]  ;;  %v1013_v19 = vld [vmem:[%s7354_s0 + $0x2e8] sm:$0xff] }
  0xd5   : > { %4814 = vmatprep.subr.bf16.mxu1 %v5578_v14  ;;  %v990_v22 = vld [vmem:[%s7354_s0 + $0x230] sm:$0xff]  ;;  %v991_v23 = vld [vmem:[%s7354_s0 + $0x238] sm:$0xff]  ;;  %v1016_v27 = vld [vmem:[%s7354_s0 + $0x300] sm:$0xff] }
  0xd6   : > { %v1015_v26 = vld [vmem:[%s7354_s0 + $0x2f8] sm:$0xff]  ;;  %v4860_v32 = vpack.c.bf16 %v991_v23, %v990_v22  ;;  %v1017_v33 = vld [vmem:[%s7354_s0 + $0x308] sm:$0xff]  ;;  %v1018_v34 = vld [vmem:[%s7354_s0 + $0x310] sm:$0xff] }
  0xd7   : > { %4780 = vmatpush1.bf16.msra.mxu0 %v4779_v59  ;;  %v4878_v59 = vpack.c.bf16 %v1004_v54, %v1003_v53  ;;  %v4896_v35 = vpack.c.bf16 %v1016_v27, %v1015_v26  ;;  %v1020_v38 = vld [vmem:[%s7354_s0 + $0x320] sm:$0xff]  ;;  %v1021_v39 = vld [vmem:[%s7354_s0 + $0x328] sm:$0xff]  ;;  %v994_v40 = vld [vmem:[%s7354_s0 + $0x250] sm:$0xf] }
  0xd8   : > { %4816 = vmatpush1.bf16.msra.mxu1 %v4815_v60  ;;  %4781 = vmatprep.subr.bf16.mxu0 %v5578_v14  ;;  %v1006_v60 = vld [vmem:[%s7354_s0 + $0x2b0] sm:$0xff]  ;;  %v1045_v41 = vld [vmem:[%s7354_s0 + $0x3e8] sm:$0xff]  ;;  %v1023_v46 = vld [vmem:[%s7354_s0 + $0x338] sm:$0xff]  ;;  %v4902_v47 = vpack.c.bf16 %v1021_v39, %v1020_v38 }
  0xd9   : > { %4817 = vmatprep.subr.bf16.mxu1 %v5578_v14  ;;  %v1022_v45 = vld [vmem:[%s7354_s0 + $0x330] sm:$0xff]  ;;  %v1047_v48 = vld [vmem:[%s7354_s0 + $0x3f8] sm:$0xff]  ;;  %v1025_v52 = vld [vmem:[%s7354_s0 + $0x348] sm:$0xff] }
  0xda   : > { %v4905_v53 = vpack.c.bf16 %v1023_v46, %v1022_v45  ;;  %v1049_v54 = vld [vmem:[%s7354_s0 + $0x408] sm:$0xff]  ;;  %v1027_v57 = vld [vmem:[%s7354_s0 + $0x358] sm:$0xff]  ;;  %v1030_v3 = vld [vmem:[%s7354_s0 + $0x370] sm:$0xff] }
  0xdb   : > { %4783 = vmatpush1.bf16.msra.mxu0 %v4782_v1  ;;  %v4881_v1 = vpack.c.bf16 %v1006_v60, %v1005_v58  ;;  %v1052_v60 = vld [vmem:[%s7354_s0 + $0x420] sm:$0xff]  ;;  %v1029_v62 = vld [vmem:[%s7354_s0 + $0x368] sm:$0xff]  ;;  %v1031_v4 = vld [vmem:[%s7354_s0 + $0x378] sm:$0xff] }
  0xdc   : > { %4819 = vmatpush1.bf16.msra.mxu1 %v4818_v2  ;;  %4784 = vmatprep.subr.bf16.mxu0 %v5578_v14  ;;  %v1008_v2 = vld [vmem:[%s7354_s0 + $0x2c0] sm:$0xff]  ;;  %v1033_v10 = vld [vmem:[%s7354_s0 + $0x388] sm:$0xff]  ;;  %v1062_v27 = vld [vmem:[%s7354_s0 + $0x470] sm:$0xff] }
  0xdd   : > { %4820 = vmatprep.subr.bf16.mxu1 %v5578_v14  ;;  %v1032_v9 = vld [vmem:[%s7354_s0 + $0x380] sm:$0xff]  ;;  %v1037_v23 = vld [vmem:[%s7354_s0 + $0x3a8] sm:$0xff]  ;;  %v1067_v46 = vld [vmem:[%s7354_s0 + $0x498] sm:$0xff] }
  0xde   : > { %v1036_v22 = vld [vmem:[%s7354_s0 + $0x3a0] sm:$0xff]  ;;  %v1061_v26 = vld [vmem:[%s7354_s0 + $0x468] sm:$0xff] }
  0xdf   : > { %4786 = vmatpush1.bf16.msra.mxu0 %v4785_v7  ;;  %v4884_v7 = vpack.c.bf16 %v1008_v2, %v1007_v0  ;;  %v1053_v0 = vld [vmem:[%s7354_s0 + $0x428] sm:$0xff] }
  0xe0   : > { %4822 = vmatpush1.bf16.msra.mxu1 %v4821_v8  ;;  %4787 = vmatprep.subr.bf16.mxu0 %v5578_v14  ;;  %v1010_v8 = vld [vmem:[%s7354_s0 + $0x2d0] sm:$0xff]  ;;  %v1065_v39 = vld [vmem:[%s7354_s0 + $0x488] sm:$0xff] }
  0xe1   : > { %4823 = vmatprep.subr.bf16.mxu1 %v5578_v14 }
  0xe3   : > { %4789 = vmatpush1.bf16.msra.mxu0 %v4788_v13  ;;  %v1012_v13 = vld [vmem:[%s7354_s0 + $0x2e0] sm:$0xff] }
  0xe4   : > { %4825 = vmatpush1.bf16.msra.mxu1 %v4824_v15  ;;  %4790 = vmatprep.subr.bf16.mxu0 %v5578_v14  ;;  %v4887_v15 = vpack.c.bf16 %v1010_v8, %v1009_v6  ;;  %v1055_v6 = vld [vmem:[%s7354_s0 + $0x438] sm:$0xff] }
  0xe5   : > { %4826 = vmatprep.subr.bf16.mxu1 %v5578_v14 }
  0xe7   : > { %4792 = vmatpush1.bf16.msra.mxu0 %v4791_v20  ;;  %v1014_v20 = vld [vmem:[%s7354_s0 + $0x2f0] sm:$0xff] }
  0xe8   : > { %4828 = vmatpush1.bf16.msra.mxu1 %v4827_v21  ;;  %1176 = vmatprep.subr.mxu0 %v5579_v24  ;;  %v4890_v21 = vpack.c.bf16 %v1012_v13, %v1011_v12  ;;  %v1057_v12 = vld [vmem:[%s7354_s0 + $0x448] sm:$0xff]  ;;  %v1058_v13 = vld [vmem:[%s7354_s0 + $0x450] sm:$0xff] }
  0xe9   : > { %1249 = vmatprep.subr.mxu1 %v5579_v24 }
  0xeb   : > { %4371 = vmatpush1.msk.msra.mxu0 %vm1124_vm1, %v944_v25  ;;  %v4857_v25 = vpack.c.bf16 %v989_v17, %v988_v16  ;;  %v1034_v16 = vld [vmem:[%s7354_s0 + $0x390] sm:$0xff]  ;;  %v1035_v17 = vld [vmem:[%s7354_s0 + $0x398] sm:$0xff] }
  0xec   : > { %4373 = vmatpush1.msk.msra.mxu1 %vm1124_vm1, %v969_v28  ;;  %1193 = vmatmul.mubr.f32.vlgmr.msra.gmra.mrb[0].mxu0 %v6423_v29  ;;  %v4893_v28 = vpack.c.bf16 %v1014_v20, %v1013_v19  ;;  %v1059_v19 = vld [vmem:[%s7354_s0 + $0x458] sm:$0xff]  ;;  %v1060_v20 = vld [vmem:[%s7354_s0 + $0x460] sm:$0xff] }
  0xed   : > { %4829 = vmatprep.subr.bf16.mxu0 %v5578_v14  ;;  %4865 = vmatprep.subr.bf16.mxu1 %v5578_v14 }
  0xee   : > { %1266 = vmatmul.mubr.f32.vlgmr.msra.gmra.mrb[0].mxu1 %v6423_v29  ;;  %4831 = vmatpush1.bf16.msra.mxu0 %v4830_v30  ;;  %v992_v30 = vld [vmem:[%s7354_s0 + $0x240] sm:$0xff] }
  0xef   : > { %4867 = vmatpush1.bf16.msra.mxu1 %v4866_v31  ;;  %4832 = vmatprep.subr.bf16.mxu0 %v5578_v14  ;;  %v993_v31 = vld [vmem:[%s7354_s0 + $0x248] sm:$0xff] }
  0xf0   : > { %4868 = vmatprep.subr.bf16.mxu1 %v5578_v14  ;;  %4376 = vmatprep.mubr.msk.f32.mxu0 %vm1120_vm0, %v6303_v44 }
  0xf1   : > { %4378 = vmatprep.mubr.msk.f32.mxu1 %vm1120_vm0, %v6303_v44 }
  0xf2   : > { %4834 = vmatpush1.bf16.msra.mxu0 %v4833_v36  ;;  %v4863_v36 = vpack.c.bf16 %v993_v31, %v992_v30  ;;  %v1038_v30 = vld [vmem:[%s7354_s0 + $0x3b0] sm:$0xff]  ;;  %v1039_v31 = vld [vmem:[%s7354_s0 + $0x3b8] sm:$0xff] }
  0xf3   : > { %4870 = vmatpush1.bf16.msra.mxu1 %v4869_v37  ;;  %4835 = vmatprep.subr.bf16.mxu0 %v5578_v14  ;;  %v4899_v37 = vpack.c.bf16 %v1018_v34, %v1017_v33  ;;  %v1063_v33 = vld [vmem:[%s7354_s0 + $0x478] sm:$0xff]  ;;  %v4962_v34 = vpack.c.bf16 %v1062_v27, %v1061_v26  ;;  %v4929_v38 = vpack.c.bf16 %v1039_v31, %v1038_v30  ;;  %v1082_v27 = vld [vmem:[%s7354_s0 + $0x510] sm:$0xff]  ;;  %v1108_v31 = vld [vmem:[%s7354_s0 + $0x5e0] sm:$0xff] }
  0xf4   : > { %4871 = vmatprep.subr.bf16.mxu1 %v5578_v14  ;;  %v1107_v30 = vld [vmem:[%s7354_s0 + $0x5d8] sm:$0xff] }
  0xf6   : > { %4837 = vmatpush1.bf16.msra.mxu0 %v4836_v42  ;;  %v1046_v42 = vld [vmem:[%s7354_s0 + $0x3f0] sm:$0xff] }
  0xf7   : > { %4873 = vmatpush1.bf16.msra.mxu1 %v4872_v43  ;;  %4838 = vmatprep.subr.bf16.mxu0 %v5578_v14  ;;  %v1019_v43 = vld [vmem:[%s7354_s0 + $0x318] sm:$0xf]  ;;  %v4938_v50 = vpack.c.bf16 %v1046_v42, %v1045_v41  ;;  %v1042_v42 = vld [vmem:[%s7354_s0 + $0x3d0] sm:$0xff] }
  0xf8   : > { %4874 = vmatprep.subr.bf16.mxu1 %v5578_v14 }
  0xfa   : > { %4840 = vmatpush1.bf16.msra.mxu0 %v4839_v49  ;;  %v1048_v49 = vld [vmem:[%s7354_s0 + $0x400] sm:$0xff] }
  0xfb   : > { %4876 = vmatpush1.bf16.msra.mxu1 %v4875_v51  ;;  %4841 = vmatprep.subr.bf16.mxu0 %v5578_v14  ;;  %v1024_v51 = vld [vmem:[%s7354_s0 + $0x340] sm:$0xff]  ;;  %v4941_v56 = vpack.c.bf16 %v1048_v49, %v1047_v48 }
  0xfc   : > { %4877 = vmatprep.subr.bf16.mxu1 %v5578_v14  ;;  %v4908_v58 = vpack.c.bf16 %v1025_v52, %v1024_v51  ;;  %v1070_v51 = vld [vmem:[%s7354_s0 + $0x4b0] sm:$0xff]  ;;  %v1071_v52 = vld [vmem:[%s7354_s0 + $0x4b8] sm:$0xff] }
  0xfe   : > { %4843 = vmatpush1.bf16.msra.mxu0 %v4842_v55  ;;  %v1050_v55 = vld [vmem:[%s7354_s0 + $0x410] sm:$0xff] }
  0xff   : > { %4879 = vmatpush1.bf16.msra.mxu1 %v4878_v59  ;;  %4844 = vmatprep.subr.bf16.mxu0 %v5578_v14  ;;  %v1051_v59 = vld [vmem:[%s7354_s0 + $0x418] sm:$0xff] }
 0x100   : > { %4880 = vmatprep.subr.bf16.mxu1 %v5578_v14  ;;  %v4947_v2 = vpack.c.bf16 %v1052_v60, %v1051_v59  ;;  %v1073_v59 = vld [vmem:[%s7354_s0 + $0x4c8] sm:$0xff]  ;;  %v6802_v60 = vld [vmem:[%s6207_s20] sm:$0xff] }
 0x102   : > { %4846 = vmatpush1.bf16.msra.mxu0 %v4845_v61  ;;  %v4944_v61 = vpack.c.bf16 %v1050_v55, %v1049_v54  ;;  %v1095_v54 = vld [vmem:[%s7354_s0 + $0x578] sm:$0xff]  ;;  %v1096_v55 = vld [vmem:[%s7354_s0 + $0x580] sm:$0xff] }
 0x103   : > { %4882 = vmatpush1.bf16.msra.mxu1 %v4881_v1  ;;  %4847 = vmatprep.subr.bf16.mxu0 %v5578_v14  ;;  %v1054_v1 = vld [vmem:[%s7354_s0 + $0x430] sm:$0xff] }
 0x104   : > { %4883 = vmatprep.subr.bf16.mxu1 %v5578_v14  ;;  %v4950_v8 = vpack.c.bf16 %v1054_v1, %v1053_v0  ;;  %v1074_v0 = vld [vmem:[%s7354_s0 + $0x4d0] sm:$0xff]  ;;  %v1075_v1 = vld [vmem:[%s7354_s0 + $0x4d8] sm:$0xff] }
 0x106   : > { %4849 = vmatpush1.bf16.msra.mxu0 %v4848_v5 }
 0x107   : > { %4885 = vmatpush1.bf16.msra.mxu1 %v4884_v7  ;;  %4850 = vmatprep.subr.bf16.mxu0 %v5578_v14  ;;  %v1056_v7 = vld [vmem:[%s7354_s0 + $0x440] sm:$0xff] }
 0x108   : > { %4886 = vmatprep.subr.bf16.mxu1 %v5578_v14 }
 0x10a   : > { %4852 = vmatpush1.bf16.msra.mxu0 %v4851_v11  ;;  %v4917_v11 = vpack.c.bf16 %v1031_v4, %v1030_v3  ;;  %v1100_v3 = vld [vmem:[%s7354_s0 + $0x5a0] sm:$0xff]  ;;  %v5489_v4 = vld [vmem:[%s6207_s20 + $0x8] sm:$0xff] }
 0x10b   : > { %4888 = vmatpush1.bf16.msra.mxu1 %v4887_v15  ;;  %4853 = vmatprep.subr.bf16.mxu0 %v5578_v14  ;;  %v4953_v15 = vpack.c.bf16 %v1056_v7, %v1055_v6  ;;  %v1076_v7 = vld [vmem:[%s7354_s0 + $0x4e0] sm:$0xff] }
 0x10c   : > { %4889 = vmatprep.subr.bf16.mxu1 %v5578_v14 }
 0x10e   : > { %4855 = vmatpush1.bf16.msra.mxu0 %v4854_v18  ;;  %v4920_v18 = vpack.c.bf16 %v1033_v10, %v1032_v9  ;;  %v1101_v9 = vld [vmem:[%s7354_s0 + $0x5a8] sm:$0xff]  ;;  %v1102_v10 = vld [vmem:[%s7354_s0 + $0x5b0] sm:$0xff] }
 0x10f   : > { %4891 = vmatpush1.bf16.msra.mxu1 %v4890_v21  ;;  %4856 = vmatprep.subr.bf16.mxu0 %v5578_v14  ;;  %v4956_v21 = vpack.c.bf16 %v1058_v13, %v1057_v12  ;;  %v5019_v12 = vpack.c.bf16 %v1102_v10, %v1101_v9  ;;  %v1078_v13 = vld [vmem:[%s7354_s0 + $0x4f0] sm:$0xff] }
 0x110   : > { %4892 = vmatprep.subr.bf16.mxu1 %v5578_v14 }
 0x112   : > { %4858 = vmatpush1.bf16.msra.mxu0 %v4857_v25  ;;  %v4923_v25 = vpack.c.bf16 %v1035_v17, %v1034_v16  ;;  %v1103_v16 = vld [vmem:[%s7354_s0 + $0x5b8] sm:$0xff]  ;;  %v1104_v17 = vld [vmem:[%s7354_s0 + $0x5c0] sm:$0xff] }
 0x113   : > { %4894 = vmatpush1.bf16.msra.mxu1 %v4893_v28  ;;  %4859 = vmatprep.subr.bf16.mxu0 %v5578_v14  ;;  %v4959_v28 = vpack.c.bf16 %v1060_v20, %v1059_v19  ;;  %v5022_v19 = vpack.c.bf16 %v1104_v17, %v1103_v16  ;;  %v1080_v20 = vld [vmem:[%s7354_s0 + $0x500] sm:$0xff] }
 0x114   : > { %4895 = vmatprep.subr.bf16.mxu1 %v5578_v14  ;;  %v5106_v17 = vld [vmem:[%s6224_s18 + $0x4] ss:$16 sps:$4 sm:$0xff]  }
 0x116   : > { %4861 = vmatpush1.bf16.msra.mxu0 %v4860_v32  ;;  %v4926_v32 = vpack.c.bf16 %v1037_v23, %v1036_v22  ;;  %v1105_v22 = vld [vmem:[%s7354_s0 + $0x5c8] sm:$0xff]  ;;  %v1106_v23 = vld [vmem:[%s7354_s0 + $0x5d0] sm:$0xff] }
 0x117   : > { %4897 = vmatpush1.bf16.msra.mxu1 %v4896_v35  ;;  %4862 = vmatprep.subr.bf16.mxu0 %v5578_v14  ;;  %v1064_v35 = vld [vmem:[%s7354_s0 + $0x480] sm:$0xff]  ;;  %v5025_v26 = vpack.c.bf16 %v1106_v23, %v1105_v22 }
 0x118   : > { %4898 = vmatprep.subr.bf16.mxu1 %v5578_v14  ;;  %v4965_v41 = vpack.c.bf16 %v1064_v35, %v1063_v33  ;;  %v5028_v33 = vpack.c.bf16 %v1108_v31, %v1107_v30  ;;  %v1085_v35 = vld [vmem:[%s7354_s0 + $0x528] sm:$0xff]  ;;  %v5115_v22 = vld [vmem:[%s6224_s18 + $0x224] ss:$16 sps:$4 sm:$0xff]   ;;  %v5110_v23 = vld [vmem:[%s6224_s18 + $0x20] ss:$16 sps:$4 sm:$0xff]  }
 0x119   : > { %v5119_v30 = vld [vmem:[%s6224_s18 + $0x240] ss:$16 sps:$4 sm:$0xff]   ;;  %v5124_v31 = vld [vmem:[%s6224_s18 + $0x64] ss:$16 sps:$4 sm:$0xff]  }
 0x11a   : > { %4864 = vmatpush1.bf16.msra.mxu0 %v4863_v36  ;;  %v1040_v36 = vld [vmem:[%s7354_s0 + $0x3c0] sm:$0xff] }
 0x11b   : > { %4900 = vmatpush1.bf16.msra.mxu1 %v4899_v37  ;;  %1322 = vmatprep.subr.mxu0 %v5579_v24  ;;  %v1041_v37 = vld [vmem:[%s7354_s0 + $0x3c8] sm:$0xff] }
 0x11c   : > { %1395 = vmatprep.subr.mxu1 %v5579_v24  ;;  %v4932_v45 = vpack.c.bf16 %v1041_v37, %v1040_v36  ;;  %v1109_v36 = vld [vmem:[%s7354_s0 + $0x5e8] sm:$0xff]  ;;  %v1110_v37 = vld [vmem:[%s7354_s0 + $0x5f0] sm:$0xff] }
 0x11e   : > { %4375 = vmatpush1.msk.msra.mxu0 %vm1124_vm1, %v994_v40  ;;  %v1066_v40 = vld [vmem:[%s7354_s0 + $0x490] sm:$0xff] }
 0x11f   : > { %4377 = vmatpush1.msk.msra.mxu1 %vm1124_vm1, %v1019_v43  ;;  %1339 = vmatmul.mubr.f32.vlgmr.msra.gmra.mrb[2].mxu0 %v6423_v29  ;;  %v1043_v43 = vld [vmem:[%s7354_s0 + $0x3d8] sm:$0xff]  ;;  %v4968_v48 = vpack.c.bf16 %v1066_v40, %v1065_v39  ;;  %v5031_v39 = vpack.c.bf16 %v1110_v37, %v1109_v36  ;;  %v1086_v40 = vld [vmem:[%s7354_s0 + $0x530] sm:$0xff] }
 0x120   : > { %4901 = vmatprep.subr.bf16.mxu0 %v5578_v14  ;;  %4937 = vmatprep.subr.bf16.mxu1 %v5578_v14  ;;  %v4935_v49 = vpack.c.bf16 %v1043_v43, %v1042_v42  ;;  %v1111_v42 = vld [vmem:[%s7354_s0 + $0x5f8] sm:$0xff]  ;;  %v1112_v43 = vld [vmem:[%s7354_s0 + $0x600] sm:$0xff] }
 0x121   : > { %1412 = vmatmul.mubr.f32.vlgmr.msra.gmra.mrb[2].mxu1 %v6423_v29  ;;  %4903 = vmatpush1.bf16.msra.mxu0 %v4902_v47  ;;  %v1026_v29 = vld [vmem:[%s7354_s0 + $0x350] sm:$0xff]  ;;  %v1068_v47 = vld [vmem:[%s7354_s0 + $0x4a0] sm:$0xff] }
 0x122   : > { %4939 = vmatpush1.bf16.msra.mxu1 %v4938_v50  ;;  %4904 = vmatprep.subr.bf16.mxu0 %v5578_v14  ;;  %v4911_v63 = vpack.c.bf16 %v1027_v57, %v1026_v29  ;;  %v4971_v50 = vpack.c.bf16 %v1068_v47, %v1067_v46  ;;  %v4974_v29 = vpack.c.bf16 %v1071_v52, %v1070_v51  ;;  %v1088_v47 = vld [vmem:[%s7354_s0 + $0x540] sm:$0xff] }
 0x123   : > { %4940 = vmatprep.subr.bf16.mxu1 %v5578_v14  ;;  %4380 = vmatprep.mubr.msk.f32.mxu0 %vm1120_vm0, %v6303_v44  ;;  %v5010_v57 = vpack.c.bf16 %v1096_v55, %v1095_v54  ;;  %v5034_v46 = vpack.c.bf16 %v1112_v43, %v1111_v42  ;;  %v1091_v54 = vld [vmem:[%s7354_s0 + $0x558] sm:$0xff]  ;;  %v5133_v36 = vld [vmem:[%s6224_s18 + $0x284] ss:$16 sps:$4 sm:$0xff]   ;;  %v5128_v37 = vld [vmem:[%s6224_s18 + $0x80] ss:$16 sps:$4 sm:$0xff]  }
 0x124   : > { %4382 = vmatprep.mubr.msk.f32.mxu1 %vm1120_vm0, %v6303_v44  ;;  %v1028_v44 = vld [vmem:[%s7354_s0 + $0x360] sm:$0xff]  ;;  %v1115_v55 = vld [vmem:[%s7354_s0 + $0x618] sm:$0xff] }
 0x125   : > { %4906 = vmatpush1.bf16.msra.mxu0 %v4905_v53  ;;  %v4914_v5 = vpack.c.bf16 %v1029_v62, %v1028_v44  ;;  %v1044_v53 = vld [vmem:[%s7354_s0 + $0x3e0] sm:$0xf]  ;;  %v1098_v44 = vld [vmem:[%s7354_s0 + $0x590] sm:$0xff] }
 0x126   : > { %4942 = vmatpush1.bf16.msra.mxu1 %v4941_v56  ;;  %4907 = vmatprep.subr.bf16.mxu0 %v5578_v14  ;;  %v1069_v56 = vld [vmem:[%s7354_s0 + $0x4a8] sm:$0xf]  ;;  %v5137_v42 = vld [vmem:[%s6224_s18 + $0x2a0] ss:$16 sps:$4 sm:$0xff]   ;;  %v5142_v43 = vld [vmem:[%s6224_s18 + $0xc4] ss:$16 sps:$4 sm:$0xff]  }
 0x127   : > { %4943 = vmatprep.subr.bf16.mxu1 %v5578_v14 }
 0x129   : > { %4909 = vmatpush1.bf16.msra.mxu0 %v4908_v58  ;;  %v1072_v58 = vld [vmem:[%s7354_s0 + $0x4c0] sm:$0xff] }
 0x12a   : > { %4945 = vmatpush1.bf16.msra.mxu1 %v4944_v61  ;;  %4910 = vmatprep.subr.bf16.mxu0 %v5578_v14  ;;  %v1097_v61 = vld [vmem:[%s7354_s0 + $0x588] sm:$0xff]  ;;  %v4977_v62 = vpack.c.bf16 %v1073_v59, %v1072_v58  ;;  %v1092_v58 = vld [vmem:[%s7354_s0 + $0x560] sm:$0xff] }
 0x12b   : > { %4946 = vmatprep.subr.bf16.mxu1 %v5578_v14  ;;  %v1093_v59 = vld [vmem:[%s7354_s0 + $0x568] sm:$0xff] }
 0x12d   : > { %4912 = vmatpush1.bf16.msra.mxu0 %v4911_v63  ;;  %v5013_v63 = vpack.c.bf16 %v1098_v44, %v1097_v61  ;;  %v1117_v61 = vld [vmem:[%s7354_s0 + $0x628] sm:$0xff]  ;;  %v1118_v44 = vld [vmem:[%s7354_s0 + $0x630] sm:$0xff] }
 0x12e   : > { %4948 = vmatpush1.bf16.msra.mxu1 %v4947_v2  ;;  %4913 = vmatprep.subr.bf16.mxu0 %v5578_v14  ;;  %v1099_v2 = vld [vmem:[%s7354_s0 + $0x598] sm:$0xff] }
 0x12f   : > { %4949 = vmatprep.subr.bf16.mxu1 %v5578_v14  ;;  %v5016_v6 = vpack.c.bf16 %v1100_v3, %v1099_v2  ;;  %v1709_v2 = vld [vmem:[%s7356_s2] sm:$0xf] }
 0x131   : > { %4915 = vmatpush1.bf16.msra.mxu0 %v4914_v5  ;;  %v4980_v5 = vpack.c.bf16 %v1075_v1, %v1074_v0  ;;  %v1094_v0 = vld [vmem:[%s7354_s0 + $0x570] sm:$0xf]  ;;  %v1119_v1 = vld [vmem:[%s7354_s0 + $0x638] sm:$0xf] }
 0x132   : > { %4951 = vmatpush1.bf16.msra.mxu1 %v4950_v8  ;;  %4916 = vmatprep.subr.bf16.mxu0 %v5578_v14  ;;  %v1077_v8 = vld [vmem:[%s7354_s0 + $0x4e8] sm:$0xff] }
 0x133   : > { %4952 = vmatprep.subr.bf16.mxu1 %v5578_v14 }
 0x135   : > { %4918 = vmatpush1.bf16.msra.mxu0 %v4917_v11  ;;  %v4983_v11 = vpack.c.bf16 %v1077_v8, %v1076_v7 }
 0x136   : > { %4954 = vmatpush1.bf16.msra.mxu1 %v4953_v15  ;;  %4919 = vmatprep.subr.bf16.mxu0 %v5578_v14  ;;  %v1079_v15 = vld [vmem:[%s7354_s0 + $0x4f8] sm:$0xff] }
 0x137   : > { %4955 = vmatprep.subr.bf16.mxu1 %v5578_v14 }
 0x139   : > { %4921 = vmatpush1.bf16.msra.mxu0 %v4920_v18  ;;  %v4986_v18 = vpack.c.bf16 %v1079_v15, %v1078_v13 }
 0x13a   : > { %4957 = vmatpush1.bf16.msra.mxu1 %v4956_v21  ;;  %4922 = vmatprep.subr.bf16.mxu0 %v5578_v14  ;;  %v1081_v21 = vld [vmem:[%s7354_s0 + $0x508] sm:$0xff] }
 0x13b   : > { %4958 = vmatprep.subr.bf16.mxu1 %v5578_v14 }
 0x13d   : > { %4924 = vmatpush1.bf16.msra.mxu0 %v4923_v25  ;;  %v4989_v25 = vpack.c.bf16 %v1081_v21, %v1080_v20  ;;  %v5107_v20 = vld [vmem:[%s6224_s18 + $0x200] ss:$16 sps:$4 sm:$0xff]   ;;  %v5112_v21 = vld [vmem:[%s6224_s18 + $0x24] ss:$16 sps:$4 sm:$0xff]  }
 0x13e   : > { %4960 = vmatpush1.bf16.msra.mxu1 %v4959_v28  ;;  %4925 = vmatprep.subr.bf16.mxu0 %v5578_v14  ;;  %v1083_v28 = vld [vmem:[%s7354_s0 + $0x518] sm:$0xff] }
 0x13f   : > { %4961 = vmatprep.subr.bf16.mxu1 %v5578_v14 }
 0x141   : > { %4927 = vmatpush1.bf16.msra.mxu0 %v4926_v32  ;;  %v4992_v32 = vpack.c.bf16 %v1083_v28, %v1082_v27  ;;  %v5121_v27 = vld [vmem:[%s6224_s18 + $0x244] ss:$16 sps:$4 sm:$0xff]   ;;  %v5116_v28 = vld [vmem:[%s6224_s18 + $0x40] ss:$16 sps:$4 sm:$0xff]  }
 0x142   : > { %4963 = vmatpush1.bf16.msra.mxu1 %v4962_v34  ;;  %4928 = vmatprep.subr.bf16.mxu0 %v5578_v14  ;;  %v1084_v34 = vld [vmem:[%s7354_s0 + $0x520] sm:$0xff] }
 0x143   : > { %4964 = vmatprep.subr.bf16.mxu1 %v5578_v14 }
 0x145   : > { %4930 = vmatpush1.bf16.msra.mxu0 %v4929_v38  ;;  %v4995_v38 = vpack.c.bf16 %v1085_v35, %v1084_v34  ;;  %v5125_v34 = vld [vmem:[%s6224_s18 + $0x260] ss:$16 sps:$4 sm:$0xff]   ;;  %v5130_v35 = vld [vmem:[%s6224_s18 + $0x84] ss:$16 sps:$4 sm:$0xff]  }
 0x146   : > { %4966 = vmatpush1.bf16.msra.mxu1 %v4965_v41  ;;  %4931 = vmatprep.subr.bf16.mxu0 %v5578_v14  ;;  %v1087_v41 = vld [vmem:[%s7354_s0 + $0x538] sm:$0xff] }
 0x147   : > { %4967 = vmatprep.subr.bf16.mxu1 %v5578_v14 }
 0x149   : > { %4933 = vmatpush1.bf16.msra.mxu0 %v4932_v45  ;;  %v4998_v45 = vpack.c.bf16 %v1087_v41, %v1086_v40  ;;  %v5139_v40 = vld [vmem:[%s6224_s18 + $0x2a4] ss:$16 sps:$4 sm:$0xff]   ;;  %v5134_v41 = vld [vmem:[%s6224_s18 + $0xa0] ss:$16 sps:$4 sm:$0xff]  }
 0x14a   : > { %4969 = vmatpush1.bf16.msra.mxu1 %v4968_v48  ;;  %4934 = vmatprep.subr.bf16.mxu0 %v5578_v14  ;;  %v1089_v48 = vld [vmem:[%s7354_s0 + $0x548] sm:$0xff] }
 0x14b   : > { %4970 = vmatprep.subr.bf16.mxu1 %v5578_v14  ;;  %v5001_v51 = vpack.c.bf16 %v1089_v48, %v1088_v47  ;;  %v5140_v48 = vld [vmem:[%s6224_s18 + $0xc0] ss:$16 sps:$4 sm:$0xff]  }
 0x14d   : > { %4936 = vmatpush1.bf16.msra.mxu0 %v4935_v49  ;;  %v1113_v49 = vld [vmem:[%s7354_s0 + $0x608] sm:$0xff] }
 0x14e   : > { %4972 = vmatpush1.bf16.msra.mxu1 %v4971_v50  ;;  %1468 = vmatprep.subr.mxu0 %v5579_v24  ;;  %v1114_v50 = vld [vmem:[%s7354_s0 + $0x610] sm:$0xff] }
 0x14f   : > { %1541 = vmatprep.subr.mxu1 %v5579_v24  ;;  %v5037_v52 = vpack.c.bf16 %v1114_v50, %v1113_v49  ;;  %v5143_v49 = vld [vmem:[%s6224_s18 + $0x2c0] ss:$16 sps:$4 sm:$0xff]  }
 0x151   : > { %4379 = vmatpush1.msk.msra.mxu0 %vm1124_vm1, %v1044_v53  ;;  %v1090_v53 = vld [vmem:[%s7354_s0 + $0x550] sm:$0xff] }
 0x152   : > { %4381 = vmatpush1.msk.msra.mxu1 %vm1124_vm1, %v1069_v56  ;;  %1485 = vmatmul.mubr.f32.vlgmr.msra.gmra.mrb[4].mxu0 %v6802_v60  ;;  %v1116_v56 = vld [vmem:[%s7354_s0 + $0x620] sm:$0xff] }
 0x153   : > { %4973 = vmatprep.subr.bf16.mxu0 %v5578_v14  ;;  %5009 = vmatprep.subr.bf16.mxu1 %v5578_v14 }
 0x154   : > { %1558 = vmatmul.mubr.f32.vlgmr.msra.gmra.mrb[4].mxu1 %v6802_v60  ;;  %4975 = vmatpush1.bf16.msra.mxu0 %v4974_v29  ;;  %v5004_v29 = vpack.c.bf16 %v1091_v54, %v1090_v53  ;;  %v5151_v53 = vld [vmem:[%s6224_s18 + $0x2e4] ss:$16 sps:$4 sm:$0xff]  }
 0x155   : > { %5011 = vmatpush1.bf16.msra.mxu1 %v5010_v57  ;;  %4976 = vmatprep.subr.bf16.mxu0 %v5578_v14  ;;  %v5040_v57 = vpack.c.bf16 %v1116_v56, %v1115_v55 }
 0x156   : > { %5012 = vmatprep.subr.bf16.mxu1 %v5578_v14  ;;  %4384 = vmatprep.mubr.msk.f32.mxu0 %vm1120_vm0, %v5489_v4 }
 0x157   : > { %4386 = vmatprep.mubr.msk.f32.mxu1 %vm1120_vm0, %v5489_v4 }
 0x158   : > { %4978 = vmatpush1.bf16.msra.mxu0 %v4977_v62  ;;  %v5007_v62 = vpack.c.bf16 %v1093_v59, %v1092_v58  ;;  %v5154_v58 = vld [vmem:[%s6224_s18 + $0x104] ss:$16 sps:$4 sm:$0xff]  }
 0x159   : > { %5014 = vmatpush1.bf16.msra.mxu1 %v5013_v63  ;;  %4979 = vmatprep.subr.bf16.mxu0 %v5578_v14  ;;  %v5043_v63 = vpack.c.bf16 %v1118_v44, %v1117_v61  ;;  %v5157_v59 = vld [vmem:[%s6224_s18 + $0x304] ss:$16 sps:$4 sm:$0xff]  }
 0x15a   : > { %5015 = vmatprep.subr.bf16.mxu1 %v5578_v14 }
 0x15c   : > { %4981 = vmatpush1.bf16.msra.mxu0 %v4980_v5 }
 0x15d   : > { %5017 = vmatpush1.bf16.msra.mxu1 %v5016_v6  ;;  %4982 = vmatprep.subr.bf16.mxu0 %v5578_v14 }
 0x15e   : > { %5018 = vmatprep.subr.bf16.mxu1 %v5578_v14 }
 0x160   : > { %4984 = vmatpush1.bf16.msra.mxu0 %v4983_v11 }
 0x161   : > { %5020 = vmatpush1.bf16.msra.mxu1 %v5019_v12  ;;  %4985 = vmatprep.subr.bf16.mxu0 %v5578_v14 }
 0x162   : > { %5021 = vmatprep.subr.bf16.mxu1 %v5578_v14 }
 0x164   : > { %4987 = vmatpush1.bf16.msra.mxu0 %v4986_v18  ;;  %v5109_v18 = vld [vmem:[%s6224_s18 + $0x204] ss:$16 sps:$4 sm:$0xff]  }
 0x165   : > { %5023 = vmatpush1.bf16.msra.mxu1 %v5022_v19  ;;  %4988 = vmatprep.subr.bf16.mxu0 %v5578_v14  ;;  %v5104_v19 = vld [vmem:[%s6224_s18] ss:$16 sps:$4 sm:$0xff]  }
 0x166   : > { %5024 = vmatprep.subr.bf16.mxu1 %v5578_v14 }
 0x168   : > { %4990 = vmatpush1.bf16.msra.mxu0 %v4989_v25  ;;  %v5113_v25 = vld [vmem:[%s6224_s18 + $0x220] ss:$16 sps:$4 sm:$0xff]  }
 0x169   : > { %5026 = vmatpush1.bf16.msra.mxu1 %v5025_v26  ;;  %4991 = vmatprep.subr.bf16.mxu0 %v5578_v14  ;;  %v5118_v26 = vld [vmem:[%s6224_s18 + $0x44] ss:$16 sps:$4 sm:$0xff]  }
 0x16a   : > { %5027 = vmatprep.subr.bf16.mxu1 %v5578_v14 }
 0x16c   : > { %4993 = vmatpush1.bf16.msra.mxu0 %v4992_v32  ;;  %v5127_v32 = vld [vmem:[%s6224_s18 + $0x264] ss:$16 sps:$4 sm:$0xff]  }
 0x16d   : > { %5029 = vmatpush1.bf16.msra.mxu1 %v5028_v33  ;;  %4994 = vmatprep.subr.bf16.mxu0 %v5578_v14  ;;  %v5122_v33 = vld [vmem:[%s6224_s18 + $0x60] ss:$16 sps:$4 sm:$0xff]  }
 0x16e   : > { %5030 = vmatprep.subr.bf16.mxu1 %v5578_v14 }
 0x170   : > { %4996 = vmatpush1.bf16.msra.mxu0 %v4995_v38  ;;  %v5131_v38 = vld [vmem:[%s6224_s18 + $0x280] ss:$16 sps:$4 sm:$0xff]  }
 0x171   : > { %5032 = vmatpush1.bf16.msra.mxu1 %v5031_v39  ;;  %4997 = vmatprep.subr.bf16.mxu0 %v5578_v14  ;;  %v5136_v39 = vld [vmem:[%s6224_s18 + $0xa4] ss:$16 sps:$4 sm:$0xff]  }
 0x172   : > { %5033 = vmatprep.subr.bf16.mxu1 %v5578_v14 }
 0x174   : > { %4999 = vmatpush1.bf16.msra.mxu0 %v4998_v45  ;;  %v5145_v45 = vld [vmem:[%s6224_s18 + $0x2c4] ss:$16 sps:$4 sm:$0xff]  }
 0x175   : > { %5035 = vmatpush1.bf16.msra.mxu1 %v5034_v46  ;;  %5000 = vmatprep.subr.bf16.mxu0 %v5578_v14  ;;  %v7013_v46 = vld [vmem:[%s7357_s3] ss:$0 sm:$0xff] }
 0x176   : > { %5036 = vmatprep.subr.bf16.mxu1 %v5578_v14 }
 0x178   : > { %5002 = vmatpush1.bf16.msra.mxu0 %v5001_v51 }
 0x179   : > { %5038 = vmatpush1.bf16.msra.mxu1 %v5037_v52  ;;  %5003 = vmatprep.subr.bf16.mxu0 %v5578_v14  ;;  %v5148_v52 = vld [vmem:[%s6224_s18 + $0xe4] ss:$16 sps:$4 sm:$0xff]  }
 0x17a   : > { %5039 = vmatprep.subr.bf16.mxu1 %v5578_v14 }
 0x17c   : > { %5005 = vmatpush1.bf16.msra.mxu0 %v5004_v29  ;;  %v5146_v29 = vld [vmem:[%s6224_s18 + $0xe0] ss:$16 sps:$4 sm:$0xff]  }
 0x17d   : > { %5041 = vmatpush1.bf16.msra.mxu1 %v5040_v57  ;;  %5006 = vmatprep.subr.bf16.mxu0 %v5578_v14  ;;  %v5149_v57 = vld [vmem:[%s6224_s18 + $0x2e0] ss:$16 sps:$4 sm:$0xff]  }
 0x17e   : > { %5042 = vmatprep.subr.bf16.mxu1 %v5578_v14 }
 0x180   : > { %5008 = vmatpush1.bf16.msra.mxu0 %v5007_v62  ;;  %v5152_v62 = vld [vmem:[%s6224_s18 + $0x100] ss:$16 sps:$4 sm:$0xff]  }
 0x181   : > { %5044 = vmatpush1.bf16.msra.mxu1 %v5043_v63  ;;  %1614 = vmatprep.subr.mxu0 %v5579_v24  ;;  %v5155_v63 = vld [vmem:[%s6224_s18 + $0x300] ss:$16 sps:$4 sm:$0xff]  }
 0x182   : > { %1687 = vmatprep.subr.mxu1 %v5579_v24 }
 0x184   : > { %4383 = vmatpush1.msk.msra.mxu0 %vm1124_vm1, %v1094_v0  ;;  %v5160_v0 = vld [vmem:[%s6224_s18 + $0x124] ss:$16 sps:$4 sm:$0xff]  }
 0x185   : > { %4385 = vmatpush1.msk.msra.mxu1 %vm1124_vm1, %v1119_v1  ;;  %1631 = vmatmul.mubr.f32.vlgmr.msra.gmra.mrb[6].mxu0 %v6802_v60  ;;  %v5163_v1 = vld [vmem:[%s6224_s18 + $0x324] ss:$16 sps:$4 sm:$0xff]  }
 0x186   : > { %1704 = vmatmul.mubr.f32.vlgmr.msra.gmra.mrb[6].mxu1 %v6802_v60  ;;  %4743 = vmatprep.subr.msk.mxu0 %vm1124_vm1, %v1709_v2 }
 0x187   : > { %4744 = vmatpush3.msk.msra.mxu0 %vm1124_vm1, %v1709_v2  ;;  %3558 = vmatprep.subr.bf16.mxu1 %v5106_v17  ;;  %v5158_v2 = vld [vmem:[%s6224_s18 + $0x120] ss:$16 sps:$4 sm:$0xff]  }
 0x188   : > { %3599 = vmatprep.subr.bf16.mxu0 %v5109_v18  ;;  %3559 = vmatpush1.bf16.msra.mxu1 %v5104_v19  ;;  %v5185_v17 = vld [vmem:[%s6224_s18 + $0x3a0] ss:$16 sps:$4 sm:$0xff]   ;;  %v5190_v18 = vld [vmem:[%s6224_s18 + $0x1c4] ss:$16 sps:$4 sm:$0xff]  }
 0x189   : > { %3560 = vmatprep.subr.bf16.mxu1 %v5112_v21  ;;  %v5193_v19 = vld [vmem:[%s6224_s18 + $0x3c4] ss:$16 sps:$4 sm:$0xff]   ;;  %v5191_v21 = vld [vmem:[%s6224_s18 + $0x3c0] ss:$16 sps:$4 sm:$0xff]  }
 0x18c   : > { %3561 = vmatpush1.bf16.msra.mxu1 %v5110_v23  ;;  %v5199_v23 = vld [vmem:[%s6224_s18 + $0x3e4] ss:$16 sps:$4 sm:$0xff]  }
 0x18d   : > { %3562 = vmatprep.subr.bf16.mxu1 %v5118_v26  ;;  %v5197_v26 = vld [vmem:[%s6224_s18 + $0x3e0] ss:$16 sps:$4 sm:$0xff]  }
 0x190   : > { %3563 = vmatpush1.bf16.msra.mxu1 %v5116_v28  ;;  %v5205_v28 = vld [vmem:[%s6224_s18 + $0x604] ss:$16 sps:$4 sm:$0xff]  }
 0x191   : > { %3564 = vmatprep.subr.bf16.mxu1 %v5124_v31 }
 0x194   : > { %3565 = vmatpush1.bf16.msra.mxu1 %v5122_v33 }
 0x195   : > { %3566 = vmatprep.subr.bf16.mxu1 %v5130_v35 }
 0x198   : > { %3567 = vmatpush1.bf16.msra.mxu1 %v5128_v37 }
 0x199   : > { %3568 = vmatprep.subr.bf16.mxu1 %v5136_v39 }
 0x19c   : > { %3569 = vmatpush1.bf16.msra.mxu1 %v5134_v41 }
 0x19d   : > { %3570 = vmatprep.subr.bf16.mxu1 %v5142_v43 }
 0x1a0   : > { %3571 = vmatpush1.bf16.msra.mxu1 %v5140_v48 }
 0x1a1   : > { %3572 = vmatprep.subr.bf16.mxu1 %v5148_v52 }
 0x1a4   : > { %3573 = vmatpush1.bf16.msra.mxu1 %v5146_v29 }
 0x1a5   : > { %3574 = vmatprep.subr.bf16.mxu1 %v5154_v58 }
 0x1a8   : > { %3575 = vmatpush1.bf16.msra.mxu1 %v5152_v62 }
 0x1a9   : > { %3576 = vmatprep.subr.bf16.mxu1 %v5160_v0 }
 0x1ac   : > { %3577 = vmatpush1.bf16.msra.mxu1 %v5158_v2 }
 0x1bf   : > { %v1194_v14 = vpop.f32.mrb[0].mxu0 }
 0x1c0   : > { %v1196_v24 = vpop.f32.mrb[1].mxu0  ;;  %4745 = vmatprep.mubr.msk.f32.mxu0 %vm1717_vm2, %v1194_v14  ;;  %v5161_v14 = vld [vmem:[%s6224_s18 + $0x320] ss:$16 sps:$4 sm:$0xff]  }
 0x1c1   : > { %v1267_v3 = vpop.f32.mrb[0].mxu1  ;;  %v5166_v24 = vld [vmem:[%s6224_s18 + $0x144] ss:$16 sps:$4 sm:$0xff]  }
 0x1c2   : > { %v1269_v4 = vpop.f32.mrb[1].mxu1  ;;  %4746 = vmatmul.mubr.msk.f32.vlgmr.msra.gmra.mrb[8].mxu0 %vm1717_vm2, %v1267_v3  ;;  %v5169_v3 = vld [vmem:[%s6224_s18 + $0x344] ss:$16 sps:$4 sm:$0xff]   ;;  %3578 = vmatprep.subr.bf16.mxu1 %v5166_v24 }
 0x1c3   : > { %3600 = vmatpush1.bf16.msra.mxu0 %v5107_v20  ;;  %v5164_v4 = vld [vmem:[%s6224_s18 + $0x140] ss:$16 sps:$4 sm:$0xff]  }
 0x1c4   : > { %3601 = vmatprep.subr.bf16.mxu0 %v5115_v22  ;;  %3579 = vmatpush1.bf16.msra.mxu1 %v5164_v4  ;;  %v5188_v20 = vld [vmem:[%s6224_s18 + $0x1c0] ss:$16 sps:$4 sm:$0xff]   ;;  %v5196_v22 = vld [vmem:[%s6224_s18 + $0x1e4] ss:$16 sps:$4 sm:$0xff]  }
 0x1c7   : > { %3602 = vmatpush1.bf16.msra.mxu0 %v5113_v25  ;;  %v5194_v25 = vld [vmem:[%s6224_s18 + $0x1e0] ss:$16 sps:$4 sm:$0xff]  }
 0x1c8   : > { %3603 = vmatprep.subr.bf16.mxu0 %v5121_v27  ;;  %v5202_v27 = vld [vmem:[%s6224_s18 + $0x404] ss:$16 sps:$4 sm:$0xff]  }
 0x1cb   : > { %3604 = vmatpush1.bf16.msra.mxu0 %v5119_v30  ;;  %v5580_v30 = vmov 1966171168  }
 0x1cc   : > { %3605 = vmatprep.subr.bf16.mxu0 %v5127_v32  ;;  %v1875_v31 = vunpack.c.l.s4 %v5580_v30  ;;  %v1877_v32 = vlaneseq }
 0x1ce   : > { %v1876_v33 = vunpack.c.0.s8 %v1875_v31  ;;  %v5200_v31 = vld [vmem:[%s6224_s18 + $0x400] ss:$16 sps:$4 sm:$0xff]  }
 0x1cf   : > { %3606 = vmatpush1.bf16.msra.mxu0 %v5125_v34  ;;  %v1878_v34 = vshrl.u32 %v1877_v32, 7  ;;  %v5203_v32 = vld [vmem:[%s6224_s18 + $0x600] ss:$16 sps:$4 sm:$0xff]  }
 0x1d0   : > { %3607 = vmatprep.subr.bf16.mxu0 %v5133_v36 }
 0x1d3   : > { %3608 = vmatpush1.bf16.msra.mxu0 %v5131_v38 }
 0x1d4   : > { %3609 = vmatprep.subr.bf16.mxu0 %v5139_v40  ;;  %v1879_v40 = vsub.s32 %v1876_v33, %v1878_v34  ;;  %v5208_v34 = vld [vmem:[%s6224_s18 + $0x424] ss:$16 sps:$4 sm:$0xff]  }
 0x1d7   : > { %3610 = vmatpush1.bf16.msra.mxu0 %v5137_v42 }
 0x1d8   : > { %3611 = vmatprep.subr.bf16.mxu0 %v5145_v45 }
 0x1db   : > { %3612 = vmatpush1.bf16.msra.mxu0 %v5143_v49 }
 0x1dc   : > { %3613 = vmatprep.subr.bf16.mxu0 %v5151_v53 }
 0x1df   : > { %3614 = vmatpush1.bf16.msra.mxu0 %v5149_v57 }
 0x1e0   : > { %3615 = vmatprep.subr.bf16.mxu0 %v5157_v59 }
 0x1e3   : > { %3616 = vmatpush1.bf16.msra.mxu0 %v5155_v63 }
 0x1e4   : > { %3617 = vmatprep.subr.bf16.mxu0 %v5163_v1 }
 0x1e7   : > { %3618 = vmatpush1.bf16.msra.mxu0 %v5161_v14 }
 0x1e8   : > { %3619 = vmatprep.subr.bf16.mxu0 %v5169_v3 }
 0x1f2   : > { %v1340_v5 = vpop.f32.mrb[2].mxu0 }
 0x1f3   : > { %v1342_v6 = vpop.f32.mrb[3].mxu0  ;;  %4748 = vmatprep.mubr.msk.f32.mxu0 %vm1717_vm2, %v1340_v5  ;;  %v5167_v5 = vld [vmem:[%s6224_s18 + $0x340] ss:$16 sps:$4 sm:$0xff]  }
 0x1f4   : > { %v1413_v7 = vpop.f32.mrb[2].mxu1  ;;  %v5172_v6 = vld [vmem:[%s6224_s18 + $0x164] ss:$16 sps:$4 sm:$0xff]   ;;  %3620 = vmatpush1.bf16.msra.mxu0 %v5167_v5 }
 0x1f5   : > { %v1415_v60 = vpop.f32.mrb[3].mxu1  ;;  %4749 = vmatmul.mubr.msk.f32.gmra.mrb[10].mxu0 %vm1717_vm2, %v1413_v7  ;;  %v5175_v7 = vld [vmem:[%s6224_s18 + $0x364] ss:$16 sps:$4 sm:$0xff]   ;;  %3580 = vmatprep.subr.bf16.mxu1 %v5172_v6 }
 0x1f6   : > { %v5170_v60 = vld [vmem:[%s6224_s18 + $0x160] ss:$16 sps:$4 sm:$0xff]   ;;  %3621 = vmatprep.subr.bf16.mxu0 %v5175_v7 }
 0x1f7   : > { %3581 = vmatpush1.bf16.msra.mxu1 %v5170_v60 }
 0x225   : > { %v1486_v8 = vpop.f32.mrb[4].mxu0 }
 0x226   : > { %v1488_v9 = vpop.f32.mrb[5].mxu0  ;;  %4751 = vmatprep.mubr.msk.f32.mxu0 %vm1717_vm2, %v1486_v8  ;;  %v5173_v8 = vld [vmem:[%s6224_s18 + $0x360] ss:$16 sps:$4 sm:$0xff]  }
 0x227   : > { %v1559_v10 = vpop.f32.mrb[4].mxu1  ;;  %3622 = vmatpush1.bf16.msra.mxu0 %v5173_v8  ;;  %v5178_v9 = vld [vmem:[%s6224_s18 + $0x184] ss:$16 sps:$4 sm:$0xff]  }
 0x228   : > { %v1561_v11 = vpop.f32.mrb[5].mxu1  ;;  %4752 = vmatmul.mubr.msk.f32.gmra.mrb[12].mxu0 %vm1717_vm2, %v1559_v10  ;;  %v5181_v10 = vld [vmem:[%s6224_s18 + $0x384] ss:$16 sps:$4 sm:$0xff]   ;;  %3582 = vmatprep.subr.bf16.mxu1 %v5178_v9 }
 0x229   : > { %v5176_v11 = vld [vmem:[%s6224_s18 + $0x180] ss:$16 sps:$4 sm:$0xff]   ;;  %3623 = vmatprep.subr.bf16.mxu0 %v5181_v10 }
 0x22a   : > { %3583 = vmatpush1.bf16.msra.mxu1 %v5176_v11 }
 0x258   : > { %v1632_v12 = vpop.f32.mrb[6].mxu0 }
 0x259   : > { %v1705_v13 = vpop.f32.mrb[6].mxu1  ;;  %v1634_v15 = vpop.f32.mrb[7].mxu0  ;;  %4754 = vmatprep.mubr.msk.f32.mxu0 %vm1717_vm2, %v1632_v12  ;;  %v5179_v12 = vld [vmem:[%s6224_s18 + $0x380] ss:$16 sps:$4 sm:$0xff]  }
 0x25a   : > { %v1707_v16 = vpop.f32.mrb[7].mxu1  ;;  %4755 = vmatmul.mubr.msk.f32.gmra.mrb[14].mxu0 %vm1717_vm2, %v1705_v13  ;;  %v5184_v13 = vld [vmem:[%s6224_s18 + $0x1a4] ss:$16 sps:$4 sm:$0xff]  }
 0x25b   : > { %3624 = vmatpush1.bf16.msra.mxu0 %v5179_v12  ;;  %v5187_v15 = vld [vmem:[%s6224_s18 + $0x3a4] ss:$16 sps:$4 sm:$0xff]   ;;  %v5182_v16 = vld [vmem:[%s6224_s18 + $0x1a0] ss:$16 sps:$4 sm:$0xff]   ;;  %3584 = vmatprep.subr.bf16.mxu1 %v5184_v13 }
 0x25c   : > { %3625 = vmatprep.subr.bf16.mxu0 %v5187_v15  ;;  %3585 = vmatpush1.bf16.msra.mxu1 %v5182_v16 }
 0x25d   : > { %3586 = vmatprep.subr.bf16.mxu1 %v5190_v18 }
 0x25f   : > { %3626 = vmatpush1.bf16.msra.mxu0 %v5185_v17 }
 0x260   : > { %3627 = vmatprep.subr.bf16.mxu0 %v5193_v19  ;;  %3587 = vmatpush1.bf16.msra.mxu1 %v5188_v20 }
 0x261   : > { %3588 = vmatprep.subr.bf16.mxu1 %v5196_v22 }
 0x263   : > { %3628 = vmatpush1.bf16.msra.mxu0 %v5191_v21 }
 0x264   : > { %3629 = vmatprep.subr.bf16.mxu0 %v5199_v23  ;;  %3589 = vmatpush1.bf16.msra.mxu1 %v5194_v25 }
 0x265   : > { %3640 = vmatprep.subr.bf16.mxu1 %v5202_v27 }
 0x267   : > { %3630 = vmatpush1.bf16.msra.mxu0 %v5197_v26 }
 0x268   : > { %3681 = vmatprep.subr.bf16.mxu0 %v5205_v28 }
 0x295   : > { %v4747_v47 = vpop.f32.mrb[8].mxu0 }
 0x296   : > { %v1817_v50 = vadd.f32 %v4747_v47, %v7013_v46  ;;  %v1811_v51 = vpop.f32.mrb[9].mxu0 }
 0x297   : > { %v1812_v54 = vadd.f32 %v7013_v46, %v1811_v51 }
 0x298   : > { %v1851_v55 = vmax.f32 %v1817_v50, 0.0 }
 0x299   : > { %v1850_v56 = vmax.f32 %v1812_v54, 0.0 }
 0x29b   : > { %v7025_v61 = vcombine.low %v1850_v56, %v1851_v55  ;;  %v7027_v44 = vcombine.high %v1850_v56, %v1851_v55 }
 0x29d   : > { %v1880_v45 = vrot.slane %v7025_v61, %v1879_v40  ;;  %v1887_v47 = vrot.slane %v7027_v44, %v1879_v40 }
 0x2c8   : > { %v4750_v35 = vpop.f32.mrb[10].mxu0 }
 0x2c9   : > { %v1827_v36 = vadd.f32 %v4750_v35, %v7013_v46  ;;  %v1821_v37 = vpop.f32.mrb[11].mxu0  ;;  %v5211_v35 = vld [vmem:[%s6224_s18 + $0x624] ss:$16 sps:$4 sm:$0xff]  }
 0x2ca   : > { %v1822_v38 = vadd.f32 %v7013_v46, %v1821_v37 }
 0x2cb   : > { %v1853_v39 = vmax.f32 %v1827_v36, 0.0 }
 0x2cc   : > { %v1852_v41 = vmax.f32 %v1822_v38, 0.0  ;;  %v5206_v38 = vld [vmem:[%s6224_s18 + $0x420] ss:$16 sps:$4 sm:$0xff]  }
 0x2ce   : > { %v1868_v42 = vcombine.low %v1852_v41, %v1853_v39  ;;  %v1869_v43 = vcombine.high %v1852_v41, %v1853_v39  ;;  %v5209_v39 = vld [vmem:[%s6224_s18 + $0x620] ss:$16 sps:$4 sm:$0xff]   ;;  %v5217_v41 = vld [vmem:[%s6224_s18 + $0x644] ss:$16 sps:$4 sm:$0xff]  }
 0x2d0   : > { %v1894_v48 = vrot.slane %v1868_v42, %v1879_v40  ;;  %v1901_v49 = vrot.slane %v1869_v43, %v1879_v40  ;;  %v5212_v42 = vld [vmem:[%s6224_s18 + $0x440] ss:$16 sps:$4 sm:$0xff]  }
 0x2d1   : > { %v5215_v43 = vld [vmem:[%s6224_s18 + $0x640] ss:$16 sps:$4 sm:$0xff]  }
 0x2d2   : > { %v1930_v50 = vcombine.low %v1880_v45, %v1894_v48  ;;  %v1931_v51 = vcombine.high %v1880_v45, %v1894_v48  ;;  %v1932_v52 = vcombine.low %v1887_v47, %v1901_v49  ;;  %v1933_v53 = vcombine.high %v1887_v47, %v1901_v49  ;;  %v5220_v45 = vld [vmem:[%s6224_s18 + $0x464] ss:$16 sps:$4 sm:$0xff]   ;;  %v5218_v48 = vld [vmem:[%s6224_s18 + $0x460] ss:$16 sps:$4 sm:$0xff]  }
 0x2d3   : > { %v5223_v47 = vld [vmem:[%s6224_s18 + $0x664] ss:$16 sps:$4 sm:$0xff]   ;;  %v5221_v49 = vld [vmem:[%s6224_s18 + $0x660] ss:$16 sps:$4 sm:$0xff]  }
 0x2d4   : > { %v1944_v10 = vrot.slane %v1930_v50, %v1879_v40  ;;  %v1958_v11 = vrot.slane %v1931_v51, %v1879_v40  ;;  %v1951_v16 = vrot.slane %v1932_v52, %v1879_v40  ;;  %v1965_v17 = vrot.slane %v1933_v53, %v1879_v40  ;;  %v5226_v50 = vld [vmem:[%s6224_s18 + $0x484] ss:$16 sps:$4 sm:$0xff]   ;;  %v5224_v52 = vld [vmem:[%s6224_s18 + $0x480] ss:$16 sps:$4 sm:$0xff]  }
 0x2d5   : > { %v5229_v51 = vld [vmem:[%s6224_s18 + $0x684] ss:$16 sps:$4 sm:$0xff]   ;;  %v5227_v53 = vld [vmem:[%s6224_s18 + $0x680] ss:$16 sps:$4 sm:$0xff]  }
 0x2fb   : > { %v4753_v54 = vpop.f32.mrb[12].mxu0 }
 0x2fc   : > { %v1837_v55 = vadd.f32 %v4753_v54, %v7013_v46  ;;  %v1831_v56 = vpop.f32.mrb[13].mxu0  ;;  %v5232_v54 = vld [vmem:[%s6224_s18 + $0x4a4] ss:$16 sps:$4 sm:$0xff]  }
 0x2fd   : > { %v1832_v29 = vadd.f32 %v7013_v46, %v1831_v56  ;;  %v5230_v56 = vld [vmem:[%s6224_s18 + $0x4a0] ss:$16 sps:$4 sm:$0xff]  }
 0x2fe   : > { %v1855_v57 = vmax.f32 %v1837_v55, 0.0  ;;  %v5235_v55 = vld [vmem:[%s6224_s18 + $0x6a4] ss:$16 sps:$4 sm:$0xff]  }
 0x2ff   : > { %v1854_v58 = vmax.f32 %v1832_v29, 0.0  ;;  %v5233_v29 = vld [vmem:[%s6224_s18 + $0x6a0] ss:$16 sps:$4 sm:$0xff]  }
 0x301   : > { %v1870_v59 = vcombine.low %v1854_v58, %v1855_v57  ;;  %v1871_v62 = vcombine.high %v1854_v58, %v1855_v57  ;;  %v5238_v57 = vld [vmem:[%s6224_s18 + $0x4c4] ss:$16 sps:$4 sm:$0xff]  }
 0x302   : > { %v5241_v58 = vld [vmem:[%s6224_s18 + $0x6c4] ss:$16 sps:$4 sm:$0xff]  }
 0x303   : > { %v1908_v3 = vrot.slane %v1870_v59, %v1879_v40  ;;  %v1915_v4 = vrot.slane %v1871_v62, %v1879_v40  ;;  %v5236_v59 = vld [vmem:[%s6224_s18 + $0x4c0] ss:$16 sps:$4 sm:$0xff]  }
 0x304   : > { %v5239_v62 = vld [vmem:[%s6224_s18 + $0x6c0] ss:$16 sps:$4 sm:$0xff]  }
 0x32d   : > { %v4756_v63 = vpop.f32.mrb[14].mxu0 }
 0x32e   : > { %v1847_v61 = vadd.f32 %v4756_v63, %v7013_v46  ;;  %v1841_v44 = vpop.f32.mrb[15].mxu0  ;;  %v5244_v63 = vld [vmem:[%s6224_s18 + $0x4e4] ss:$16 sps:$4 sm:$0xff]  }
 0x32f   : > { %v1842_v0 = vadd.f32 %v7013_v46, %v1841_v44  ;;  %v5242_v44 = vld [vmem:[%s6224_s18 + $0x4e0] ss:$16 sps:$4 sm:$0xff]  }
 0x330   : > { %v1857_v1 = vmax.f32 %v1847_v61, 0.0  ;;  %v5247_v61 = vld [vmem:[%s6224_s18 + $0x6e4] ss:$16 sps:$4 sm:$0xff]  }
 0x331   : > { %v1856_v2 = vmax.f32 %v1842_v0, 0.0  ;;  %v5245_v0 = vld [vmem:[%s6224_s18 + $0x6e0] ss:$16 sps:$4 sm:$0xff]  }
 0x333   : > { %v1872_v14 = vcombine.low %v1856_v2, %v1857_v1  ;;  %v1873_v24 = vcombine.high %v1856_v2, %v1857_v1  ;;  %v5250_v1 = vld [vmem:[%s6224_s18 + $0x504] ss:$16 sps:$4 sm:$0xff]  }
 0x334   : > { %v5253_v2 = vld [vmem:[%s6224_s18 + $0x704] ss:$16 sps:$4 sm:$0xff]  }
 0x335   : > { %v1922_v5 = vrot.slane %v1872_v14, %v1879_v40  ;;  %v1929_v6 = vrot.slane %v1873_v24, %v1879_v40  ;;  %v5248_v14 = vld [vmem:[%s6224_s18 + $0x500] ss:$16 sps:$4 sm:$0xff]  }
 0x336   : > { %v5251_v24 = vld [vmem:[%s6224_s18 + $0x700] ss:$16 sps:$4 sm:$0xff]  }
 0x337   : > { %v1934_v7 = vcombine.low %v1908_v3, %v1922_v5  ;;  %v1935_v60 = vcombine.high %v1908_v3, %v1922_v5  ;;  %v1936_v8 = vcombine.low %v1915_v4, %v1929_v6  ;;  %v1937_v9 = vcombine.high %v1915_v4, %v1929_v6  ;;  %v5256_v3 = vld [vmem:[%s6224_s18 + $0x524] ss:$16 sps:$4 sm:$0xff]   ;;  %v5254_v5 = vld [vmem:[%s6224_s18 + $0x520] ss:$16 sps:$4 sm:$0xff]  }
 0x338   : > { %v5259_v4 = vld [vmem:[%s6224_s18 + $0x724] ss:$16 sps:$4 sm:$0xff]   ;;  %v5257_v6 = vld [vmem:[%s6224_s18 + $0x720] ss:$16 sps:$4 sm:$0xff]  }
 0x339   : > { %v1972_v12 = vrot.slane %v1934_v7, %v1879_v40  ;;  %v1979_v13 = vrot.slane %v1936_v8, %v1879_v40  ;;  %v1986_v15 = vrot.slane %v1935_v60, %v1879_v40  ;;  %v1993_v46 = vrot.slane %v1937_v9, %v1879_v40  ;;  %v5214_v40 = vld [vmem:[%s6224_s18 + $0x444] ss:$16 sps:$4 sm:$0xff]   ;;  %v5260_v8 = vld [vmem:[%s6224_s18 + $0x540] ss:$16 sps:$4 sm:$0xff]  }
 0x33a   : > { %v5262_v7 = vld [vmem:[%s6224_s18 + $0x544] ss:$16 sps:$4 sm:$0xff]   ;;  %v5263_v9 = vld [vmem:[%s6224_s18 + $0x740] ss:$16 sps:$4 sm:$0xff]  }
 0x33b   : > { %v1995_v18 = vcombine.high %v1944_v10, %v1972_v12  ;;  %v1998_v19 = vcombine.low %v1958_v11, %v1986_v15  ;;  %v1999_v20 = vcombine.high %v1958_v11, %v1986_v15  ;;  %v1994_v21 = vcombine.low %v1944_v10, %v1972_v12  ;;  %v5265_v60 = vld [vmem:[%s6224_s18 + $0x744] ss:$16 sps:$4 sm:$0xff]   ;;  %v5266_v12 = vld [vmem:[%s6224_s18 + $0x560] ss:$16 sps:$4 sm:$0xff]  }
 0x33c   : > { %v2000_v22 = vcombine.low %v1965_v17, %v1993_v46  ;;  %v2001_v23 = vcombine.high %v1965_v17, %v1993_v46  ;;  %v7069_v25 = vcombine.low %v1951_v16, %v1979_v13  ;;  %v7071_v26 = vcombine.high %v1951_v16, %v1979_v13  ;;  %v5268_v10 = vld [vmem:[%s6224_s18 + $0x564] ss:$16 sps:$4 sm:$0xff]   ;;  %v5269_v13 = vld [vmem:[%s6224_s18 + $0x760] ss:$16 sps:$4 sm:$0xff]  }
 0x33d   : > { %v7073_v27 = vpack.c.bf16 %v1995_v18, %v1995_v18  ;;  %v7075_v28 = vpack.c.bf16 %v1998_v19, %v1998_v19  ;;  %v7077_v30 = vpack.c.bf16 %v1999_v20, %v1999_v20  ;;  %v7081_v33 = vpack.c.bf16 %v1994_v21, %v1994_v21  ;;  %v5271_v11 = vld [vmem:[%s6224_s18 + $0x764] ss:$16 sps:$4 sm:$0xff]   ;;  %v5272_v16 = vld [vmem:[%s6224_s18 + $0x580] ss:$16 sps:$4 sm:$0xff]  }
 0x33e   : > { %v7089_v36 = vpack.c.bf16 %v2000_v22, %v2000_v22  ;;  %v7091_v37 = vpack.c.bf16 %v2001_v23, %v2001_v23  ;;  %v5274_v15 = vld [vmem:[%s6224_s18 + $0x584] ss:$16 sps:$4 sm:$0xff]   ;;  %v5275_v17 = vld [vmem:[%s6224_s18 + $0x780] ss:$16 sps:$4 sm:$0xff]  }
 0x33f   : > { %3590 = vmatprep.mubr.bf16.mxu1 %v7075_v28  ;;  %3631 = vmatprep.mubr.bf16.mxu0 %v7077_v30  ;;  %v5277_v46 = vld [vmem:[%s6224_s18 + $0x784] ss:$16 sps:$4 sm:$0xff]   ;;  %v5278_v20 = vld [vmem:[%s6224_s18 + $0x5a0] ss:$16 sps:$4 sm:$0xff]  }
 0x340   : > { %3591 = vmatmul.mubr.bf16.vlgmr.msra.gmra.mrb[8].mxu1 %v7081_v33  ;;  %3632 = vmatmul.mubr.bf16.vlgmr.msra.gmra.mrb[16].mxu0 %v7073_v27  ;;  %v5280_v18 = vld [vmem:[%s6224_s18 + $0x5a4] ss:$16 sps:$4 sm:$0xff]   ;;  %v5281_v21 = vld [vmem:[%s6224_s18 + $0x7a0] ss:$16 sps:$4 sm:$0xff]  }
 0x341   : > { %3641 = vmatpush1.bf16.msra.mxu1 %v5200_v31  ;;  %3682 = vmatpush1.bf16.msra.mxu0 %v5203_v32  ;;  %v5283_v19 = vld [vmem:[%s6224_s18 + $0x7a4] ss:$16 sps:$4 sm:$0xff]   ;;  %v5284_v31 = vld [vmem:[%s6224_s18 + $0x5c0] ss:$16 sps:$4 sm:$0xff]  }
 0x342   : > { %3672 = vmatprep.mubr.bf16.mxu1 %v7089_v36  ;;  %3713 = vmatprep.mubr.bf16.mxu0 %v7091_v37  ;;  %v5286_v22 = vld [vmem:[%s6224_s18 + $0x5c4] ss:$16 sps:$4 sm:$0xff]   ;;  %v5287_v32 = vld [vmem:[%s6224_s18 + $0x7c0] ss:$16 sps:$4 sm:$0xff]  }
 0x343   : > { %3642 = vmatprep.subr.bf16.mxu1 %v5208_v34  ;;  %3683 = vmatprep.subr.bf16.mxu0 %v5211_v35  ;;  %v5289_v23 = vld [vmem:[%s6224_s18 + $0x7c4] ss:$16 sps:$4 sm:$0xff]  }
 0x344   : > { %v5292_v34 = vld [vmem:[%s6224_s18 + $0x5e4] ss:$16 sps:$4 sm:$0xff]  }
 0x345   : > { %3643 = vmatpush1.bf16.msra.mxu1 %v5206_v38  ;;  %3684 = vmatpush1.bf16.msra.mxu0 %v5209_v39  ;;  %v5295_v35 = vld [vmem:[%s6224_s18 + $0x7e4] ss:$16 sps:$4 sm:$0xff]   ;;  %v5290_v38 = vld [vmem:[%s6224_s18 + $0x5e0] ss:$16 sps:$4 sm:$0xff]  }
 0x346   : > { %3644 = vmatprep.subr.bf16.mxu1 %v5214_v40  ;;  %3685 = vmatprep.subr.bf16.mxu0 %v5217_v41  ;;  %v5293_v39 = vld [vmem:[%s6224_s18 + $0x7e0] ss:$16 sps:$4 sm:$0xff]   ;;  %v5298_v40 = vld [vmem:[%s6224_s18 + $0xc] ss:$16 sps:$4 sm:$0xff]  }
 0x347   : > { %v5301_v41 = vld [vmem:[%s6224_s18 + $0x20c] ss:$16 sps:$4 sm:$0xff]  }
 0x349   : > { %3645 = vmatpush1.bf16.msra.mxu1 %v5212_v42  ;;  %3686 = vmatpush1.bf16.msra.mxu0 %v5215_v43  ;;  %v5296_v42 = vld [vmem:[%s6224_s18 + $0x8] ss:$16 sps:$4 sm:$0xff]   ;;  %v7158_v43 = vpack.c.bf16 %v7069_v25, %v7069_v25 }
 0x34a   : > { %3646 = vmatprep.subr.bf16.mxu1 %v5220_v45  ;;  %3687 = vmatprep.subr.bf16.mxu0 %v5223_v47  ;;  %v7162_v45 = vpack.c.bf16 %v7071_v26, %v7071_v26  ;;  %v5299_v47 = vld [vmem:[%s6224_s18 + $0x208] ss:$16 sps:$4 sm:$0xff]  }
 0x34b   : > { %v5302_v25 = vld [vmem:[%s6224_s18 + $0x28] ss:$16 sps:$4 sm:$0xff]  }
 0x34c   : > { %v5305_v26 = vld [vmem:[%s6224_s18 + $0x228] ss:$16 sps:$4 sm:$0xff]  }
 0x34d   : > { %3647 = vmatpush1.bf16.msra.mxu1 %v5218_v48  ;;  %3688 = vmatpush1.bf16.msra.mxu0 %v5221_v49  ;;  %v5304_v48 = vld [vmem:[%s6224_s18 + $0x2c] ss:$16 sps:$4 sm:$0xff]  }
 0x34e   : > { %3648 = vmatprep.subr.bf16.mxu1 %v5226_v50  ;;  %3689 = vmatprep.subr.bf16.mxu0 %v5229_v51  ;;  %v5307_v49 = vld [vmem:[%s6224_s18 + $0x22c] ss:$16 sps:$4 sm:$0xff]  }
 0x34f   : > { %v5310_v50 = vld [vmem:[%s6224_s18 + $0x4c] ss:$16 sps:$4 sm:$0xff]  }
 0x350   : > { %v5313_v51 = vld [vmem:[%s6224_s18 + $0x24c] ss:$16 sps:$4 sm:$0xff]  }
 0x351   : > { %3649 = vmatpush1.bf16.msra.mxu1 %v5224_v52  ;;  %3690 = vmatpush1.bf16.msra.mxu0 %v5227_v53  ;;  %v5308_v52 = vld [vmem:[%s6224_s18 + $0x48] ss:$16 sps:$4 sm:$0xff]   ;;  %v5316_v53 = vld [vmem:[%s6224_s18 + $0x6c] ss:$16 sps:$4 sm:$0xff]  }
 0x352   : > { %3650 = vmatprep.subr.bf16.mxu1 %v5232_v54  ;;  %3691 = vmatprep.subr.bf16.mxu0 %v5235_v55  ;;  %v5319_v54 = vld [vmem:[%s6224_s18 + $0x26c] ss:$16 sps:$4 sm:$0xff]   ;;  %v5317_v55 = vld [vmem:[%s6224_s18 + $0x268] ss:$16 sps:$4 sm:$0xff]  }
 0x355   : > { %3651 = vmatpush1.bf16.msra.mxu1 %v5230_v56  ;;  %3692 = vmatpush1.bf16.msra.mxu0 %v5233_v29  ;;  %v5322_v56 = vld [vmem:[%s6224_s18 + $0x8c] ss:$16 sps:$4 sm:$0xff]  }
 0x356   : > { %3652 = vmatprep.subr.bf16.mxu1 %v5238_v57  ;;  %3693 = vmatprep.subr.bf16.mxu0 %v5241_v58  ;;  %v5325_v29 = vld [vmem:[%s6224_s18 + $0x28c] ss:$16 sps:$4 sm:$0xff]   ;;  %v5320_v57 = vld [vmem:[%s6224_s18 + $0x88] ss:$16 sps:$4 sm:$0xff]  }
 0x357   : > { %v5323_v58 = vld [vmem:[%s6224_s18 + $0x288] ss:$16 sps:$4 sm:$0xff]  }
 0x359   : > { %3653 = vmatpush1.bf16.msra.mxu1 %v5236_v59  ;;  %3694 = vmatpush1.bf16.msra.mxu0 %v5239_v62  ;;  %v5328_v59 = vld [vmem:[%s6224_s18 + $0xac] ss:$16 sps:$4 sm:$0xff]  }
 0x35a   : > { %3654 = vmatprep.subr.bf16.mxu1 %v5244_v63  ;;  %3695 = vmatprep.subr.bf16.mxu0 %v5247_v61  ;;  %v5331_v62 = vld [vmem:[%s6224_s18 + $0x2ac] ss:$16 sps:$4 sm:$0xff]   ;;  %v5326_v63 = vld [vmem:[%s6224_s18 + $0xa8] ss:$16 sps:$4 sm:$0xff]  }
 0x35b   : > { %v5329_v61 = vld [vmem:[%s6224_s18 + $0x2a8] ss:$16 sps:$4 sm:$0xff]  }
 0x35d   : > { %3655 = vmatpush1.bf16.msra.mxu1 %v5242_v44  ;;  %3696 = vmatpush1.bf16.msra.mxu0 %v5245_v0  ;;  %v5334_v44 = vld [vmem:[%s6224_s18 + $0xcc] ss:$16 sps:$4 sm:$0xff]  }
 0x35e   : > { %3656 = vmatprep.subr.bf16.mxu1 %v5250_v1  ;;  %3697 = vmatprep.subr.bf16.mxu0 %v5253_v2  ;;  %v5337_v0 = vld [vmem:[%s6224_s18 + $0x2cc] ss:$16 sps:$4 sm:$0xff]   ;;  %v5332_v1 = vld [vmem:[%s6224_s18 + $0xc8] ss:$16 sps:$4 sm:$0xff]  }
 0x35f   : > { %v5335_v2 = vld [vmem:[%s6224_s18 + $0x2c8] ss:$16 sps:$4 sm:$0xff]  }
 0x361   : > { %3657 = vmatpush1.bf16.msra.mxu1 %v5248_v14  ;;  %3698 = vmatpush1.bf16.msra.mxu0 %v5251_v24  ;;  %v5340_v14 = vld [vmem:[%s6224_s18 + $0xec] ss:$16 sps:$4 sm:$0xff]  }
 0x362   : > { %3658 = vmatprep.subr.bf16.mxu1 %v5256_v3  ;;  %3699 = vmatprep.subr.bf16.mxu0 %v5259_v4  ;;  %v5343_v24 = vld [vmem:[%s6224_s18 + $0x2ec] ss:$16 sps:$4 sm:$0xff]   ;;  %v5338_v3 = vld [vmem:[%s6224_s18 + $0xe8] ss:$16 sps:$4 sm:$0xff]  }
 0x363   : > { %v5341_v4 = vld [vmem:[%s6224_s18 + $0x2e8] ss:$16 sps:$4 sm:$0xff]  }
 0x365   : > { %3659 = vmatpush1.bf16.msra.mxu1 %v5254_v5  ;;  %3700 = vmatpush1.bf16.msra.mxu0 %v5257_v6  ;;  %v5346_v5 = vld [vmem:[%s6224_s18 + $0x10c] ss:$16 sps:$4 sm:$0xff]  }
 0x366   : > { %3660 = vmatprep.subr.bf16.mxu1 %v5262_v7  ;;  %3701 = vmatprep.subr.bf16.mxu0 %v5265_v60  ;;  %v5349_v6 = vld [vmem:[%s6224_s18 + $0x30c] ss:$16 sps:$4 sm:$0xff]   ;;  %v5344_v7 = vld [vmem:[%s6224_s18 + $0x108] ss:$16 sps:$4 sm:$0xff]  }
 0x367   : > { %v5347_v60 = vld [vmem:[%s6224_s18 + $0x308] ss:$16 sps:$4 sm:$0xff]  }
 0x369   : > { %3661 = vmatpush1.bf16.msra.mxu1 %v5260_v8  ;;  %3702 = vmatpush1.bf16.msra.mxu0 %v5263_v9  ;;  %v5352_v8 = vld [vmem:[%s6224_s18 + $0x12c] ss:$16 sps:$4 sm:$0xff]  }
 0x36a   : > { %3662 = vmatprep.subr.bf16.mxu1 %v5268_v10  ;;  %3703 = vmatprep.subr.bf16.mxu0 %v5271_v11  ;;  %v5355_v9 = vld [vmem:[%s6224_s18 + $0x32c] ss:$16 sps:$4 sm:$0xff]   ;;  %v5350_v10 = vld [vmem:[%s6224_s18 + $0x128] ss:$16 sps:$4 sm:$0xff]  }
 0x36b   : > { %v5353_v11 = vld [vmem:[%s6224_s18 + $0x328] ss:$16 sps:$4 sm:$0xff]  }
 0x36d   : > { %3663 = vmatpush1.bf16.msra.mxu1 %v5266_v12  ;;  %3704 = vmatpush1.bf16.msra.mxu0 %v5269_v13  ;;  %v5358_v12 = vld [vmem:[%s6224_s18 + $0x14c] ss:$16 sps:$4 sm:$0xff]  }
 0x36e   : > { %3664 = vmatprep.subr.bf16.mxu1 %v5274_v15  ;;  %3705 = vmatprep.subr.bf16.mxu0 %v5277_v46  ;;  %v5361_v13 = vld [vmem:[%s6224_s18 + $0x34c] ss:$16 sps:$4 sm:$0xff]   ;;  %v5356_v15 = vld [vmem:[%s6224_s18 + $0x148] ss:$16 sps:$4 sm:$0xff]  }
 0x36f   : > { %v5359_v46 = vld [vmem:[%s6224_s18 + $0x348] ss:$16 sps:$4 sm:$0xff]  }
 0x371   : > { %3665 = vmatpush1.bf16.msra.mxu1 %v5272_v16  ;;  %3706 = vmatpush1.bf16.msra.mxu0 %v5275_v17  ;;  %v5364_v16 = vld [vmem:[%s6224_s18 + $0x16c] ss:$16 sps:$4 sm:$0xff]  }
 0x372   : > { %3666 = vmatprep.subr.bf16.mxu1 %v5280_v18  ;;  %3707 = vmatprep.subr.bf16.mxu0 %v5283_v19  ;;  %v5367_v17 = vld [vmem:[%s6224_s18 + $0x36c] ss:$16 sps:$4 sm:$0xff]   ;;  %v5362_v18 = vld [vmem:[%s6224_s18 + $0x168] ss:$16 sps:$4 sm:$0xff]  }
 0x373   : > { %v5365_v19 = vld [vmem:[%s6224_s18 + $0x368] ss:$16 sps:$4 sm:$0xff]  }
 0x375   : > { %3667 = vmatpush1.bf16.msra.mxu1 %v5278_v20  ;;  %3708 = vmatpush1.bf16.msra.mxu0 %v5281_v21  ;;  %v5370_v20 = vld [vmem:[%s6224_s18 + $0x18c] ss:$16 sps:$4 sm:$0xff]  }
 0x376   : > { %3668 = vmatprep.subr.bf16.mxu1 %v5286_v22  ;;  %3709 = vmatprep.subr.bf16.mxu0 %v5289_v23  ;;  %v5373_v21 = vld [vmem:[%s6224_s18 + $0x38c] ss:$16 sps:$4 sm:$0xff]   ;;  %v5368_v22 = vld [vmem:[%s6224_s18 + $0x188] ss:$16 sps:$4 sm:$0xff]  }
 0x377   : > { %v5371_v23 = vld [vmem:[%s6224_s18 + $0x388] ss:$16 sps:$4 sm:$0xff]  }
 0x379   : > { %3669 = vmatpush1.bf16.msra.mxu1 %v5284_v31  ;;  %3710 = vmatpush1.bf16.msra.mxu0 %v5287_v32  ;;  %v5376_v31 = vld [vmem:[%s6224_s18 + $0x1ac] ss:$16 sps:$4 sm:$0xff]  }
 0x37a   : > { %3670 = vmatprep.subr.bf16.mxu1 %v5292_v34  ;;  %3711 = vmatprep.subr.bf16.mxu0 %v5295_v35  ;;  %v5379_v32 = vld [vmem:[%s6224_s18 + $0x3ac] ss:$16 sps:$4 sm:$0xff]   ;;  %v5374_v34 = vld [vmem:[%s6224_s18 + $0x1a8] ss:$16 sps:$4 sm:$0xff]  }
 0x37b   : > { %v5377_v35 = vld [vmem:[%s6224_s18 + $0x3a8] ss:$16 sps:$4 sm:$0xff]  }
 0x37d   : > { %3671 = vmatpush1.bf16.msra.mxu1 %v5290_v38  ;;  %3712 = vmatpush1.bf16.msra.mxu0 %v5293_v39  ;;  %v5382_v38 = vld [vmem:[%s6224_s18 + $0x1cc] ss:$16 sps:$4 sm:$0xff]  }
 0x37e   : > { %3722 = vmatprep.subr.bf16.mxu1 %v5298_v40  ;;  %3763 = vmatprep.subr.bf16.mxu0 %v5301_v41  ;;  %v5385_v39 = vld [vmem:[%s6224_s18 + $0x3cc] ss:$16 sps:$4 sm:$0xff]   ;;  %v5380_v40 = vld [vmem:[%s6224_s18 + $0x1c8] ss:$16 sps:$4 sm:$0xff]  }
 0x37f   : > { %v5383_v41 = vld [vmem:[%s6224_s18 + $0x3c8] ss:$16 sps:$4 sm:$0xff]  }
 0x380   : > { %3673 = vmatmul.mubr.bf16.vlgmr.msra.gmra.mrb[12].mxu1 %v7158_v43  ;;  %3714 = vmatmul.mubr.bf16.vlgmr.msra.gmra.mrb[20].mxu0 %v7162_v45 }
 0x381   : > { %3723 = vmatpush1.bf16.msra.mxu1 %v5296_v42  ;;  %3754 = vmatprep.mubr.bf16.mxu1 %v7075_v28  ;;  %v5311_v28 = vld [vmem:[%s6224_s18 + $0x248] ss:$16 sps:$4 sm:$0xff]   ;;  %v5388_v42 = vld [vmem:[%s6224_s18 + $0x1ec] ss:$16 sps:$4 sm:$0xff]  }
 0x382   : > { %3764 = vmatpush1.bf16.msra.mxu0 %v5299_v47  ;;  %3795 = vmatprep.mubr.bf16.mxu0 %v7077_v30  ;;  %v5314_v30 = vld [vmem:[%s6224_s18 + $0x68] ss:$16 sps:$4 sm:$0xff]   ;;  %v5391_v47 = vld [vmem:[%s6224_s18 + $0x3ec] ss:$16 sps:$4 sm:$0xff]  }
 0x383   : > { %3724 = vmatprep.subr.bf16.mxu1 %v5304_v48  ;;  %3765 = vmatprep.subr.bf16.mxu0 %v5307_v49  ;;  %v5386_v48 = vld [vmem:[%s6224_s18 + $0x1e8] ss:$16 sps:$4 sm:$0xff]  }
 0x384   : > { %v5389_v49 = vld [vmem:[%s6224_s18 + $0x3e8] ss:$16 sps:$4 sm:$0xff]  }
 0x385   : > { %3725 = vmatpush1.bf16.msra.mxu1 %v5302_v25  ;;  %v5394_v25 = vld [vmem:[%s6224_s18 + $0x40c] ss:$16 sps:$4 sm:$0xff]  }
 0x386   : > { %3766 = vmatpush1.bf16.msra.mxu0 %v5305_v26  ;;  %3726 = vmatprep.subr.bf16.mxu1 %v5310_v50  ;;  %v5397_v26 = vld [vmem:[%s6224_s18 + $0x60c] ss:$16 sps:$4 sm:$0xff]   ;;  %v5392_v50 = vld [vmem:[%s6224_s18 + $0x408] ss:$16 sps:$4 sm:$0xff]  }
 0x387   : > { %3767 = vmatprep.subr.bf16.mxu0 %v5313_v51  ;;  %v5395_v51 = vld [vmem:[%s6224_s18 + $0x608] ss:$16 sps:$4 sm:$0xff]  }
 0x389   : > { %3727 = vmatpush1.bf16.msra.mxu1 %v5308_v52  ;;  %v5400_v52 = vld [vmem:[%s6224_s18 + $0x42c] ss:$16 sps:$4 sm:$0xff]  }
 0x38a   : > { %3768 = vmatpush1.bf16.msra.mxu0 %v5311_v28  ;;  %3728 = vmatprep.subr.bf16.mxu1 %v5316_v53  ;;  %v5403_v28 = vld [vmem:[%s6224_s18 + $0x62c] ss:$16 sps:$4 sm:$0xff]   ;;  %v5398_v53 = vld [vmem:[%s6224_s18 + $0x428] ss:$16 sps:$4 sm:$0xff]  }
 0x38b   : > { %3769 = vmatprep.subr.bf16.mxu0 %v5319_v54  ;;  %v5401_v54 = vld [vmem:[%s6224_s18 + $0x628] ss:$16 sps:$4 sm:$0xff]  }
 0x38d   : > { %3729 = vmatpush1.bf16.msra.mxu1 %v5314_v30  ;;  %v5406_v30 = vld [vmem:[%s6224_s18 + $0x44c] ss:$16 sps:$4 sm:$0xff]  }
 0x38e   : > { %3770 = vmatpush1.bf16.msra.mxu0 %v5317_v55  ;;  %3730 = vmatprep.subr.bf16.mxu1 %v5322_v56  ;;  %v5407_v55 = vld [vmem:[%s6224_s18 + $0x648] ss:$16 sps:$4 sm:$0xff]   ;;  %v5415_v56 = vld [vmem:[%s6224_s18 + $0x66c] ss:$16 sps:$4 sm:$0xff]  }
 0x38f   : > { %3771 = vmatprep.subr.bf16.mxu0 %v5325_v29  ;;  %v5413_v29 = vld [vmem:[%s6224_s18 + $0x668] ss:$16 sps:$4 sm:$0xff]  }
 0x391   : > { %3731 = vmatpush1.bf16.msra.mxu1 %v5320_v57  ;;  %v5418_v57 = vld [vmem:[%s6224_s18 + $0x48c] ss:$16 sps:$4 sm:$0xff]  }
 0x392   : > { %3772 = vmatpush1.bf16.msra.mxu0 %v5323_v58  ;;  %3732 = vmatprep.subr.bf16.mxu1 %v5328_v59  ;;  %v5421_v58 = vld [vmem:[%s6224_s18 + $0x68c] ss:$16 sps:$4 sm:$0xff]   ;;  %v5416_v59 = vld [vmem:[%s6224_s18 + $0x488] ss:$16 sps:$4 sm:$0xff]  }
 0x393   : > { %3773 = vmatprep.subr.bf16.mxu0 %v5331_v62  ;;  %v5419_v62 = vld [vmem:[%s6224_s18 + $0x688] ss:$16 sps:$4 sm:$0xff]  }
 0x395   : > { %3733 = vmatpush1.bf16.msra.mxu1 %v5326_v63  ;;  %v5424_v63 = vld [vmem:[%s6224_s18 + $0x4ac] ss:$16 sps:$4 sm:$0xff]  }
 0x396   : > { %3774 = vmatpush1.bf16.msra.mxu0 %v5329_v61  ;;  %3734 = vmatprep.subr.bf16.mxu1 %v5334_v44  ;;  %v5427_v61 = vld [vmem:[%s6224_s18 + $0x6ac] ss:$16 sps:$4 sm:$0xff]   ;;  %v5422_v44 = vld [vmem:[%s6224_s18 + $0x4a8] ss:$16 sps:$4 sm:$0xff]  }
 0x397   : > { %3775 = vmatprep.subr.bf16.mxu0 %v5337_v0  ;;  %v5425_v0 = vld [vmem:[%s6224_s18 + $0x6a8] ss:$16 sps:$4 sm:$0xff]  }
 0x399   : > { %3735 = vmatpush1.bf16.msra.mxu1 %v5332_v1  ;;  %v5430_v1 = vld [vmem:[%s6224_s18 + $0x4cc] ss:$16 sps:$4 sm:$0xff]  }
 0x39a   : > { %3776 = vmatpush1.bf16.msra.mxu0 %v5335_v2  ;;  %3736 = vmatprep.subr.bf16.mxu1 %v5340_v14  ;;  %v5433_v2 = vld [vmem:[%s6224_s18 + $0x6cc] ss:$16 sps:$4 sm:$0xff]   ;;  %v5428_v14 = vld [vmem:[%s6224_s18 + $0x4c8] ss:$16 sps:$4 sm:$0xff]  }
 0x39b   : > { %3777 = vmatprep.subr.bf16.mxu0 %v5343_v24  ;;  %v5431_v24 = vld [vmem:[%s6224_s18 + $0x6c8] ss:$16 sps:$4 sm:$0xff]  }
 0x39d   : > { %3737 = vmatpush1.bf16.msra.mxu1 %v5338_v3  ;;  %v5436_v3 = vld [vmem:[%s6224_s18 + $0x4ec] ss:$16 sps:$4 sm:$0xff]  }
 0x39e   : > { %3778 = vmatpush1.bf16.msra.mxu0 %v5341_v4  ;;  %3738 = vmatprep.subr.bf16.mxu1 %v5346_v5  ;;  %v5439_v4 = vld [vmem:[%s6224_s18 + $0x6ec] ss:$16 sps:$4 sm:$0xff]   ;;  %v5434_v5 = vld [vmem:[%s6224_s18 + $0x4e8] ss:$16 sps:$4 sm:$0xff]  }
 0x39f   : > { %3779 = vmatprep.subr.bf16.mxu0 %v5349_v6  ;;  %v5437_v6 = vld [vmem:[%s6224_s18 + $0x6e8] ss:$16 sps:$4 sm:$0xff]  }
 0x3a1   : > { %3739 = vmatpush1.bf16.msra.mxu1 %v5344_v7  ;;  %v5442_v7 = vld [vmem:[%s6224_s18 + $0x50c] ss:$16 sps:$4 sm:$0xff]  }
 0x3a2   : > { %3780 = vmatpush1.bf16.msra.mxu0 %v5347_v60  ;;  %3740 = vmatprep.subr.bf16.mxu1 %v5352_v8  ;;  %v5445_v60 = vld [vmem:[%s6224_s18 + $0x70c] ss:$16 sps:$4 sm:$0xff]   ;;  %v5440_v8 = vld [vmem:[%s6224_s18 + $0x508] ss:$16 sps:$4 sm:$0xff]  }
 0x3a3   : > { %3781 = vmatprep.subr.bf16.mxu0 %v5355_v9  ;;  %v5443_v9 = vld [vmem:[%s6224_s18 + $0x708] ss:$16 sps:$4 sm:$0xff]  }
 0x3a5   : > { %3741 = vmatpush1.bf16.msra.mxu1 %v5350_v10  ;;  %v5448_v10 = vld [vmem:[%s6224_s18 + $0x52c] ss:$16 sps:$4 sm:$0xff]  }
 0x3a6   : > { %3782 = vmatpush1.bf16.msra.mxu0 %v5353_v11  ;;  %3742 = vmatprep.subr.bf16.mxu1 %v5358_v12  ;;  %v5451_v11 = vld [vmem:[%s6224_s18 + $0x72c] ss:$16 sps:$4 sm:$0xff]   ;;  %v5446_v12 = vld [vmem:[%s6224_s18 + $0x528] ss:$16 sps:$4 sm:$0xff]  }
 0x3a7   : > { %3783 = vmatprep.subr.bf16.mxu0 %v5361_v13  ;;  %v5449_v13 = vld [vmem:[%s6224_s18 + $0x728] ss:$16 sps:$4 sm:$0xff]  }
 0x3a9   : > { %3743 = vmatpush1.bf16.msra.mxu1 %v5356_v15  ;;  %v5454_v15 = vld [vmem:[%s6224_s18 + $0x54c] ss:$16 sps:$4 sm:$0xff]  }
 0x3aa   : > { %3784 = vmatpush1.bf16.msra.mxu0 %v5359_v46  ;;  %3744 = vmatprep.subr.bf16.mxu1 %v5364_v16  ;;  %v5457_v46 = vld [vmem:[%s6224_s18 + $0x74c] ss:$16 sps:$4 sm:$0xff]   ;;  %v5452_v16 = vld [vmem:[%s6224_s18 + $0x548] ss:$16 sps:$4 sm:$0xff]  }
 0x3ab   : > { %3785 = vmatprep.subr.bf16.mxu0 %v5367_v17  ;;  %v5455_v17 = vld [vmem:[%s6224_s18 + $0x748] ss:$16 sps:$4 sm:$0xff]  }
 0x3ad   : > { %3745 = vmatpush1.bf16.msra.mxu1 %v5362_v18  ;;  %v5460_v18 = vld [vmem:[%s6224_s18 + $0x56c] ss:$16 sps:$4 sm:$0xff]  }
 0x3ae   : > { %3786 = vmatpush1.bf16.msra.mxu0 %v5365_v19  ;;  %3746 = vmatprep.subr.bf16.mxu1 %v5370_v20  ;;  %v5463_v19 = vld [vmem:[%s6224_s18 + $0x76c] ss:$16 sps:$4 sm:$0xff]   ;;  %v5458_v20 = vld [vmem:[%s6224_s18 + $0x568] ss:$16 sps:$4 sm:$0xff]  }
 0x3af   : > { %3787 = vmatprep.subr.bf16.mxu0 %v5373_v21  ;;  %v5461_v21 = vld [vmem:[%s6224_s18 + $0x768] ss:$16 sps:$4 sm:$0xff]  }
 0x3b1   : > { %3747 = vmatpush1.bf16.msra.mxu1 %v5368_v22  ;;  %v5466_v22 = vld [vmem:[%s6224_s18 + $0x58c] ss:$16 sps:$4 sm:$0xff]  }
 0x3b2   : > { %3788 = vmatpush1.bf16.msra.mxu0 %v5371_v23  ;;  %3748 = vmatprep.subr.bf16.mxu1 %v5376_v31  ;;  %v5469_v23 = vld [vmem:[%s6224_s18 + $0x78c] ss:$16 sps:$4 sm:$0xff]   ;;  %v5464_v31 = vld [vmem:[%s6224_s18 + $0x588] ss:$16 sps:$4 sm:$0xff]  }
 0x3b3   : > { %3789 = vmatprep.subr.bf16.mxu0 %v5379_v32  ;;  %v5467_v32 = vld [vmem:[%s6224_s18 + $0x788] ss:$16 sps:$4 sm:$0xff]  }
 0x3b5   : > { %3749 = vmatpush1.bf16.msra.mxu1 %v5374_v34  ;;  %v5472_v34 = vld [vmem:[%s6224_s18 + $0x5ac] ss:$16 sps:$4 sm:$0xff]  }
 0x3b6   : > { %3790 = vmatpush1.bf16.msra.mxu0 %v5377_v35  ;;  %3750 = vmatprep.subr.bf16.mxu1 %v5382_v38  ;;  %v5475_v35 = vld [vmem:[%s6224_s18 + $0x7ac] ss:$16 sps:$4 sm:$0xff]   ;;  %v5470_v38 = vld [vmem:[%s6224_s18 + $0x5a8] ss:$16 sps:$4 sm:$0xff]  }
 0x3b7   : > { %3791 = vmatprep.subr.bf16.mxu0 %v5385_v39  ;;  %v5473_v39 = vld [vmem:[%s6224_s18 + $0x7a8] ss:$16 sps:$4 sm:$0xff]  }
 0x3b9   : > { %3751 = vmatpush1.bf16.msra.mxu1 %v5380_v40  ;;  %v5478_v40 = vld [vmem:[%s6224_s18 + $0x5cc] ss:$16 sps:$4 sm:$0xff]  }
 0x3ba   : > { %3792 = vmatpush1.bf16.msra.mxu0 %v5383_v41  ;;  %3752 = vmatprep.subr.bf16.mxu1 %v5388_v42  ;;  %v5481_v41 = vld [vmem:[%s6224_s18 + $0x7cc] ss:$16 sps:$4 sm:$0xff]   ;;  %v5476_v42 = vld [vmem:[%s6224_s18 + $0x5c8] ss:$16 sps:$4 sm:$0xff]  }
 0x3bb   : > { %3793 = vmatprep.subr.bf16.mxu0 %v5391_v47  ;;  %v5479_v47 = vld [vmem:[%s6224_s18 + $0x7c8] ss:$16 sps:$4 sm:$0xff]  }
 0x3bd   : > { %3753 = vmatpush1.bf16.msra.mxu1 %v5386_v48  ;;  %v5484_v48 = vld [vmem:[%s6224_s18 + $0x5ec] ss:$16 sps:$4 sm:$0xff]  }
 0x3be   : > { %3794 = vmatpush1.bf16.msra.mxu0 %v5389_v49  ;;  %3804 = vmatprep.subr.bf16.mxu1 %v5394_v25  ;;  %v5487_v49 = vld [vmem:[%s6224_s18 + $0x7ec] ss:$16 sps:$4 sm:$0xff]   ;;  %v5482_v25 = vld [vmem:[%s6224_s18 + $0x5e8] ss:$16 sps:$4 sm:$0xff]  }
 0x3bf   : > { %3845 = vmatprep.subr.bf16.mxu0 %v5397_v26  ;;  %v5485_v26 = vld [vmem:[%s6224_s18 + $0x7e8] ss:$16 sps:$4 sm:$0xff]  }
 0x3c0   : > { %3755 = vmatmul.mubr.bf16.vlgmr.msra.gmra.mrb[16].mxu1 %v7081_v33  ;;  %v5409_v33 = vld [vmem:[%s6224_s18 + $0x64c] ss:$16 sps:$4 sm:$0xff]  }
 0x3c1   : > { %3796 = vmatmul.mubr.bf16.vlgmr.msra.gmra.mrb[24].mxu0 %v7073_v27  ;;  %3805 = vmatpush1.bf16.msra.mxu1 %v5392_v50  ;;  %v5404_v27 = vld [vmem:[%s6224_s18 + $0x448] ss:$16 sps:$4 sm:$0xff]  }
 0x3c2   : > { %3836 = vmatprep.mubr.bf16.mxu1 %v7089_v36  ;;  %3846 = vmatpush1.bf16.msra.mxu0 %v5395_v51  ;;  %v5412_v36 = vld [vmem:[%s6224_s18 + $0x46c] ss:$16 sps:$4 sm:$0xff]  }
 0x3c3   : > { %3877 = vmatprep.mubr.bf16.mxu0 %v7091_v37  ;;  %3806 = vmatprep.subr.bf16.mxu1 %v5400_v52  ;;  %v5410_v37 = vld [vmem:[%s6224_s18 + $0x468] ss:$16 sps:$4 sm:$0xff]  }
 0x3c4   : > { %3847 = vmatprep.subr.bf16.mxu0 %v5403_v28 }
 0x3c5   : > { %3807 = vmatpush1.bf16.msra.mxu1 %v5398_v53 }
 0x3c6   : > { %3848 = vmatpush1.bf16.msra.mxu0 %v5401_v54  ;;  %3808 = vmatprep.subr.bf16.mxu1 %v5406_v30 }
 0x3c7   : > { %3849 = vmatprep.subr.bf16.mxu0 %v5409_v33 }
 0x3c9   : > { %3809 = vmatpush1.bf16.msra.mxu1 %v5404_v27 }
 0x3ca   : > { %3850 = vmatpush1.bf16.msra.mxu0 %v5407_v55  ;;  %3810 = vmatprep.subr.bf16.mxu1 %v5412_v36 }
 0x3cb   : > { %3851 = vmatprep.subr.bf16.mxu0 %v5415_v56 }
 0x3cd   : > { %3811 = vmatpush1.bf16.msra.mxu1 %v5410_v37 }
 0x3ce   : > { %3852 = vmatpush1.bf16.msra.mxu0 %v5413_v29  ;;  %3812 = vmatprep.subr.bf16.mxu1 %v5418_v57 }
 0x3cf   : > { %3853 = vmatprep.subr.bf16.mxu0 %v5421_v58  ;;  %v2018_v58 = vld [vmem:[#allocation2] sm:$0xff] }
 0x3d1   : > { %3813 = vmatpush1.bf16.msra.mxu1 %v5416_v59 }
 0x3d2   : > { %3854 = vmatpush1.bf16.msra.mxu0 %v5419_v62  ;;  %3814 = vmatprep.subr.bf16.mxu1 %v5424_v63  ;;  %v2019_v63 = vld [vmem:[#allocation2 + $0x8] sm:$0xff] }
 0x3d3   : > { %3855 = vmatprep.subr.bf16.mxu0 %v5427_v61 }
 0x3d5   : > { %3815 = vmatpush1.bf16.msra.mxu1 %v5422_v44 }
 0x3d6   : > { %3856 = vmatpush1.bf16.msra.mxu0 %v5425_v0  ;;  %3816 = vmatprep.subr.bf16.mxu1 %v5430_v1 }
 0x3d7   : > { %3857 = vmatprep.subr.bf16.mxu0 %v5433_v2 }
 0x3d9   : > { %3817 = vmatpush1.bf16.msra.mxu1 %v5428_v14 }
 0x3da   : > { %3858 = vmatpush1.bf16.msra.mxu0 %v5431_v24  ;;  %3818 = vmatprep.subr.bf16.mxu1 %v5436_v3 }
 0x3db   : > { %3859 = vmatprep.subr.bf16.mxu0 %v5439_v4 }
 0x3dd   : > { %3819 = vmatpush1.bf16.msra.mxu1 %v5434_v5 }
 0x3de   : > { %3860 = vmatpush1.bf16.msra.mxu0 %v5437_v6  ;;  %3820 = vmatprep.subr.bf16.mxu1 %v5442_v7 }
 0x3df   : > { %3861 = vmatprep.subr.bf16.mxu0 %v5445_v60 }
 0x3e1   : > { %3821 = vmatpush1.bf16.msra.mxu1 %v5440_v8 }
 0x3e2   : > { %3862 = vmatpush1.bf16.msra.mxu0 %v5443_v9  ;;  %3822 = vmatprep.subr.bf16.mxu1 %v5448_v10 }
 0x3e3   : > { %3863 = vmatprep.subr.bf16.mxu0 %v5451_v11 }
 0x3e5   : > { %3823 = vmatpush1.bf16.msra.mxu1 %v5446_v12 }
 0x3e6   : > { %3864 = vmatpush1.bf16.msra.mxu0 %v5449_v13  ;;  %3824 = vmatprep.subr.bf16.mxu1 %v5454_v15  ;;  %v2020_v15 = vld [vmem:[#allocation2 + $0x10] sm:$0xff] }
 0x3e7   : > { %3865 = vmatprep.subr.bf16.mxu0 %v5457_v46 }
 0x3e9   : > { %3825 = vmatpush1.bf16.msra.mxu1 %v5452_v16 }
 0x3ea   : > { %3866 = vmatpush1.bf16.msra.mxu0 %v5455_v17  ;;  %3826 = vmatprep.subr.bf16.mxu1 %v5460_v18 }
 0x3eb   : > { %3867 = vmatprep.subr.bf16.mxu0 %v5463_v19  ;;  %v2021_v19 = vld [vmem:[#allocation2 + $0x18] sm:$0xff] }
 0x3ed   : > { %3827 = vmatpush1.bf16.msra.mxu1 %v5458_v20 }
 0x3ee   : > { %3868 = vmatpush1.bf16.msra.mxu0 %v5461_v21  ;;  %3828 = vmatprep.subr.bf16.mxu1 %v5466_v22 }
 0x3ef   : > { %3869 = vmatprep.subr.bf16.mxu0 %v5469_v23 }
 0x3f1   : > { %3829 = vmatpush1.bf16.msra.mxu1 %v5464_v31 }
 0x3f2   : > { %3870 = vmatpush1.bf16.msra.mxu0 %v5467_v32  ;;  %3830 = vmatprep.subr.bf16.mxu1 %v5472_v34  ;;  %v5490_v34 = vld [vmem:[%s6217_s4 + $0x40] sm:$0xff] (!%p4653_p1)  }
 0x3f3   : > { %3871 = vmatprep.subr.bf16.mxu0 %v5475_v35  ;;  %v5491_v35 = vld [vmem:[%s6217_s4 + $0xc0] sm:$0xff] (!%p4653_p1)  }
 0x3f5   : > { %3831 = vmatpush1.bf16.msra.mxu1 %v5470_v38  ;;  %v5492_v38 = vld [vmem:[%s6217_s4] sm:$0xff] (!%p4653_p1)  }
 0x3f6   : > { %3872 = vmatpush1.bf16.msra.mxu0 %v5473_v39  ;;  %3832 = vmatprep.subr.bf16.mxu1 %v5478_v40  ;;  %v5493_v39 = vld [vmem:[%s6217_s4 + $0x80] sm:$0xff] (!%p4653_p1)   ;;  %v5494_v40 = vld [vmem:[%s6217_s4 + $0x48] sm:$0xff] (!%p4653_p1)  }
 0x3f7   : > { %3873 = vmatprep.subr.bf16.mxu0 %v5481_v41  ;;  %v5495_v41 = vld [vmem:[%s6217_s4 + $0xc8] sm:$0xff] (!%p4653_p1)  }
 0x3f9   : > { %3833 = vmatpush1.bf16.msra.mxu1 %v5476_v42  ;;  %v5496_v42 = vld [vmem:[%s6217_s4 + $0x8] sm:$0xff] (!%p4653_p1)  }
 0x3fa   : > { %3874 = vmatpush1.bf16.msra.mxu0 %v5479_v47  ;;  %3834 = vmatprep.subr.bf16.mxu1 %v5484_v48  ;;  %v5497_v47 = vld [vmem:[%s6217_s4 + $0x88] sm:$0xff] (!%p4653_p1)   ;;  %v5498_v48 = vld [vmem:[%s6217_s4 + $0x50] sm:$0xff] (!%p4653_p1)  }
 0x3fb   : > { %3875 = vmatprep.subr.bf16.mxu0 %v5487_v49  ;;  %v5499_v49 = vld [vmem:[%s6217_s4 + $0xd0] sm:$0xff] (!%p4653_p1)  }
 0x3fd   : > { %3835 = vmatpush1.bf16.msra.mxu1 %v5482_v25  ;;  %v5500_v25 = vld [vmem:[%s6217_s4 + $0x10] sm:$0xff] (!%p4653_p1)  }
 0x3fe   : > { %3876 = vmatpush1.bf16.msra.mxu0 %v5485_v26  ;;  %4721 = vmatprep.subr.bf16.mxu1 (!%p4653_p1), %v5491_v35  ;;  %v5501_v26 = vld [vmem:[%s6217_s4 + $0x90] sm:$0xff] (!%p4653_p1)  }
 0x3ff   : > { %4699 = vmatprep.subr.bf16.mxu0 (!%p4653_p1), %v5490_v34 }
 0x400   : > { %3837 = vmatmul.mubr.bf16.vlgmr.msra.gmra.mrb[20].mxu1 %v7158_v43 }
 0x401   : > { %3878 = vmatmul.mubr.bf16.vlgmr.msra.gmra.mrb[28].mxu0 %v7162_v45  ;;  %4722 = vmatpush3.bf16.msra.mxu1 (!%p4653_p1), %v5493_v39 }
 0x402   : > { %4700 = vmatpush3.bf16.msra.mxu0 (!%p4653_p1), %v5492_v38  ;;  %4723 = vmatprep.subr.bf16.mxu1 (!%p4653_p1), %v5495_v41 }
 0x403   : > { %4701 = vmatprep.subr.bf16.mxu0 (!%p4653_p1), %v5494_v40 }
 0x405   : > { %4724 = vmatpush3.bf16.msra.mxu1 (!%p4653_p1), %v5497_v47 }
 0x406   : > { %4702 = vmatpush3.bf16.msra.mxu0 (!%p4653_p1), %v5496_v42  ;;  %4725 = vmatprep.subr.bf16.mxu1 (!%p4653_p1), %v5499_v49 }
 0x407   : > { %4703 = vmatprep.subr.bf16.mxu0 (!%p4653_p1), %v5498_v48 }
 0x409   : > { %4726 = vmatpush3.bf16.msra.mxu1 (!%p4653_p1), %v5501_v26 }
 0x40a   : > { %4704 = vmatpush3.bf16.msra.mxu0 (!%p4653_p1), %v5500_v25 }
 0x413   : > { %v3592_v50 = vpop.f32.mrb[8].mxu1  ;;  %v3633_v51 = vpop.f32.mrb[16].mxu0 }
 0x414   : > { %v3634_v52 = vadd.f32 %v3633_v51, %v3592_v50  ;;  %v3594_v28 = vpop.f32.mrb[9].mxu1  ;;  %v3635_v53 = vpop.f32.mrb[17].mxu0  ;;  %v5502_v50 = vld [vmem:[%s6217_s4 + $0x58] sm:$0xff] (!%p4653_p1)  }
 0x415   : > { %v3636_v54 = vadd.f32 %v3635_v53, %v3594_v28  ;;  %v3596_v30 = vpop.f32.mrb[10].mxu1  ;;  %v3637_v33 = vpop.f32.mrb[18].mxu0  ;;  %v5503_v51 = vld [vmem:[%s6217_s4 + $0xd8] sm:$0xff] (!%p4653_p1)   ;;  %4705 = vmatprep.subr.bf16.mxu0 (!%p4653_p1), %v5502_v50  ;;  %v5506_v53 = vld [vmem:[%s6217_s4 + $0x60] sm:$0xff] (!%p4653_p1)  }
 0x416   : > { %v3597_v27 = vpop.f32.mrb[11].mxu1  ;;  %v3638_v55 = vpop.f32.mrb[19].mxu0  ;;  %4727 = vmatprep.subr.bf16.mxu1 (!%p4653_p1), %v5503_v51  ;;  %v5505_v28 = vld [vmem:[%s6217_s4 + $0x98] sm:$0xff] (!%p4653_p1)   ;;  %v5508_v30 = vld [vmem:[%s6217_s4 + $0x20] sm:$0xff] (!%p4653_p1)  }
 0x417   : > { %4728 = vmatpush3.bf16.msra.mxu1 (!%p4653_p1), %v5505_v28  ;;  %v5509_v33 = vld [vmem:[%s6217_s4 + $0xa0] sm:$0xff] (!%p4653_p1)   ;;  %v5510_v27 = vld [vmem:[%s6217_s4 + $0x68] sm:$0xff] (!%p4653_p1)  }
 0x418   : > { %v5511_v55 = vld [vmem:[%s6217_s4 + $0xe8] sm:$0xff] (!%p4653_p1)  }
 0x453   : > { %v3674_v36 = vpop.f32.mrb[12].mxu1  ;;  %v3715_v56 = vpop.f32.mrb[20].mxu0 }
 0x454   : > { %v3675_v37 = vadd.f32 %v3674_v36, %v3634_v52  ;;  %v3676_v29 = vpop.f32.mrb[13].mxu1  ;;  %v3717_v57 = vpop.f32.mrb[21].mxu0  ;;  %v5504_v52 = vld [vmem:[%s6217_s4 + $0x18] sm:$0xff] (!%p4653_p1)   ;;  %v5512_v36 = vld [vmem:[%s6217_s4 + $0x28] sm:$0xff] (!%p4653_p1)  }
 0x455   : > { %v3677_v59 = vadd.f32 %v3676_v29, %v3636_v54  ;;  %v3678_v43 = vpop.f32.mrb[14].mxu1  ;;  %v3719_v62 = vpop.f32.mrb[22].mxu0  ;;  %4706 = vmatpush3.bf16.msra.mxu0 (!%p4653_p1), %v5504_v52  ;;  %v5507_v54 = vld [vmem:[%s6217_s4 + $0xe0] sm:$0xff] (!%p4653_p1)   ;;  %v5515_v29 = vld [vmem:[%s6217_s4 + $0xf0] sm:$0xff] (!%p4653_p1)  }
 0x456   : > { %v3716_v45 = vadd.f32 %v3715_v56, %v3675_v37  ;;  %v3679_v61 = vpop.f32.mrb[15].mxu1  ;;  %v3720_v44 = vpop.f32.mrb[23].mxu0  ;;  %4707 = vmatprep.subr.bf16.mxu0 (!%p4653_p1), %v5506_v53  ;;  %4729 = vmatprep.subr.bf16.mxu1 (!%p4653_p1), %v5507_v54  ;;  %v5513_v56 = vld [vmem:[%s6217_s4 + $0xa8] sm:$0xff] (!%p4653_p1)   ;;  %v5514_v37 = vld [vmem:[%s6217_s4 + $0x70] sm:$0xff] (!%p4653_p1)   ;;  %v5519_v43 = vld [vmem:[%s6217_s4 + $0xf8] sm:$0xff] (!%p4653_p1)  }
 0x457   : > { %v3718_v0 = vadd.f32 %v3717_v57, %v3677_v59  ;;  %4730 = vmatpush3.bf16.msra.mxu1 (!%p4653_p1), %v5509_v33  ;;  %v5516_v57 = vld [vmem:[%s6217_s4 + $0x30] sm:$0xff] (!%p4653_p1)   ;;  %v5518_v59 = vld [vmem:[%s6217_s4 + $0x78] sm:$0xff] (!%p4653_p1)  }
 0x458   : > { %v3886_v1 = vadd.f32 %v3716_v45, %v2018_v58  ;;  %4731 = vmatprep.subr.bf16.mxu1 (!%p4653_p1), %v5511_v55  ;;  %v5517_v58 = vld [vmem:[%s6217_s4 + $0xb0] sm:$0xff] (!%p4653_p1)   ;;  %v5520_v62 = vld [vmem:[%s6217_s4 + $0x38] sm:$0xff] (!%p4653_p1)  }
 0x459   : > { %v3887_v2 = vadd.f32 %v3718_v0, %v2019_v63  ;;  %4708 = vmatpush3.bf16.msra.mxu0 (!%p4653_p1), %v5508_v30  ;;  %v5521_v45 = vld [vmem:[%s6217_s4 + $0xb8] sm:$0xff] (!%p4653_p1)  }
 0x45a   : > { %3890 = vst [vmem:[#allocation2] sm:$0xff] %v3886_v1  ;;  %4709 = vmatprep.subr.bf16.mxu0 (!%p4653_p1), %v5510_v27 }
 0x45b   : > { %3891 = vst [vmem:[#allocation2 + $0x8] sm:$0xff] %v3887_v2  ;;  %4732 = vmatpush3.bf16.msra.mxu1 (!%p4653_p1), %v5513_v56 }
 0x45c   : > { %4733 = vmatprep.subr.bf16.mxu1 (!%p4653_p1), %v5515_v29 }
 0x45d   : > { %4710 = vmatpush3.bf16.msra.mxu0 (!%p4653_p1), %v5512_v36 }
 0x45e   : > { %4711 = vmatprep.subr.bf16.mxu0 (!%p4653_p1), %v5514_v37 }
 0x45f   : > { %4734 = vmatpush3.bf16.msra.mxu1 (!%p4653_p1), %v5517_v58 }
 0x460   : > { %4735 = vmatprep.subr.bf16.mxu1 (!%p4653_p1), %v5519_v43 }
 0x461   : > { %4712 = vmatpush3.bf16.msra.mxu0 (!%p4653_p1), %v5516_v57  ;;  %v3898_v44 = vld [vmem:[#allocation2] sm:$0xff] (!%p4653_p1) }
 0x462   : > { %4713 = vmatprep.subr.bf16.mxu0 (!%p4653_p1), %v5518_v59  ;;  %v3899_v63 = vld [vmem:[#allocation2 + $0x8] sm:$0xff] (!%p4653_p1)  ;;  %v3902_v2 = vmax.f32 (!%p4653_p1), %v3898_v44, 0.0 }
 0x463   : > { %4736 = vmatpush3.bf16.msra.mxu1 (!%p4653_p1), %v5521_v45  ;;  %v3903_v0 = vmax.f32 (!%p4653_p1), %v3899_v63, 0.0 }
 0x465   : > { %4714 = vmatpush3.bf16.msra.mxu0 (!%p4653_p1), %v5520_v62 }
 0x493   : > { %v3756_v14 = vpop.f32.mrb[16].mxu1 }
 0x494   : > { %v3797_v24 = vpop.f32.mrb[24].mxu0  ;;  %v3758_v3 = vpop.f32.mrb[17].mxu1 }
 0x495   : > { %v3798_v4 = vadd.f32 %v3797_v24, %v3756_v14  ;;  %v3799_v5 = vpop.f32.mrb[25].mxu0  ;;  %v3760_v6 = vpop.f32.mrb[18].mxu1 }
 0x496   : > { %v3800_v7 = vadd.f32 %v3799_v5, %v3758_v3  ;;  %v3801_v60 = vpop.f32.mrb[26].mxu0  ;;  %v3761_v8 = vpop.f32.mrb[19].mxu1  ;;  %v3907_v3 = vpack.c.bf16 (!%p4653_p1), %v3903_v0, %v3903_v0  ;;  %v3906_v5 = vpack.c.bf16 (!%p4653_p1), %v3902_v2, %v3902_v2 }
 0x497   : > { %v3802_v9 = vpop.f32.mrb[27].mxu0 }
 0x498   : > { %4198 = vmatprep.mubr.bf16.mxu0 (!%p4653_p1), %v3907_v3 }
 0x499   : > { %4199 = vmatmul.mubr.bf16.vlgmr.msra.gmra.mrb[0].mxu0 (!%p4653_p1), %v3906_v5 }
 0x4d3   : > { %v3838_v10 = vpop.f32.mrb[20].mxu1 }
 0x4d4   : > { %v3839_v11 = vadd.f32 %v3838_v10, %v3798_v4  ;;  %v3879_v12 = vpop.f32.mrb[28].mxu0  ;;  %v3840_v13 = vpop.f32.mrb[21].mxu1 }
 0x4d5   : > { %v3841_v46 = vadd.f32 %v3840_v13, %v3800_v7  ;;  %v3881_v16 = vpop.f32.mrb[29].mxu0  ;;  %v3842_v17 = vpop.f32.mrb[22].mxu1  ;;  %3897 = sbr.rel (%p4653_p1) target bundleno = 1474 (0x5c2), region = 79 }
 0x4d6   : > { %v3880_v18 = vadd.f32 %v3879_v12, %v3839_v11  ;;  %v3883_v20 = vpop.f32.mrb[30].mxu0  ;;  %v3843_v21 = vpop.f32.mrb[23].mxu1 }
 0x4d7   : > { %v3882_v22 = vadd.f32 %v3881_v16, %v3841_v46  ;;  %v3884_v23 = vpop.f32.mrb[31].mxu0 }
 0x4d8   : > { %v3888_v31 = vadd.f32 %v3880_v18, %v2020_v15 }
 0x4d9   : > { %v3889_v32 = vadd.f32 %v3882_v22, %v2021_v19 }
 0x4da   : > { %3892 = vst [vmem:[#allocation2 + $0x10] sm:$0xff] %v3888_v31 }
 0x4db   : > { %3893 = vst [vmem:[#allocation2 + $0x18] sm:$0xff] %v3889_v32 }
 0x4e1   : > { %v3900_v14 = vld [vmem:[#allocation2 + $0x10] sm:$0xff] }
 0x4e2   : > { %v3901_v61 = vld [vmem:[#allocation2 + $0x18] sm:$0xff]  ;;  %v3904_v24 = vmax.f32 %v3900_v14, 0.0 }
 0x4e3   : > { %v3905_v1 = vmax.f32 %v3901_v61, 0.0 }
 0x4e4   : > { %v3908_v6 = vpack.c.bf16 %v3904_v24, %v3904_v24 }
 0x4e5   : > { %v3909_v4 = vpack.c.bf16 %v3905_v1, %v3905_v1 }
 0x4e7   : > { %4238 = vmatprep.mubr.bf16.mxu1 %v3909_v4 }
 0x4e8   : > { %4239 = vmatmul.mubr.bf16.vlgmr.msra.gmra.mrb[0].mxu1 %v3908_v6 }
 0x56c   : > { %v4715_v7 = vpop.f32.mrb[0].mxu0 }
 0x56d   : > { %v4716_v8 = vpop.f32.mrb[1].mxu0 }
 0x56e   : > { %v4717_v10 = vadd.f32 %v4716_v8, %v4715_v7  ;;  %v4718_v12 = vpop.f32.mrb[2].mxu0 }
 0x56f   : > { %v4719_v15 = vpop.f32.mrb[3].mxu0 }
 0x5bb   : > { %v4737_v60 = vpop.f32.mrb[0].mxu1 }
 0x5bc   : > { %v4738_v9 = vpop.f32.mrb[1].mxu1 }
 0x5bd   : > { %v4739_v11 = vadd.f32 %v4738_v9, %v4737_v60  ;;  %v4740_v13 = vpop.f32.mrb[2].mxu1 }
 0x5be   : > { %v4741_v46 = vpop.f32.mrb[3].mxu1 }
 0x5bf   : > { %v4241_v16 = vadd.f32 %v4739_v11, %v4717_v10 }
 0x5c1   : > { %4246 = vst [vmem:[%s6222_s16] sm:$0xff] %v4241_v16 }
 0x5c2 PF: > { %s17_s30 = sadd.s32 1, %s5576_s30   ;;  %s7368_s4 = sld [smem:[#allocation4_spill]] }
 0x5c3   : > { %p14_p2 = scmp.ge.s32.totalorder %s17_s30, 6   ;;  %s7369_s18 = sld [smem:[#allocation5_spill]] }
 0x5c4   : > { %s7370_s24 = smov %s5556_s25  ;;  %s7371_s25 = smov %s5672_s14 }
 0x5c5   : > { %s7372_s26 = smov %s5568_s28  ;;  %s7373_s27 = smov %s5572_s29 }
 0x5c6   :  { %16 = sbr.rel (!%p14_p2) target bundleno = 6 (0x6), region = 123 }
 0x5c8   : > { %s7374_s28 = smov %s7368_s4 }
 0x5c9   : > { %s7375_s29 = smov %s7369_s18 }

</bundles_post_ra>
